<compile_context>
chip_gen: v5e
topology: v5e:2x2
jax: 0.10.0
libtpu: 0.0.40
codegen_flags: <defaults>
</compile_context>

<pallas_src>
import jax
import jax.numpy as jnp
from jax.experimental import pallas as pl
from jax.experimental.pallas import tpu as pltpu

# ---------------- small CCT configuration ----------------
IMG = 16                 # img_size
C_IN = 3                 # n_input_channels
EMBED = 64               # embedding_dim
KSIZE, STRIDE, PAD = 3, 2, 1          # tokenizer conv
PK, PS, PP = 3, 2, 1                  # tokenizer max-pool
NUM_LAYERS = 2
NUM_HEADS = 4
HEAD_DIM = EMBED // NUM_HEADS
MLP_RATIO = 2.0
FF = int(EMBED * MLP_RATIO)
NUM_CLASSES = 10
LN_EPS = 1e-5
SCALE = HEAD_DIM ** -0.5

H_CONV = (IMG + 2 * PAD - KSIZE) // STRIDE + 1        # conv spatial size (8)
H_POOL = (H_CONV + 2 * PP - PK) // PS + 1             # pooled spatial size (4)
SEQ_LEN = H_POOL * H_POOL                             # transformer sequence length (16)
P_CONV = H_CONV * H_CONV                              # conv output positions (64)
CK = C_IN * KSIZE * KSIZE                             # im2col patch size (27)
CKP = 32                                              # padded (sublane-aligned) patch size
CPAD = 128                                            # lane-dense padded class count

WDT = jnp.bfloat16       # storage dtype for GEMM weights
CDT = jnp.bfloat16       # MXU operand dtype (accumulation stays f32)


# ---------------- in-kernel helpers (f32 math) ----------------
def _layernorm(x, gamma, beta, eps=LN_EPS):
    mu = jnp.mean(x, axis=-1, keepdims=True)
    xc = x - mu
    var = jnp.mean(xc * xc, axis=-1, keepdims=True)
    return xc * jax.lax.rsqrt(var + eps) * gamma + beta


def _gelu(x):
    # TODO(synk): torch F.gelu defaults to the exact erf formulation; the tanh
    # approximation is used because erf is not guaranteed to lower in Mosaic.
    c = 0.7978845608028654  # sqrt(2/pi)
    return 0.5 * x * (1.0 + jnp.tanh(c * (x + 0.044715 * x * x * x)))


# ---------------- the single fused Pallas kernel ----------------
def cct_fused_kernel(patches_ref, convw_ref, pos_ref,
                     ln0g_ref, ln0b_ref, wq_ref, wk_ref, wv_ref,
                     wproj_ref, bproj_ref, ln1g_ref, ln1b_ref,
                     w1_ref, b1_ref, w2_ref, b2_ref,
                     ng_ref, nb_ref, pw_ref, pb_ref, fcw_ref, fcb_ref,
                     out_ref):
    BH = patches_ref.shape[0]          # batch elements handled by this grid step
    M = BH * SEQ_LEN                   # flattened token rows for all GEMMs

    # ---- tokenizer: conv-as-GEMM (+ReLU); patches already bf16, K padded to 32 ----
    p2 = patches_ref[...].reshape(BH * P_CONV, CKP)
    y = jnp.dot(p2, convw_ref[...], preferred_element_type=jnp.float32)
    y = jnp.maximum(y, 0.0).reshape(BH, H_CONV, H_CONV, EMBED)

    # ---- MaxPool2d(3, stride=2, pad=1): 16 statically clamped windows, register-resident
    #      (no scratch stores / reload; exact semantics without padding buffers) ----
    pooled_toks = []
    for oh in range(H_POOL):
        r0 = max(0, oh * PS - PP)
        r1 = min(H_CONV, oh * PS - PP + PK)
        for ow in range(H_POOL):
            c0 = max(0, ow * PS - PP)
            c1 = min(H_CONV, ow * PS - PP + PK)
            win = y[:, r0:r1, c0:c1, :]
            pooled_toks.append(jnp.max(jnp.max(win, axis=2), axis=1))   # (BH, EMBED)
    tok = jnp.stack(pooled_toks, axis=1)                                # (BH, 16, EMBED)

    # ---- positional embedding add ----
    x = (tok + pos_ref[...]).reshape(M, EMBED)

    # ---- transformer encoder layers (unrolled; weights stacked on leading L axis) ----
    for l in range(NUM_LAYERS):
        y0 = _layernorm(x, ln0g_ref[l], ln0b_ref[l])
        y0b = y0.astype(CDT)                    # cast once, reused by the 3 q/k/v GEMMs
        q = jnp.dot(y0b, wq_ref[l], preferred_element_type=jnp.float32)
        k = jnp.dot(y0b, wk_ref[l], preferred_element_type=jnp.float32)
        v = jnp.dot(y0b, wv_ref[l], preferred_element_type=jnp.float32)

        q3 = (q * SCALE).astype(CDT).reshape(BH, SEQ_LEN, EMBED)
        k3 = k.astype(CDT).reshape(BH, SEQ_LEN, EMBED)
        v3 = v.astype(CDT).reshape(BH, SEQ_LEN, EMBED)

        # per-head attention, batched over BH (no Python loop over batch)
        ctx_heads = []
        for h in range(NUM_HEADS):
            sl = slice(h * HEAD_DIM, (h + 1) * HEAD_DIM)
            qh, kh, vh = q3[:, :, sl], k3[:, :, sl], v3[:, :, sl]        # (BH, N, hd)
            s = jax.lax.dot_general(qh, kh, (((2,), (2,)), ((0,), (0,))),
                                    preferred_element_type=jnp.float32)  # (BH, N, N)
            s = s - jnp.max(s, axis=-1, keepdims=True)
            e = jnp.exp(s)
            p = e * pl.reciprocal(jnp.sum(e, axis=-1, keepdims=True), approx=True)
            ctx = jax.lax.dot_general(p.astype(CDT), vh,
                                      (((2,), (1,)), ((0,), (0,))),
                                      preferred_element_type=jnp.float32)  # (BH, N, hd)
            ctx_heads.append(ctx)
        attn = jnp.concatenate(ctx_heads, axis=-1).reshape(M, EMBED)

        attn = jnp.dot(attn.astype(CDT), wproj_ref[l],
                       preferred_element_type=jnp.float32) + bproj_ref[l]

        # residual -> norm1 -> MLP -> residual (matches the torch encoder layer exactly)
        src = _layernorm(x + attn, ln1g_ref[l], ln1b_ref[l])
        h1 = jnp.dot(src.astype(CDT), w1_ref[l],
                     preferred_element_type=jnp.float32) + b1_ref[l]
        h1 = _gelu(h1)
        src2 = jnp.dot(h1.astype(CDT), w2_ref[l],
                       preferred_element_type=jnp.float32) + b2_ref[l]
        x = src + src2

    # ---- final LayerNorm + seq-pool (softmax attention pooling) + fc head ----
    xn = _layernorm(x, ng_ref[...], nb_ref[...])                        # (M, D)
    xn3 = xn.reshape(BH, SEQ_LEN, EMBED)
    a = jnp.sum(xn3 * pw_ref[...], axis=-1, keepdims=True) + pb_ref[0, 0]   # (BH, N, 1)
    a = a - jnp.max(a, axis=1, keepdims=True)
    e = jnp.exp(a)
    wgt = e * pl.reciprocal(jnp.sum(e, axis=1, keepdims=True), approx=True)
    pooled = jnp.sum(wgt * xn3, axis=1)                                 # (BH, D)
    logits = jnp.dot(pooled.astype(CDT), fcw_ref[...],
                     preferred_element_type=jnp.float32) + fcb_ref[...]     # (BH, 128)
    out_ref[...] = logits[:, None, :].astype(out_ref.dtype)             # single lane-dense slab


# ---------------- glue: im2col patch extraction (pure layout work, XLA) ----------------
def _im2col(x):
    # x: (B, C, H, W) NCHW -> (B, Ho*Wo, C*k*k) with channel-major flattening
    B = x.shape[0]
    xp = jnp.pad(x, ((0, 0), (0, 0), (PAD, PAD), (PAD, PAD)))
    cols = []
    for dh in range(KSIZE):
        for dw in range(KSIZE):
            cols.append(xp[:, :,
                           dh:dh + STRIDE * (H_CONV - 1) + 1:STRIDE,
                           dw:dw + STRIDE * (H_CONV - 1) + 1:STRIDE])   # (B,C,Ho,Wo)
    patches = jnp.stack(cols, axis=2)                         # (B, C, k*k, Ho, Wo)
    patches = patches.reshape(B, CK, P_CONV)
    return jnp.transpose(patches, (0, 2, 1))                  # (B, P, CK)


# ---------------- pallas_call wrapper ----------------
def _w_spec(arr):
    nd = arr.ndim
    return pl.BlockSpec(arr.shape, lambda i, _nd=nd: (0,) * _nd)


def cct_forward(x, params):
    B = x.shape[0]
    patches = _im2col(x)                                               # (B, P, 27)
    patches = jnp.pad(patches, ((0, 0), (0, 0), (0, CKP - CK))).astype(CDT)  # bf16 DMA

    # Split the batch over the grid ONLY if each step keeps M = BH*SEQ_LEN >= 128
    # (worth it for cross-TC sharding on v7x); otherwise run one grid step.
    nsplit = 2 if (B % 2 == 0 and (B // 2) * SEQ_LEN >= 128) else 1
    BH = B // nsplit

    weight_args = (params["conv_w"], params["pos_emb"],
                   params["ln0_g"], params["ln0_b"],
                   params["wq"], params["wk"], params["wv"],
                   params["wproj"], params["bproj"],
                   params["ln1_g"], params["ln1_b"],
                   params["w1"], params["b1"], params["w2"], params["b2"],
                   params["norm_g"], params["norm_b"],
                   params["pool_w"], params["pool_b"],
                   params["fc_w"], params["fc_b"])

    in_specs = [pl.BlockSpec((BH, P_CONV, CKP), lambda i: (i, 0, 0))]
    for a in weight_args:
        if a is params["pool_b"]:   # true scalar -> SMEM (scalar path, frees a vld)
            in_specs.append(pl.BlockSpec(memory_space=pltpu.MemorySpace.SMEM))
        else:
            in_specs.append(_w_spec(a))

    logits_p = pl.pallas_call(
        cct_fused_kernel,
        out_shape=jax.ShapeDtypeStruct((B, 1, CPAD), jnp.float32),
        grid=(nsplit,),
        in_specs=in_specs,
        out_specs=pl.BlockSpec((BH, 1, CPAD), lambda i: (i, 0, 0)),
        compiler_params=pltpu.CompilerParams(dimension_semantics=("parallel",)),
    )(patches, *weight_args)

    return logits_p[:, 0, :NUM_CLASSES]


# ---------------- parameters (deterministic synthetic init) ----------------
def init_params(key):
    ks = jax.random.split(key, 10)
    f32 = jnp.float32

    def tn(k, shape):
        return jax.random.normal(k, shape, f32) * 0.02

    conv_w = jax.random.normal(ks[0], (EMBED, C_IN, KSIZE, KSIZE), f32) * (2.0 / CK) ** 0.5
    conv_w = conv_w.reshape(EMBED, CK).T                               # (CK, EMBED)
    return {
        "conv_w": jnp.pad(conv_w, ((0, CKP - CK), (0, 0))).astype(WDT),
        # learnable positional embedding, trunc_normal std=0.2 approximated by normal
        "pos_emb": jax.random.normal(ks[1], (SEQ_LEN, EMBED), f32) * 0.2,
        "ln0_g": jnp.ones((NUM_LAYERS, 1, EMBED), f32),
        "ln0_b": jnp.zeros((NUM_LAYERS, 1, EMBED), f32),
        # qkv weights pre-split (q/k/v columns of the torch qkv Linear, transposed)
        "wq": tn(ks[2], (NUM_LAYERS, EMBED, EMBED)).astype(WDT),
        "wk": tn(ks[3], (NUM_LAYERS, EMBED, EMBED)).astype(WDT),
        "wv": tn(ks[4], (NUM_LAYERS, EMBED, EMBED)).astype(WDT),
        "wproj": tn(ks[5], (NUM_LAYERS, EMBED, EMBED)).astype(WDT),
        "bproj": jnp.zeros((NUM_LAYERS, 1, EMBED), f32),
        "ln1_g": jnp.ones((NUM_LAYERS, 1, EMBED), f32),
        "ln1_b": jnp.zeros((NUM_LAYERS, 1, EMBED), f32),
        "w1": tn(ks[6], (NUM_LAYERS, EMBED, FF)).astype(WDT),
        "b1": jnp.zeros((NUM_LAYERS, 1, FF), f32),
        "w2": tn(ks[7], (NUM_LAYERS, FF, EMBED)).astype(WDT),
        "b2": jnp.zeros((NUM_LAYERS, 1, EMBED), f32),
        "norm_g": jnp.ones((1, EMBED), f32),
        "norm_b": jnp.zeros((1, EMBED), f32),
        "pool_w": tn(ks[8], (1, EMBED)),
        "pool_b": jnp.zeros((1, 1), f32),
        "fc_w": jnp.pad(tn(ks[9], (EMBED, NUM_CLASSES)),
                        ((0, 0), (0, CPAD - NUM_CLASSES))).astype(WDT),
        "fc_b": jnp.zeros((1, CPAD), f32),
    }


if __name__ == "__main__":
    key = jax.random.PRNGKey(0)
    x = jax.random.normal(key, (2, C_IN, IMG, IMG), dtype=jnp.float32)
    params = init_params(jax.random.PRNGKey(42))

    fwd = jax.jit(cct_forward)
    logits = fwd(x, params)
    logits = jax.block_until_ready(logits)

    assert logits.shape == (2, NUM_CLASSES), logits.shape
    assert bool(jnp.all(jnp.isfinite(logits)))
    print("KERNEL_OK")
</pallas_src>

<mosaic_0001>
module attributes {stable_mosaic.version = 11 : i64} {
  func.func @cct_fused_kernel(%arg0: i32, %arg1: memref<2x64x32xbf16, #tpu.memory_space<vmem>>, %arg2: memref<32x64xbf16, #tpu.memory_space<vmem>>, %arg3: memref<16x64xf32, #tpu.memory_space<vmem>>, %arg4: memref<2x1x64xf32, #tpu.memory_space<vmem>>, %arg5: memref<2x1x64xf32, #tpu.memory_space<vmem>>, %arg6: memref<2x64x64xbf16, #tpu.memory_space<vmem>>, %arg7: memref<2x64x64xbf16, #tpu.memory_space<vmem>>, %arg8: memref<2x64x64xbf16, #tpu.memory_space<vmem>>, %arg9: memref<2x64x64xbf16, #tpu.memory_space<vmem>>, %arg10: memref<2x1x64xf32, #tpu.memory_space<vmem>>, %arg11: memref<2x1x64xf32, #tpu.memory_space<vmem>>, %arg12: memref<2x1x64xf32, #tpu.memory_space<vmem>>, %arg13: memref<2x64x128xbf16, #tpu.memory_space<vmem>>, %arg14: memref<2x1x128xf32, #tpu.memory_space<vmem>>, %arg15: memref<2x128x64xbf16, #tpu.memory_space<vmem>>, %arg16: memref<2x1x64xf32, #tpu.memory_space<vmem>>, %arg17: memref<1x64xf32, #tpu.memory_space<vmem>>, %arg18: memref<1x64xf32, #tpu.memory_space<vmem>>, %arg19: memref<1x64xf32, #tpu.memory_space<vmem>>, %arg20: memref<1x1xf32, #tpu.memory_space<smem>>, %arg21: memref<64x128xbf16, #tpu.memory_space<vmem>>, %arg22: memref<1x128xf32, #tpu.memory_space<vmem>>, %arg23: memref<2x1x128xf32, #tpu.memory_space<vmem>>) attributes {dimension_semantics = [#tpu.dimension_semantics<parallel>], iteration_bounds = array<i64: 1>, scalar_prefetch = 0 : i64, scratch_operands = 0 : i64, tpu.core_type = #tpu.core_type<tc>, window_params = [{transform_indices = @transform_0, window_bounds = array<i64: 2, 64, 32>}, {pipeline_mode = #tpu.pipeline_mode<synchronous>, transform_indices = @transform_1, window_bounds = array<i64: 32, 64>}, {pipeline_mode = #tpu.pipeline_mode<synchronous>, transform_indices = @transform_2, window_bounds = array<i64: 16, 64>}, {pipeline_mode = #tpu.pipeline_mode<synchronous>, transform_indices = @transform_3, window_bounds = array<i64: 2, 1, 64>}, {pipeline_mode = #tpu.pipeline_mode<synchronous>, transform_indices = @transform_4, window_bounds = array<i64: 2, 1, 64>}, {pipeline_mode = #tpu.pipeline_mode<synchronous>, transform_indices = @transform_5, window_bounds = array<i64: 2, 64, 64>}, {pipeline_mode = #tpu.pipeline_mode<synchronous>, transform_indices = @transform_6, window_bounds = array<i64: 2, 64, 64>}, {pipeline_mode = #tpu.pipeline_mode<synchronous>, transform_indices = @transform_7, window_bounds = array<i64: 2, 64, 64>}, {pipeline_mode = #tpu.pipeline_mode<synchronous>, transform_indices = @transform_8, window_bounds = array<i64: 2, 64, 64>}, {pipeline_mode = #tpu.pipeline_mode<synchronous>, transform_indices = @transform_9, window_bounds = array<i64: 2, 1, 64>}, {pipeline_mode = #tpu.pipeline_mode<synchronous>, transform_indices = @transform_10, window_bounds = array<i64: 2, 1, 64>}, {pipeline_mode = #tpu.pipeline_mode<synchronous>, transform_indices = @transform_11, window_bounds = array<i64: 2, 1, 64>}, {pipeline_mode = #tpu.pipeline_mode<synchronous>, transform_indices = @transform_12, window_bounds = array<i64: 2, 64, 128>}, {pipeline_mode = #tpu.pipeline_mode<synchronous>, transform_indices = @transform_13, window_bounds = array<i64: 2, 1, 128>}, {pipeline_mode = #tpu.pipeline_mode<synchronous>, transform_indices = @transform_14, window_bounds = array<i64: 2, 128, 64>}, {pipeline_mode = #tpu.pipeline_mode<synchronous>, transform_indices = @transform_15, window_bounds = array<i64: 2, 1, 64>}, {pipeline_mode = #tpu.pipeline_mode<synchronous>, transform_indices = @transform_16, window_bounds = array<i64: 1, 64>}, {pipeline_mode = #tpu.pipeline_mode<synchronous>, transform_indices = @transform_17, window_bounds = array<i64: 1, 64>}, {pipeline_mode = #tpu.pipeline_mode<synchronous>, transform_indices = @transform_18, window_bounds = array<i64: 1, 64>}, {transform_indices = @transform_19, window_bounds = array<i64: 1, 1>}, {pipeline_mode = #tpu.pipeline_mode<synchronous>, transform_indices = @transform_20, window_bounds = array<i64: 64, 128>}, {pipeline_mode = #tpu.pipeline_mode<synchronous>, transform_indices = @transform_21, window_bounds = array<i64: 1, 128>}, {transform_indices = @transform_22, window_bounds = array<i64: 2, 1, 128>}]} {
    %c0 = arith.constant 0 : index
    %c0_0 = arith.constant 0 : index
    %c0_1 = arith.constant 0 : index
    %0 = vector.load %arg1[%c0, %c0_0, %c0_1] : memref<2x64x32xbf16, #tpu.memory_space<vmem>>, vector<2x64x32xbf16>
    %1 = vector.shape_cast %0 : vector<2x64x32xbf16> to vector<128x32xbf16>
    %c0_2 = arith.constant 0 : index
    %c0_3 = arith.constant 0 : index
    %2 = vector.load %arg2[%c0_2, %c0_3] : memref<32x64xbf16, #tpu.memory_space<vmem>>, vector<32x64xbf16>
    %cst = arith.constant dense<0.000000e+00> : vector<128x64xf32>
    %3 = tpu.matmul %1, %2, %cst {dimension_numbers = #tpu.dot_dimension_numbers<[1], [0], [0], [1], [0, 0, 1, 1], [], []>} : vector<128x32xbf16>, vector<32x64xbf16>, vector<128x64xf32> -> vector<128x64xf32>
    %cst_4 = arith.constant 0.000000e+00 : f32
    %4 = vector.broadcast %cst_4 : f32 to vector<128x64xf32>
    %5 = arith.maximumf %3, %4 : vector<128x64xf32>
    %6 = vector.shape_cast %5 : vector<128x64xf32> to vector<2x8x8x64xf32>
    %7 = vector.extract_strided_slice %6 {offsets = [0, 0, 0, 0], sizes = [2, 2, 2, 64], strides = [1, 1, 1, 1]} : vector<2x8x8x64xf32> to vector<2x2x2x64xf32>
    %cst_5 = arith.constant dense<0xFF800000> : vector<2x2x64xf32>
    %8 = vector.multi_reduction <maximumf>, %7, %cst_5 [2] : vector<2x2x2x64xf32> to vector<2x2x64xf32>
    %cst_6 = arith.constant dense<0xFF800000> : vector<2x64xf32>
    %9 = vector.multi_reduction <maximumf>, %8, %cst_6 [1] : vector<2x2x64xf32> to vector<2x64xf32>
    %10 = vector.extract_strided_slice %6 {offsets = [0, 0, 1, 0], sizes = [2, 2, 3, 64], strides = [1, 1, 1, 1]} : vector<2x8x8x64xf32> to vector<2x2x3x64xf32>
    %cst_7 = arith.constant dense<0xFF800000> : vector<2x2x64xf32>
    %11 = vector.multi_reduction <maximumf>, %10, %cst_7 [2] : vector<2x2x3x64xf32> to vector<2x2x64xf32>
    %cst_8 = arith.constant dense<0xFF800000> : vector<2x64xf32>
    %12 = vector.multi_reduction <maximumf>, %11, %cst_8 [1] : vector<2x2x64xf32> to vector<2x64xf32>
    %13 = vector.extract_strided_slice %6 {offsets = [0, 0, 3, 0], sizes = [2, 2, 3, 64], strides = [1, 1, 1, 1]} : vector<2x8x8x64xf32> to vector<2x2x3x64xf32>
    %cst_9 = arith.constant dense<0xFF800000> : vector<2x2x64xf32>
    %14 = vector.multi_reduction <maximumf>, %13, %cst_9 [2] : vector<2x2x3x64xf32> to vector<2x2x64xf32>
    %cst_10 = arith.constant dense<0xFF800000> : vector<2x64xf32>
    %15 = vector.multi_reduction <maximumf>, %14, %cst_10 [1] : vector<2x2x64xf32> to vector<2x64xf32>
    %16 = vector.extract_strided_slice %6 {offsets = [0, 0, 5, 0], sizes = [2, 2, 3, 64], strides = [1, 1, 1, 1]} : vector<2x8x8x64xf32> to vector<2x2x3x64xf32>
    %cst_11 = arith.constant dense<0xFF800000> : vector<2x2x64xf32>
    %17 = vector.multi_reduction <maximumf>, %16, %cst_11 [2] : vector<2x2x3x64xf32> to vector<2x2x64xf32>
    %cst_12 = arith.constant dense<0xFF800000> : vector<2x64xf32>
    %18 = vector.multi_reduction <maximumf>, %17, %cst_12 [1] : vector<2x2x64xf32> to vector<2x64xf32>
    %19 = vector.extract_strided_slice %6 {offsets = [0, 1, 0, 0], sizes = [2, 3, 2, 64], strides = [1, 1, 1, 1]} : vector<2x8x8x64xf32> to vector<2x3x2x64xf32>
    %cst_13 = arith.constant dense<0xFF800000> : vector<2x3x64xf32>
    %20 = vector.multi_reduction <maximumf>, %19, %cst_13 [2] : vector<2x3x2x64xf32> to vector<2x3x64xf32>
    %cst_14 = arith.constant dense<0xFF800000> : vector<2x64xf32>
    %21 = vector.multi_reduction <maximumf>, %20, %cst_14 [1] : vector<2x3x64xf32> to vector<2x64xf32>
    %22 = vector.extract_strided_slice %6 {offsets = [0, 1, 1, 0], sizes = [2, 3, 3, 64], strides = [1, 1, 1, 1]} : vector<2x8x8x64xf32> to vector<2x3x3x64xf32>
    %cst_15 = arith.constant dense<0xFF800000> : vector<2x3x64xf32>
    %23 = vector.multi_reduction <maximumf>, %22, %cst_15 [2] : vector<2x3x3x64xf32> to vector<2x3x64xf32>
    %cst_16 = arith.constant dense<0xFF800000> : vector<2x64xf32>
    %24 = vector.multi_reduction <maximumf>, %23, %cst_16 [1] : vector<2x3x64xf32> to vector<2x64xf32>
    %25 = vector.extract_strided_slice %6 {offsets = [0, 1, 3, 0], sizes = [2, 3, 3, 64], strides = [1, 1, 1, 1]} : vector<2x8x8x64xf32> to vector<2x3x3x64xf32>
    %cst_17 = arith.constant dense<0xFF800000> : vector<2x3x64xf32>
    %26 = vector.multi_reduction <maximumf>, %25, %cst_17 [2] : vector<2x3x3x64xf32> to vector<2x3x64xf32>
    %cst_18 = arith.constant dense<0xFF800000> : vector<2x64xf32>
    %27 = vector.multi_reduction <maximumf>, %26, %cst_18 [1] : vector<2x3x64xf32> to vector<2x64xf32>
    %28 = vector.extract_strided_slice %6 {offsets = [0, 1, 5, 0], sizes = [2, 3, 3, 64], strides = [1, 1, 1, 1]} : vector<2x8x8x64xf32> to vector<2x3x3x64xf32>
    %cst_19 = arith.constant dense<0xFF800000> : vector<2x3x64xf32>
    %29 = vector.multi_reduction <maximumf>, %28, %cst_19 [2] : vector<2x3x3x64xf32> to vector<2x3x64xf32>
    %cst_20 = arith.constant dense<0xFF800000> : vector<2x64xf32>
    %30 = vector.multi_reduction <maximumf>, %29, %cst_20 [1] : vector<2x3x64xf32> to vector<2x64xf32>
    %31 = vector.extract_strided_slice %6 {offsets = [0, 3, 0, 0], sizes = [2, 3, 2, 64], strides = [1, 1, 1, 1]} : vector<2x8x8x64xf32> to vector<2x3x2x64xf32>
    %cst_21 = arith.constant dense<0xFF800000> : vector<2x3x64xf32>
    %32 = vector.multi_reduction <maximumf>, %31, %cst_21 [2] : vector<2x3x2x64xf32> to vector<2x3x64xf32>
    %cst_22 = arith.constant dense<0xFF800000> : vector<2x64xf32>
    %33 = vector.multi_reduction <maximumf>, %32, %cst_22 [1] : vector<2x3x64xf32> to vector<2x64xf32>
    %34 = vector.extract_strided_slice %6 {offsets = [0, 3, 1, 0], sizes = [2, 3, 3, 64], strides = [1, 1, 1, 1]} : vector<2x8x8x64xf32> to vector<2x3x3x64xf32>
    %cst_23 = arith.constant dense<0xFF800000> : vector<2x3x64xf32>
    %35 = vector.multi_reduction <maximumf>, %34, %cst_23 [2] : vector<2x3x3x64xf32> to vector<2x3x64xf32>
    %cst_24 = arith.constant dense<0xFF800000> : vector<2x64xf32>
    %36 = vector.multi_reduction <maximumf>, %35, %cst_24 [1] : vector<2x3x64xf32> to vector<2x64xf32>
    %37 = vector.extract_strided_slice %6 {offsets = [0, 3, 3, 0], sizes = [2, 3, 3, 64], strides = [1, 1, 1, 1]} : vector<2x8x8x64xf32> to vector<2x3x3x64xf32>
    %cst_25 = arith.constant dense<0xFF800000> : vector<2x3x64xf32>
    %38 = vector.multi_reduction <maximumf>, %37, %cst_25 [2] : vector<2x3x3x64xf32> to vector<2x3x64xf32>
    %cst_26 = arith.constant dense<0xFF800000> : vector<2x64xf32>
    %39 = vector.multi_reduction <maximumf>, %38, %cst_26 [1] : vector<2x3x64xf32> to vector<2x64xf32>
    %40 = vector.extract_strided_slice %6 {offsets = [0, 3, 5, 0], sizes = [2, 3, 3, 64], strides = [1, 1, 1, 1]} : vector<2x8x8x64xf32> to vector<2x3x3x64xf32>
    %cst_27 = arith.constant dense<0xFF800000> : vector<2x3x64xf32>
    %41 = vector.multi_reduction <maximumf>, %40, %cst_27 [2] : vector<2x3x3x64xf32> to vector<2x3x64xf32>
    %cst_28 = arith.constant dense<0xFF800000> : vector<2x64xf32>
    %42 = vector.multi_reduction <maximumf>, %41, %cst_28 [1] : vector<2x3x64xf32> to vector<2x64xf32>
    %43 = vector.extract_strided_slice %6 {offsets = [0, 5, 0, 0], sizes = [2, 3, 2, 64], strides = [1, 1, 1, 1]} : vector<2x8x8x64xf32> to vector<2x3x2x64xf32>
    %cst_29 = arith.constant dense<0xFF800000> : vector<2x3x64xf32>
    %44 = vector.multi_reduction <maximumf>, %43, %cst_29 [2] : vector<2x3x2x64xf32> to vector<2x3x64xf32>
    %cst_30 = arith.constant dense<0xFF800000> : vector<2x64xf32>
    %45 = vector.multi_reduction <maximumf>, %44, %cst_30 [1] : vector<2x3x64xf32> to vector<2x64xf32>
    %46 = vector.extract_strided_slice %6 {offsets = [0, 5, 1, 0], sizes = [2, 3, 3, 64], strides = [1, 1, 1, 1]} : vector<2x8x8x64xf32> to vector<2x3x3x64xf32>
    %cst_31 = arith.constant dense<0xFF800000> : vector<2x3x64xf32>
    %47 = vector.multi_reduction <maximumf>, %46, %cst_31 [2] : vector<2x3x3x64xf32> to vector<2x3x64xf32>
    %cst_32 = arith.constant dense<0xFF800000> : vector<2x64xf32>
    %48 = vector.multi_reduction <maximumf>, %47, %cst_32 [1] : vector<2x3x64xf32> to vector<2x64xf32>
    %49 = vector.extract_strided_slice %6 {offsets = [0, 5, 3, 0], sizes = [2, 3, 3, 64], strides = [1, 1, 1, 1]} : vector<2x8x8x64xf32> to vector<2x3x3x64xf32>
    %cst_33 = arith.constant dense<0xFF800000> : vector<2x3x64xf32>
    %50 = vector.multi_reduction <maximumf>, %49, %cst_33 [2] : vector<2x3x3x64xf32> to vector<2x3x64xf32>
    %cst_34 = arith.constant dense<0xFF800000> : vector<2x64xf32>
    %51 = vector.multi_reduction <maximumf>, %50, %cst_34 [1] : vector<2x3x64xf32> to vector<2x64xf32>
    %52 = vector.extract_strided_slice %6 {offsets = [0, 5, 5, 0], sizes = [2, 3, 3, 64], strides = [1, 1, 1, 1]} : vector<2x8x8x64xf32> to vector<2x3x3x64xf32>
    %cst_35 = arith.constant dense<0xFF800000> : vector<2x3x64xf32>
    %53 = vector.multi_reduction <maximumf>, %52, %cst_35 [2] : vector<2x3x3x64xf32> to vector<2x3x64xf32>
    %cst_36 = arith.constant dense<0xFF800000> : vector<2x64xf32>
    %54 = vector.multi_reduction <maximumf>, %53, %cst_36 [1] : vector<2x3x64xf32> to vector<2x64xf32>
    %55 = vector.shape_cast %9 : vector<2x64xf32> to vector<2x1x64xf32>
    %56 = vector.shape_cast %12 : vector<2x64xf32> to vector<2x1x64xf32>
    %57 = vector.shape_cast %15 : vector<2x64xf32> to vector<2x1x64xf32>
    %58 = vector.shape_cast %18 : vector<2x64xf32> to vector<2x1x64xf32>
    %59 = vector.shape_cast %21 : vector<2x64xf32> to vector<2x1x64xf32>
    %60 = vector.shape_cast %24 : vector<2x64xf32> to vector<2x1x64xf32>
    %61 = vector.shape_cast %27 : vector<2x64xf32> to vector<2x1x64xf32>
    %62 = vector.shape_cast %30 : vector<2x64xf32> to vector<2x1x64xf32>
    %63 = vector.shape_cast %33 : vector<2x64xf32> to vector<2x1x64xf32>
    %64 = vector.shape_cast %36 : vector<2x64xf32> to vector<2x1x64xf32>
    %65 = vector.shape_cast %39 : vector<2x64xf32> to vector<2x1x64xf32>
    %66 = vector.shape_cast %42 : vector<2x64xf32> to vector<2x1x64xf32>
    %67 = vector.shape_cast %45 : vector<2x64xf32> to vector<2x1x64xf32>
    %68 = vector.shape_cast %48 : vector<2x64xf32> to vector<2x1x64xf32>
    %69 = vector.shape_cast %51 : vector<2x64xf32> to vector<2x1x64xf32>
    %70 = vector.shape_cast %54 : vector<2x64xf32> to vector<2x1x64xf32>
    %71 = tpu.concatenate %55, %56, %57, %58, %59, %60, %61, %62, %63, %64, %65, %66, %67, %68, %69, %70 in 1 : vector<2x1x64xf32>, vector<2x1x64xf32>, vector<2x1x64xf32>, vector<2x1x64xf32>, vector<2x1x64xf32>, vector<2x1x64xf32>, vector<2x1x64xf32>, vector<2x1x64xf32>, vector<2x1x64xf32>, vector<2x1x64xf32>, vector<2x1x64xf32>, vector<2x1x64xf32>, vector<2x1x64xf32>, vector<2x1x64xf32>, vector<2x1x64xf32>, vector<2x1x64xf32> -> vector<2x16x64xf32>
    %c0_37 = arith.constant 0 : index
    %c0_38 = arith.constant 0 : index
    %72 = vector.load %arg3[%c0_37, %c0_38] : memref<16x64xf32, #tpu.memory_space<vmem>>, vector<16x64xf32>
    %73 = vector.shape_cast %72 : vector<16x64xf32> to vector<1x16x64xf32>
    %74 = vector.broadcast %73 : vector<1x16x64xf32> to vector<2x16x64xf32>
    %75 = arith.addf %71, %74 : vector<2x16x64xf32>
    %76 = vector.shape_cast %75 : vector<2x16x64xf32> to vector<32x64xf32>
    %c0_39 = arith.constant 0 : index
    %c0_40 = arith.constant 0 : index
    %c0_41 = arith.constant 0 : index
    %77 = vector.load %arg4[%c0_39, %c0_40, %c0_41] : memref<2x1x64xf32, #tpu.memory_space<vmem>>, vector<1x1x64xf32>
    %78 = vector.shape_cast %77 : vector<1x1x64xf32> to vector<1x64xf32>
    %c0_42 = arith.constant 0 : index
    %c0_43 = arith.constant 0 : index
    %c0_44 = arith.constant 0 : index
    %79 = vector.load %arg5[%c0_42, %c0_43, %c0_44] : memref<2x1x64xf32, #tpu.memory_space<vmem>>, vector<1x1x64xf32>
    %80 = vector.shape_cast %79 : vector<1x1x64xf32> to vector<1x64xf32>
    %cst_45 = arith.constant dense<0.000000e+00> : vector<32xf32>
    %81 = vector.multi_reduction <add>, %76, %cst_45 [1] : vector<32x64xf32> to vector<32xf32>
    %82 = vector.shape_cast %81 : vector<32xf32> to vector<32x1xf32>
    %cst_46 = arith.constant 6.400000e+01 : f32
    %83 = vector.broadcast %cst_46 : f32 to vector<32x1xf32>
    %84 = arith.divf %82, %83 : vector<32x1xf32>
    %85 = vector.broadcast %84 : vector<32x1xf32> to vector<32x64xf32>
    %86 = arith.subf %76, %85 : vector<32x64xf32>
    %87 = arith.mulf %86, %86 : vector<32x64xf32>
    %cst_47 = arith.constant dense<0.000000e+00> : vector<32xf32>
    %88 = vector.multi_reduction <add>, %87, %cst_47 [1] : vector<32x64xf32> to vector<32xf32>
    %89 = vector.shape_cast %88 : vector<32xf32> to vector<32x1xf32>
    %cst_48 = arith.constant 6.400000e+01 : f32
    %90 = vector.broadcast %cst_48 : f32 to vector<32x1xf32>
    %91 = arith.divf %89, %90 : vector<32x1xf32>
    %cst_49 = arith.constant 9.99999974E-6 : f32
    %92 = vector.broadcast %cst_49 : f32 to vector<32x1xf32>
    %93 = arith.addf %91, %92 : vector<32x1xf32>
    %94 = math.rsqrt %93 : vector<32x1xf32>
    %95 = vector.broadcast %94 : vector<32x1xf32> to vector<32x64xf32>
    %96 = arith.mulf %86, %95 : vector<32x64xf32>
    %97 = vector.broadcast %78 : vector<1x64xf32> to vector<32x64xf32>
    %98 = arith.mulf %96, %97 : vector<32x64xf32>
    %99 = vector.broadcast %80 : vector<1x64xf32> to vector<32x64xf32>
    %100 = arith.addf %98, %99 : vector<32x64xf32>
    %101 = arith.truncf %100 : vector<32x64xf32> to vector<32x64xbf16>
    %c0_50 = arith.constant 0 : index
    %c0_51 = arith.constant 0 : index
    %c0_52 = arith.constant 0 : index
    %102 = vector.load %arg6[%c0_50, %c0_51, %c0_52] : memref<2x64x64xbf16, #tpu.memory_space<vmem>>, vector<1x64x64xbf16>
    %103 = vector.shape_cast %102 : vector<1x64x64xbf16> to vector<64x64xbf16>
    %cst_53 = arith.constant dense<0.000000e+00> : vector<32x64xf32>
    %104 = tpu.matmul %101, %103, %cst_53 {dimension_numbers = #tpu.dot_dimension_numbers<[1], [0], [0], [1], [0, 0, 1, 1], [], []>} : vector<32x64xbf16>, vector<64x64xbf16>, vector<32x64xf32> -> vector<32x64xf32>
    %c0_54 = arith.constant 0 : index
    %c0_55 = arith.constant 0 : index
    %c0_56 = arith.constant 0 : index
    %105 = vector.load %arg7[%c0_54, %c0_55, %c0_56] : memref<2x64x64xbf16, #tpu.memory_space<vmem>>, vector<1x64x64xbf16>
    %106 = vector.shape_cast %105 : vector<1x64x64xbf16> to vector<64x64xbf16>
    %cst_57 = arith.constant dense<0.000000e+00> : vector<32x64xf32>
    %107 = tpu.matmul %101, %106, %cst_57 {dimension_numbers = #tpu.dot_dimension_numbers<[1], [0], [0], [1], [0, 0, 1, 1], [], []>} : vector<32x64xbf16>, vector<64x64xbf16>, vector<32x64xf32> -> vector<32x64xf32>
    %c0_58 = arith.constant 0 : index
    %c0_59 = arith.constant 0 : index
    %c0_60 = arith.constant 0 : index
    %108 = vector.load %arg8[%c0_58, %c0_59, %c0_60] : memref<2x64x64xbf16, #tpu.memory_space<vmem>>, vector<1x64x64xbf16>
    %109 = vector.shape_cast %108 : vector<1x64x64xbf16> to vector<64x64xbf16>
    %cst_61 = arith.constant dense<0.000000e+00> : vector<32x64xf32>
    %110 = tpu.matmul %101, %109, %cst_61 {dimension_numbers = #tpu.dot_dimension_numbers<[1], [0], [0], [1], [0, 0, 1, 1], [], []>} : vector<32x64xbf16>, vector<64x64xbf16>, vector<32x64xf32> -> vector<32x64xf32>
    %cst_62 = arith.constant 2.500000e-01 : f32
    %111 = vector.broadcast %cst_62 : f32 to vector<32x64xf32>
    %112 = arith.mulf %104, %111 : vector<32x64xf32>
    %113 = arith.truncf %112 : vector<32x64xf32> to vector<32x64xbf16>
    %114 = vector.shape_cast %113 : vector<32x64xbf16> to vector<2x16x64xbf16>
    %115 = arith.truncf %107 : vector<32x64xf32> to vector<32x64xbf16>
    %116 = vector.shape_cast %115 : vector<32x64xbf16> to vector<2x16x64xbf16>
    %117 = arith.truncf %110 : vector<32x64xf32> to vector<32x64xbf16>
    %118 = vector.shape_cast %117 : vector<32x64xbf16> to vector<2x16x64xbf16>
    %119 = vector.extract_strided_slice %114 {offsets = [0, 0, 0], sizes = [2, 16, 16], strides = [1, 1, 1]} : vector<2x16x64xbf16> to vector<2x16x16xbf16>
    %120 = vector.extract_strided_slice %116 {offsets = [0, 0, 0], sizes = [2, 16, 16], strides = [1, 1, 1]} : vector<2x16x64xbf16> to vector<2x16x16xbf16>
    %121 = vector.extract_strided_slice %118 {offsets = [0, 0, 0], sizes = [2, 16, 16], strides = [1, 1, 1]} : vector<2x16x64xbf16> to vector<2x16x16xbf16>
    %cst_63 = arith.constant dense<0.000000e+00> : vector<2x16x16xf32>
    %122 = tpu.matmul %119, %120, %cst_63 {dimension_numbers = #tpu.dot_dimension_numbers<[2], [2], [1], [1], [0, 0, 0, 1, 1, 1], [0], [0]>} : vector<2x16x16xbf16>, vector<2x16x16xbf16>, vector<2x16x16xf32> -> vector<2x16x16xf32>
    %cst_64 = arith.constant dense<0xFF800000> : vector<2x16xf32>
    %123 = vector.multi_reduction <maximumf>, %122, %cst_64 [2] : vector<2x16x16xf32> to vector<2x16xf32>
    %124 = vector.shape_cast %123 : vector<2x16xf32> to vector<2x16x1xf32>
    %125 = vector.broadcast %124 : vector<2x16x1xf32> to vector<2x16x16xf32>
    %126 = arith.subf %122, %125 : vector<2x16x16xf32>
    %127 = math.exp %126 : vector<2x16x16xf32>
    %cst_65 = arith.constant dense<0.000000e+00> : vector<2x16xf32>
    %128 = vector.multi_reduction <add>, %127, %cst_65 [2] : vector<2x16x16xf32> to vector<2x16xf32>
    %129 = vector.shape_cast %128 : vector<2x16xf32> to vector<2x16x1xf32>
    %130 = tpu.reciprocal %129 {approx = true} : vector<2x16x1xf32> -> vector<2x16x1xf32>
    %131 = vector.broadcast %130 : vector<2x16x1xf32> to vector<2x16x16xf32>
    %132 = arith.mulf %127, %131 : vector<2x16x16xf32>
    %133 = arith.truncf %132 : vector<2x16x16xf32> to vector<2x16x16xbf16>
    %cst_66 = arith.constant dense<0.000000e+00> : vector<2x16x16xf32>
    %134 = tpu.matmul %133, %121, %cst_66 {dimension_numbers = #tpu.dot_dimension_numbers<[2], [1], [1], [2], [0, 0, 0, 1, 1, 2], [0], [0]>} : vector<2x16x16xbf16>, vector<2x16x16xbf16>, vector<2x16x16xf32> -> vector<2x16x16xf32>
    %135 = vector.extract_strided_slice %114 {offsets = [0, 0, 16], sizes = [2, 16, 16], strides = [1, 1, 1]} : vector<2x16x64xbf16> to vector<2x16x16xbf16>
    %136 = vector.extract_strided_slice %116 {offsets = [0, 0, 16], sizes = [2, 16, 16], strides = [1, 1, 1]} : vector<2x16x64xbf16> to vector<2x16x16xbf16>
    %137 = vector.extract_strided_slice %118 {offsets = [0, 0, 16], sizes = [2, 16, 16], strides = [1, 1, 1]} : vector<2x16x64xbf16> to vector<2x16x16xbf16>
    %cst_67 = arith.constant dense<0.000000e+00> : vector<2x16x16xf32>
    %138 = tpu.matmul %135, %136, %cst_67 {dimension_numbers = #tpu.dot_dimension_numbers<[2], [2], [1], [1], [0, 0, 0, 1, 1, 1], [0], [0]>} : vector<2x16x16xbf16>, vector<2x16x16xbf16>, vector<2x16x16xf32> -> vector<2x16x16xf32>
    %cst_68 = arith.constant dense<0xFF800000> : vector<2x16xf32>
    %139 = vector.multi_reduction <maximumf>, %138, %cst_68 [2] : vector<2x16x16xf32> to vector<2x16xf32>
    %140 = vector.shape_cast %139 : vector<2x16xf32> to vector<2x16x1xf32>
    %141 = vector.broadcast %140 : vector<2x16x1xf32> to vector<2x16x16xf32>
    %142 = arith.subf %138, %141 : vector<2x16x16xf32>
    %143 = math.exp %142 : vector<2x16x16xf32>
    %cst_69 = arith.constant dense<0.000000e+00> : vector<2x16xf32>
    %144 = vector.multi_reduction <add>, %143, %cst_69 [2] : vector<2x16x16xf32> to vector<2x16xf32>
    %145 = vector.shape_cast %144 : vector<2x16xf32> to vector<2x16x1xf32>
    %146 = tpu.reciprocal %145 {approx = true} : vector<2x16x1xf32> -> vector<2x16x1xf32>
    %147 = vector.broadcast %146 : vector<2x16x1xf32> to vector<2x16x16xf32>
    %148 = arith.mulf %143, %147 : vector<2x16x16xf32>
    %149 = arith.truncf %148 : vector<2x16x16xf32> to vector<2x16x16xbf16>
    %cst_70 = arith.constant dense<0.000000e+00> : vector<2x16x16xf32>
    %150 = tpu.matmul %149, %137, %cst_70 {dimension_numbers = #tpu.dot_dimension_numbers<[2], [1], [1], [2], [0, 0, 0, 1, 1, 2], [0], [0]>} : vector<2x16x16xbf16>, vector<2x16x16xbf16>, vector<2x16x16xf32> -> vector<2x16x16xf32>
    %151 = vector.extract_strided_slice %114 {offsets = [0, 0, 32], sizes = [2, 16, 16], strides = [1, 1, 1]} : vector<2x16x64xbf16> to vector<2x16x16xbf16>
    %152 = vector.extract_strided_slice %116 {offsets = [0, 0, 32], sizes = [2, 16, 16], strides = [1, 1, 1]} : vector<2x16x64xbf16> to vector<2x16x16xbf16>
    %153 = vector.extract_strided_slice %118 {offsets = [0, 0, 32], sizes = [2, 16, 16], strides = [1, 1, 1]} : vector<2x16x64xbf16> to vector<2x16x16xbf16>
    %cst_71 = arith.constant dense<0.000000e+00> : vector<2x16x16xf32>
    %154 = tpu.matmul %151, %152, %cst_71 {dimension_numbers = #tpu.dot_dimension_numbers<[2], [2], [1], [1], [0, 0, 0, 1, 1, 1], [0], [0]>} : vector<2x16x16xbf16>, vector<2x16x16xbf16>, vector<2x16x16xf32> -> vector<2x16x16xf32>
    %cst_72 = arith.constant dense<0xFF800000> : vector<2x16xf32>
    %155 = vector.multi_reduction <maximumf>, %154, %cst_72 [2] : vector<2x16x16xf32> to vector<2x16xf32>
    %156 = vector.shape_cast %155 : vector<2x16xf32> to vector<2x16x1xf32>
    %157 = vector.broadcast %156 : vector<2x16x1xf32> to vector<2x16x16xf32>
    %158 = arith.subf %154, %157 : vector<2x16x16xf32>
    %159 = math.exp %158 : vector<2x16x16xf32>
    %cst_73 = arith.constant dense<0.000000e+00> : vector<2x16xf32>
    %160 = vector.multi_reduction <add>, %159, %cst_73 [2] : vector<2x16x16xf32> to vector<2x16xf32>
    %161 = vector.shape_cast %160 : vector<2x16xf32> to vector<2x16x1xf32>
    %162 = tpu.reciprocal %161 {approx = true} : vector<2x16x1xf32> -> vector<2x16x1xf32>
    %163 = vector.broadcast %162 : vector<2x16x1xf32> to vector<2x16x16xf32>
    %164 = arith.mulf %159, %163 : vector<2x16x16xf32>
    %165 = arith.truncf %164 : vector<2x16x16xf32> to vector<2x16x16xbf16>
    %cst_74 = arith.constant dense<0.000000e+00> : vector<2x16x16xf32>
    %166 = tpu.matmul %165, %153, %cst_74 {dimension_numbers = #tpu.dot_dimension_numbers<[2], [1], [1], [2], [0, 0, 0, 1, 1, 2], [0], [0]>} : vector<2x16x16xbf16>, vector<2x16x16xbf16>, vector<2x16x16xf32> -> vector<2x16x16xf32>
    %167 = vector.extract_strided_slice %114 {offsets = [0, 0, 48], sizes = [2, 16, 16], strides = [1, 1, 1]} : vector<2x16x64xbf16> to vector<2x16x16xbf16>
    %168 = vector.extract_strided_slice %116 {offsets = [0, 0, 48], sizes = [2, 16, 16], strides = [1, 1, 1]} : vector<2x16x64xbf16> to vector<2x16x16xbf16>
    %169 = vector.extract_strided_slice %118 {offsets = [0, 0, 48], sizes = [2, 16, 16], strides = [1, 1, 1]} : vector<2x16x64xbf16> to vector<2x16x16xbf16>
    %cst_75 = arith.constant dense<0.000000e+00> : vector<2x16x16xf32>
    %170 = tpu.matmul %167, %168, %cst_75 {dimension_numbers = #tpu.dot_dimension_numbers<[2], [2], [1], [1], [0, 0, 0, 1, 1, 1], [0], [0]>} : vector<2x16x16xbf16>, vector<2x16x16xbf16>, vector<2x16x16xf32> -> vector<2x16x16xf32>
    %cst_76 = arith.constant dense<0xFF800000> : vector<2x16xf32>
    %171 = vector.multi_reduction <maximumf>, %170, %cst_76 [2] : vector<2x16x16xf32> to vector<2x16xf32>
    %172 = vector.shape_cast %171 : vector<2x16xf32> to vector<2x16x1xf32>
    %173 = vector.broadcast %172 : vector<2x16x1xf32> to vector<2x16x16xf32>
    %174 = arith.subf %170, %173 : vector<2x16x16xf32>
    %175 = math.exp %174 : vector<2x16x16xf32>
    %cst_77 = arith.constant dense<0.000000e+00> : vector<2x16xf32>
    %176 = vector.multi_reduction <add>, %175, %cst_77 [2] : vector<2x16x16xf32> to vector<2x16xf32>
    %177 = vector.shape_cast %176 : vector<2x16xf32> to vector<2x16x1xf32>
    %178 = tpu.reciprocal %177 {approx = true} : vector<2x16x1xf32> -> vector<2x16x1xf32>
    %179 = vector.broadcast %178 : vector<2x16x1xf32> to vector<2x16x16xf32>
    %180 = arith.mulf %175, %179 : vector<2x16x16xf32>
    %181 = arith.truncf %180 : vector<2x16x16xf32> to vector<2x16x16xbf16>
    %cst_78 = arith.constant dense<0.000000e+00> : vector<2x16x16xf32>
    %182 = tpu.matmul %181, %169, %cst_78 {dimension_numbers = #tpu.dot_dimension_numbers<[2], [1], [1], [2], [0, 0, 0, 1, 1, 2], [0], [0]>} : vector<2x16x16xbf16>, vector<2x16x16xbf16>, vector<2x16x16xf32> -> vector<2x16x16xf32>
    %183 = tpu.concatenate %134, %150, %166, %182 in 2 : vector<2x16x16xf32>, vector<2x16x16xf32>, vector<2x16x16xf32>, vector<2x16x16xf32> -> vector<2x16x64xf32>
    %184 = vector.shape_cast %183 : vector<2x16x64xf32> to vector<32x64xf32>
    %185 = arith.truncf %184 : vector<32x64xf32> to vector<32x64xbf16>
    %c0_79 = arith.constant 0 : index
    %c0_80 = arith.constant 0 : index
    %c0_81 = arith.constant 0 : index
    %186 = vector.load %arg9[%c0_79, %c0_80, %c0_81] : memref<2x64x64xbf16, #tpu.memory_space<vmem>>, vector<1x64x64xbf16>
    %187 = vector.shape_cast %186 : vector<1x64x64xbf16> to vector<64x64xbf16>
    %cst_82 = arith.constant dense<0.000000e+00> : vector<32x64xf32>
    %188 = tpu.matmul %185, %187, %cst_82 {dimension_numbers = #tpu.dot_dimension_numbers<[1], [0], [0], [1], [0, 0, 1, 1], [], []>} : vector<32x64xbf16>, vector<64x64xbf16>, vector<32x64xf32> -> vector<32x64xf32>
    %c0_83 = arith.constant 0 : index
    %c0_84 = arith.constant 0 : index
    %c0_85 = arith.constant 0 : index
    %189 = vector.load %arg10[%c0_83, %c0_84, %c0_85] : memref<2x1x64xf32, #tpu.memory_space<vmem>>, vector<1x1x64xf32>
    %190 = vector.shape_cast %189 : vector<1x1x64xf32> to vector<1x64xf32>
    %191 = vector.broadcast %190 : vector<1x64xf32> to vector<32x64xf32>
    %192 = arith.addf %188, %191 : vector<32x64xf32>
    %193 = arith.addf %76, %192 : vector<32x64xf32>
    %c0_86 = arith.constant 0 : index
    %c0_87 = arith.constant 0 : index
    %c0_88 = arith.constant 0 : index
    %194 = vector.load %arg11[%c0_86, %c0_87, %c0_88] : memref<2x1x64xf32, #tpu.memory_space<vmem>>, vector<1x1x64xf32>
    %195 = vector.shape_cast %194 : vector<1x1x64xf32> to vector<1x64xf32>
    %c0_89 = arith.constant 0 : index
    %c0_90 = arith.constant 0 : index
    %c0_91 = arith.constant 0 : index
    %196 = vector.load %arg12[%c0_89, %c0_90, %c0_91] : memref<2x1x64xf32, #tpu.memory_space<vmem>>, vector<1x1x64xf32>
    %197 = vector.shape_cast %196 : vector<1x1x64xf32> to vector<1x64xf32>
    %cst_92 = arith.constant dense<0.000000e+00> : vector<32xf32>
    %198 = vector.multi_reduction <add>, %193, %cst_92 [1] : vector<32x64xf32> to vector<32xf32>
    %199 = vector.shape_cast %198 : vector<32xf32> to vector<32x1xf32>
    %cst_93 = arith.constant 6.400000e+01 : f32
    %200 = vector.broadcast %cst_93 : f32 to vector<32x1xf32>
    %201 = arith.divf %199, %200 : vector<32x1xf32>
    %202 = vector.broadcast %201 : vector<32x1xf32> to vector<32x64xf32>
    %203 = arith.subf %193, %202 : vector<32x64xf32>
    %204 = arith.mulf %203, %203 : vector<32x64xf32>
    %cst_94 = arith.constant dense<0.000000e+00> : vector<32xf32>
    %205 = vector.multi_reduction <add>, %204, %cst_94 [1] : vector<32x64xf32> to vector<32xf32>
    %206 = vector.shape_cast %205 : vector<32xf32> to vector<32x1xf32>
    %cst_95 = arith.constant 6.400000e+01 : f32
    %207 = vector.broadcast %cst_95 : f32 to vector<32x1xf32>
    %208 = arith.divf %206, %207 : vector<32x1xf32>
    %cst_96 = arith.constant 9.99999974E-6 : f32
    %209 = vector.broadcast %cst_96 : f32 to vector<32x1xf32>
    %210 = arith.addf %208, %209 : vector<32x1xf32>
    %211 = math.rsqrt %210 : vector<32x1xf32>
    %212 = vector.broadcast %211 : vector<32x1xf32> to vector<32x64xf32>
    %213 = arith.mulf %203, %212 : vector<32x64xf32>
    %214 = vector.broadcast %195 : vector<1x64xf32> to vector<32x64xf32>
    %215 = arith.mulf %213, %214 : vector<32x64xf32>
    %216 = vector.broadcast %197 : vector<1x64xf32> to vector<32x64xf32>
    %217 = arith.addf %215, %216 : vector<32x64xf32>
    %218 = arith.truncf %217 : vector<32x64xf32> to vector<32x64xbf16>
    %c0_97 = arith.constant 0 : index
    %c0_98 = arith.constant 0 : index
    %c0_99 = arith.constant 0 : index
    %219 = vector.load %arg13[%c0_97, %c0_98, %c0_99] : memref<2x64x128xbf16, #tpu.memory_space<vmem>>, vector<1x64x128xbf16>
    %220 = vector.shape_cast %219 : vector<1x64x128xbf16> to vector<64x128xbf16>
    %cst_100 = arith.constant dense<0.000000e+00> : vector<32x128xf32>
    %221 = tpu.matmul %218, %220, %cst_100 {dimension_numbers = #tpu.dot_dimension_numbers<[1], [0], [0], [1], [0, 0, 1, 1], [], []>} : vector<32x64xbf16>, vector<64x128xbf16>, vector<32x128xf32> -> vector<32x128xf32>
    %c0_101 = arith.constant 0 : index
    %c0_102 = arith.constant 0 : index
    %c0_103 = arith.constant 0 : index
    %222 = vector.load %arg14[%c0_101, %c0_102, %c0_103] : memref<2x1x128xf32, #tpu.memory_space<vmem>>, vector<1x1x128xf32>
    %223 = vector.shape_cast %222 : vector<1x1x128xf32> to vector<1x128xf32>
    %224 = vector.broadcast %223 : vector<1x128xf32> to vector<32x128xf32>
    %225 = arith.addf %221, %224 : vector<32x128xf32>
    %cst_104 = arith.constant 5.000000e-01 : f32
    %226 = vector.broadcast %cst_104 : f32 to vector<32x128xf32>
    %227 = arith.mulf %226, %225 : vector<32x128xf32>
    %cst_105 = arith.constant 4.471500e-02 : f32
    %228 = vector.broadcast %cst_105 : f32 to vector<32x128xf32>
    %229 = arith.mulf %228, %225 : vector<32x128xf32>
    %230 = arith.mulf %229, %225 : vector<32x128xf32>
    %231 = arith.mulf %230, %225 : vector<32x128xf32>
    %232 = arith.addf %225, %231 : vector<32x128xf32>
    %cst_106 = arith.constant 0.797884583 : f32
    %233 = vector.broadcast %cst_106 : f32 to vector<32x128xf32>
    %234 = arith.mulf %233, %232 : vector<32x128xf32>
    %235 = math.tanh %234 : vector<32x128xf32>
    %cst_107 = arith.constant 1.000000e+00 : f32
    %236 = vector.broadcast %cst_107 : f32 to vector<32x128xf32>
    %237 = arith.addf %236, %235 : vector<32x128xf32>
    %238 = arith.mulf %227, %237 : vector<32x128xf32>
    %239 = arith.truncf %238 : vector<32x128xf32> to vector<32x128xbf16>
    %c0_108 = arith.constant 0 : index
    %c0_109 = arith.constant 0 : index
    %c0_110 = arith.constant 0 : index
    %240 = vector.load %arg15[%c0_108, %c0_109, %c0_110] : memref<2x128x64xbf16, #tpu.memory_space<vmem>>, vector<1x128x64xbf16>
    %241 = vector.shape_cast %240 : vector<1x128x64xbf16> to vector<128x64xbf16>
    %cst_111 = arith.constant dense<0.000000e+00> : vector<32x64xf32>
    %242 = tpu.matmul %239, %241, %cst_111 {dimension_numbers = #tpu.dot_dimension_numbers<[1], [0], [0], [1], [0, 0, 1, 1], [], []>} : vector<32x128xbf16>, vector<128x64xbf16>, vector<32x64xf32> -> vector<32x64xf32>
    %c0_112 = arith.constant 0 : index
    %c0_113 = arith.constant 0 : index
    %c0_114 = arith.constant 0 : index
    %243 = vector.load %arg16[%c0_112, %c0_113, %c0_114] : memref<2x1x64xf32, #tpu.memory_space<vmem>>, vector<1x1x64xf32>
    %244 = vector.shape_cast %243 : vector<1x1x64xf32> to vector<1x64xf32>
    %245 = vector.broadcast %244 : vector<1x64xf32> to vector<32x64xf32>
    %246 = arith.addf %242, %245 : vector<32x64xf32>
    %247 = arith.addf %217, %246 : vector<32x64xf32>
    %c1 = arith.constant 1 : index
    %c0_115 = arith.constant 0 : index
    %c0_116 = arith.constant 0 : index
    %248 = vector.load %arg4[%c1, %c0_115, %c0_116] : memref<2x1x64xf32, #tpu.memory_space<vmem>>, vector<1x1x64xf32>
    %249 = vector.shape_cast %248 : vector<1x1x64xf32> to vector<1x64xf32>
    %c1_117 = arith.constant 1 : index
    %c0_118 = arith.constant 0 : index
    %c0_119 = arith.constant 0 : index
    %250 = vector.load %arg5[%c1_117, %c0_118, %c0_119] : memref<2x1x64xf32, #tpu.memory_space<vmem>>, vector<1x1x64xf32>
    %251 = vector.shape_cast %250 : vector<1x1x64xf32> to vector<1x64xf32>
    %cst_120 = arith.constant dense<0.000000e+00> : vector<32xf32>
    %252 = vector.multi_reduction <add>, %247, %cst_120 [1] : vector<32x64xf32> to vector<32xf32>
    %253 = vector.shape_cast %252 : vector<32xf32> to vector<32x1xf32>
    %cst_121 = arith.constant 6.400000e+01 : f32
    %254 = vector.broadcast %cst_121 : f32 to vector<32x1xf32>
    %255 = arith.divf %253, %254 : vector<32x1xf32>
    %256 = vector.broadcast %255 : vector<32x1xf32> to vector<32x64xf32>
    %257 = arith.subf %247, %256 : vector<32x64xf32>
    %258 = arith.mulf %257, %257 : vector<32x64xf32>
    %cst_122 = arith.constant dense<0.000000e+00> : vector<32xf32>
    %259 = vector.multi_reduction <add>, %258, %cst_122 [1] : vector<32x64xf32> to vector<32xf32>
    %260 = vector.shape_cast %259 : vector<32xf32> to vector<32x1xf32>
    %cst_123 = arith.constant 6.400000e+01 : f32
    %261 = vector.broadcast %cst_123 : f32 to vector<32x1xf32>
    %262 = arith.divf %260, %261 : vector<32x1xf32>
    %cst_124 = arith.constant 9.99999974E-6 : f32
    %263 = vector.broadcast %cst_124 : f32 to vector<32x1xf32>
    %264 = arith.addf %262, %263 : vector<32x1xf32>
    %265 = math.rsqrt %264 : vector<32x1xf32>
    %266 = vector.broadcast %265 : vector<32x1xf32> to vector<32x64xf32>
    %267 = arith.mulf %257, %266 : vector<32x64xf32>
    %268 = vector.broadcast %249 : vector<1x64xf32> to vector<32x64xf32>
    %269 = arith.mulf %267, %268 : vector<32x64xf32>
    %270 = vector.broadcast %251 : vector<1x64xf32> to vector<32x64xf32>
    %271 = arith.addf %269, %270 : vector<32x64xf32>
    %272 = arith.truncf %271 : vector<32x64xf32> to vector<32x64xbf16>
    %c1_125 = arith.constant 1 : index
    %c0_126 = arith.constant 0 : index
    %c0_127 = arith.constant 0 : index
    %273 = vector.load %arg6[%c1_125, %c0_126, %c0_127] : memref<2x64x64xbf16, #tpu.memory_space<vmem>>, vector<1x64x64xbf16>
    %274 = vector.shape_cast %273 : vector<1x64x64xbf16> to vector<64x64xbf16>
    %cst_128 = arith.constant dense<0.000000e+00> : vector<32x64xf32>
    %275 = tpu.matmul %272, %274, %cst_128 {dimension_numbers = #tpu.dot_dimension_numbers<[1], [0], [0], [1], [0, 0, 1, 1], [], []>} : vector<32x64xbf16>, vector<64x64xbf16>, vector<32x64xf32> -> vector<32x64xf32>
    %c1_129 = arith.constant 1 : index
    %c0_130 = arith.constant 0 : index
    %c0_131 = arith.constant 0 : index
    %276 = vector.load %arg7[%c1_129, %c0_130, %c0_131] : memref<2x64x64xbf16, #tpu.memory_space<vmem>>, vector<1x64x64xbf16>
    %277 = vector.shape_cast %276 : vector<1x64x64xbf16> to vector<64x64xbf16>
    %cst_132 = arith.constant dense<0.000000e+00> : vector<32x64xf32>
    %278 = tpu.matmul %272, %277, %cst_132 {dimension_numbers = #tpu.dot_dimension_numbers<[1], [0], [0], [1], [0, 0, 1, 1], [], []>} : vector<32x64xbf16>, vector<64x64xbf16>, vector<32x64xf32> -> vector<32x64xf32>
    %c1_133 = arith.constant 1 : index
    %c0_134 = arith.constant 0 : index
    %c0_135 = arith.constant 0 : index
    %279 = vector.load %arg8[%c1_133, %c0_134, %c0_135] : memref<2x64x64xbf16, #tpu.memory_space<vmem>>, vector<1x64x64xbf16>
    %280 = vector.shape_cast %279 : vector<1x64x64xbf16> to vector<64x64xbf16>
    %cst_136 = arith.constant dense<0.000000e+00> : vector<32x64xf32>
    %281 = tpu.matmul %272, %280, %cst_136 {dimension_numbers = #tpu.dot_dimension_numbers<[1], [0], [0], [1], [0, 0, 1, 1], [], []>} : vector<32x64xbf16>, vector<64x64xbf16>, vector<32x64xf32> -> vector<32x64xf32>
    %cst_137 = arith.constant 2.500000e-01 : f32
    %282 = vector.broadcast %cst_137 : f32 to vector<32x64xf32>
    %283 = arith.mulf %275, %282 : vector<32x64xf32>
    %284 = arith.truncf %283 : vector<32x64xf32> to vector<32x64xbf16>
    %285 = vector.shape_cast %284 : vector<32x64xbf16> to vector<2x16x64xbf16>
    %286 = arith.truncf %278 : vector<32x64xf32> to vector<32x64xbf16>
    %287 = vector.shape_cast %286 : vector<32x64xbf16> to vector<2x16x64xbf16>
    %288 = arith.truncf %281 : vector<32x64xf32> to vector<32x64xbf16>
    %289 = vector.shape_cast %288 : vector<32x64xbf16> to vector<2x16x64xbf16>
    %290 = vector.extract_strided_slice %285 {offsets = [0, 0, 0], sizes = [2, 16, 16], strides = [1, 1, 1]} : vector<2x16x64xbf16> to vector<2x16x16xbf16>
    %291 = vector.extract_strided_slice %287 {offsets = [0, 0, 0], sizes = [2, 16, 16], strides = [1, 1, 1]} : vector<2x16x64xbf16> to vector<2x16x16xbf16>
    %292 = vector.extract_strided_slice %289 {offsets = [0, 0, 0], sizes = [2, 16, 16], strides = [1, 1, 1]} : vector<2x16x64xbf16> to vector<2x16x16xbf16>
    %cst_138 = arith.constant dense<0.000000e+00> : vector<2x16x16xf32>
    %293 = tpu.matmul %290, %291, %cst_138 {dimension_numbers = #tpu.dot_dimension_numbers<[2], [2], [1], [1], [0, 0, 0, 1, 1, 1], [0], [0]>} : vector<2x16x16xbf16>, vector<2x16x16xbf16>, vector<2x16x16xf32> -> vector<2x16x16xf32>
    %cst_139 = arith.constant dense<0xFF800000> : vector<2x16xf32>
    %294 = vector.multi_reduction <maximumf>, %293, %cst_139 [2] : vector<2x16x16xf32> to vector<2x16xf32>
    %295 = vector.shape_cast %294 : vector<2x16xf32> to vector<2x16x1xf32>
    %296 = vector.broadcast %295 : vector<2x16x1xf32> to vector<2x16x16xf32>
    %297 = arith.subf %293, %296 : vector<2x16x16xf32>
    %298 = math.exp %297 : vector<2x16x16xf32>
    %cst_140 = arith.constant dense<0.000000e+00> : vector<2x16xf32>
    %299 = vector.multi_reduction <add>, %298, %cst_140 [2] : vector<2x16x16xf32> to vector<2x16xf32>
    %300 = vector.shape_cast %299 : vector<2x16xf32> to vector<2x16x1xf32>
    %301 = tpu.reciprocal %300 {approx = true} : vector<2x16x1xf32> -> vector<2x16x1xf32>
    %302 = vector.broadcast %301 : vector<2x16x1xf32> to vector<2x16x16xf32>
    %303 = arith.mulf %298, %302 : vector<2x16x16xf32>
    %304 = arith.truncf %303 : vector<2x16x16xf32> to vector<2x16x16xbf16>
    %cst_141 = arith.constant dense<0.000000e+00> : vector<2x16x16xf32>
    %305 = tpu.matmul %304, %292, %cst_141 {dimension_numbers = #tpu.dot_dimension_numbers<[2], [1], [1], [2], [0, 0, 0, 1, 1, 2], [0], [0]>} : vector<2x16x16xbf16>, vector<2x16x16xbf16>, vector<2x16x16xf32> -> vector<2x16x16xf32>
    %306 = vector.extract_strided_slice %285 {offsets = [0, 0, 16], sizes = [2, 16, 16], strides = [1, 1, 1]} : vector<2x16x64xbf16> to vector<2x16x16xbf16>
    %307 = vector.extract_strided_slice %287 {offsets = [0, 0, 16], sizes = [2, 16, 16], strides = [1, 1, 1]} : vector<2x16x64xbf16> to vector<2x16x16xbf16>
    %308 = vector.extract_strided_slice %289 {offsets = [0, 0, 16], sizes = [2, 16, 16], strides = [1, 1, 1]} : vector<2x16x64xbf16> to vector<2x16x16xbf16>
    %cst_142 = arith.constant dense<0.000000e+00> : vector<2x16x16xf32>
    %309 = tpu.matmul %306, %307, %cst_142 {dimension_numbers = #tpu.dot_dimension_numbers<[2], [2], [1], [1], [0, 0, 0, 1, 1, 1], [0], [0]>} : vector<2x16x16xbf16>, vector<2x16x16xbf16>, vector<2x16x16xf32> -> vector<2x16x16xf32>
    %cst_143 = arith.constant dense<0xFF800000> : vector<2x16xf32>
    %310 = vector.multi_reduction <maximumf>, %309, %cst_143 [2] : vector<2x16x16xf32> to vector<2x16xf32>
    %311 = vector.shape_cast %310 : vector<2x16xf32> to vector<2x16x1xf32>
    %312 = vector.broadcast %311 : vector<2x16x1xf32> to vector<2x16x16xf32>
    %313 = arith.subf %309, %312 : vector<2x16x16xf32>
    %314 = math.exp %313 : vector<2x16x16xf32>
    %cst_144 = arith.constant dense<0.000000e+00> : vector<2x16xf32>
    %315 = vector.multi_reduction <add>, %314, %cst_144 [2] : vector<2x16x16xf32> to vector<2x16xf32>
    %316 = vector.shape_cast %315 : vector<2x16xf32> to vector<2x16x1xf32>
    %317 = tpu.reciprocal %316 {approx = true} : vector<2x16x1xf32> -> vector<2x16x1xf32>
    %318 = vector.broadcast %317 : vector<2x16x1xf32> to vector<2x16x16xf32>
    %319 = arith.mulf %314, %318 : vector<2x16x16xf32>
    %320 = arith.truncf %319 : vector<2x16x16xf32> to vector<2x16x16xbf16>
    %cst_145 = arith.constant dense<0.000000e+00> : vector<2x16x16xf32>
    %321 = tpu.matmul %320, %308, %cst_145 {dimension_numbers = #tpu.dot_dimension_numbers<[2], [1], [1], [2], [0, 0, 0, 1, 1, 2], [0], [0]>} : vector<2x16x16xbf16>, vector<2x16x16xbf16>, vector<2x16x16xf32> -> vector<2x16x16xf32>
    %322 = vector.extract_strided_slice %285 {offsets = [0, 0, 32], sizes = [2, 16, 16], strides = [1, 1, 1]} : vector<2x16x64xbf16> to vector<2x16x16xbf16>
    %323 = vector.extract_strided_slice %287 {offsets = [0, 0, 32], sizes = [2, 16, 16], strides = [1, 1, 1]} : vector<2x16x64xbf16> to vector<2x16x16xbf16>
    %324 = vector.extract_strided_slice %289 {offsets = [0, 0, 32], sizes = [2, 16, 16], strides = [1, 1, 1]} : vector<2x16x64xbf16> to vector<2x16x16xbf16>
    %cst_146 = arith.constant dense<0.000000e+00> : vector<2x16x16xf32>
    %325 = tpu.matmul %322, %323, %cst_146 {dimension_numbers = #tpu.dot_dimension_numbers<[2], [2], [1], [1], [0, 0, 0, 1, 1, 1], [0], [0]>} : vector<2x16x16xbf16>, vector<2x16x16xbf16>, vector<2x16x16xf32> -> vector<2x16x16xf32>
    %cst_147 = arith.constant dense<0xFF800000> : vector<2x16xf32>
    %326 = vector.multi_reduction <maximumf>, %325, %cst_147 [2] : vector<2x16x16xf32> to vector<2x16xf32>
    %327 = vector.shape_cast %326 : vector<2x16xf32> to vector<2x16x1xf32>
    %328 = vector.broadcast %327 : vector<2x16x1xf32> to vector<2x16x16xf32>
    %329 = arith.subf %325, %328 : vector<2x16x16xf32>
    %330 = math.exp %329 : vector<2x16x16xf32>
    %cst_148 = arith.constant dense<0.000000e+00> : vector<2x16xf32>
    %331 = vector.multi_reduction <add>, %330, %cst_148 [2] : vector<2x16x16xf32> to vector<2x16xf32>
    %332 = vector.shape_cast %331 : vector<2x16xf32> to vector<2x16x1xf32>
    %333 = tpu.reciprocal %332 {approx = true} : vector<2x16x1xf32> -> vector<2x16x1xf32>
    %334 = vector.broadcast %333 : vector<2x16x1xf32> to vector<2x16x16xf32>
    %335 = arith.mulf %330, %334 : vector<2x16x16xf32>
    %336 = arith.truncf %335 : vector<2x16x16xf32> to vector<2x16x16xbf16>
    %cst_149 = arith.constant dense<0.000000e+00> : vector<2x16x16xf32>
    %337 = tpu.matmul %336, %324, %cst_149 {dimension_numbers = #tpu.dot_dimension_numbers<[2], [1], [1], [2], [0, 0, 0, 1, 1, 2], [0], [0]>} : vector<2x16x16xbf16>, vector<2x16x16xbf16>, vector<2x16x16xf32> -> vector<2x16x16xf32>
    %338 = vector.extract_strided_slice %285 {offsets = [0, 0, 48], sizes = [2, 16, 16], strides = [1, 1, 1]} : vector<2x16x64xbf16> to vector<2x16x16xbf16>
    %339 = vector.extract_strided_slice %287 {offsets = [0, 0, 48], sizes = [2, 16, 16], strides = [1, 1, 1]} : vector<2x16x64xbf16> to vector<2x16x16xbf16>
    %340 = vector.extract_strided_slice %289 {offsets = [0, 0, 48], sizes = [2, 16, 16], strides = [1, 1, 1]} : vector<2x16x64xbf16> to vector<2x16x16xbf16>
    %cst_150 = arith.constant dense<0.000000e+00> : vector<2x16x16xf32>
    %341 = tpu.matmul %338, %339, %cst_150 {dimension_numbers = #tpu.dot_dimension_numbers<[2], [2], [1], [1], [0, 0, 0, 1, 1, 1], [0], [0]>} : vector<2x16x16xbf16>, vector<2x16x16xbf16>, vector<2x16x16xf32> -> vector<2x16x16xf32>
    %cst_151 = arith.constant dense<0xFF800000> : vector<2x16xf32>
    %342 = vector.multi_reduction <maximumf>, %341, %cst_151 [2] : vector<2x16x16xf32> to vector<2x16xf32>
    %343 = vector.shape_cast %342 : vector<2x16xf32> to vector<2x16x1xf32>
    %344 = vector.broadcast %343 : vector<2x16x1xf32> to vector<2x16x16xf32>
    %345 = arith.subf %341, %344 : vector<2x16x16xf32>
    %346 = math.exp %345 : vector<2x16x16xf32>
    %cst_152 = arith.constant dense<0.000000e+00> : vector<2x16xf32>
    %347 = vector.multi_reduction <add>, %346, %cst_152 [2] : vector<2x16x16xf32> to vector<2x16xf32>
    %348 = vector.shape_cast %347 : vector<2x16xf32> to vector<2x16x1xf32>
    %349 = tpu.reciprocal %348 {approx = true} : vector<2x16x1xf32> -> vector<2x16x1xf32>
    %350 = vector.broadcast %349 : vector<2x16x1xf32> to vector<2x16x16xf32>
    %351 = arith.mulf %346, %350 : vector<2x16x16xf32>
    %352 = arith.truncf %351 : vector<2x16x16xf32> to vector<2x16x16xbf16>
    %cst_153 = arith.constant dense<0.000000e+00> : vector<2x16x16xf32>
    %353 = tpu.matmul %352, %340, %cst_153 {dimension_numbers = #tpu.dot_dimension_numbers<[2], [1], [1], [2], [0, 0, 0, 1, 1, 2], [0], [0]>} : vector<2x16x16xbf16>, vector<2x16x16xbf16>, vector<2x16x16xf32> -> vector<2x16x16xf32>
    %354 = tpu.concatenate %305, %321, %337, %353 in 2 : vector<2x16x16xf32>, vector<2x16x16xf32>, vector<2x16x16xf32>, vector<2x16x16xf32> -> vector<2x16x64xf32>
    %355 = vector.shape_cast %354 : vector<2x16x64xf32> to vector<32x64xf32>
    %356 = arith.truncf %355 : vector<32x64xf32> to vector<32x64xbf16>
    %c1_154 = arith.constant 1 : index
    %c0_155 = arith.constant 0 : index
    %c0_156 = arith.constant 0 : index
    %357 = vector.load %arg9[%c1_154, %c0_155, %c0_156] : memref<2x64x64xbf16, #tpu.memory_space<vmem>>, vector<1x64x64xbf16>
    %358 = vector.shape_cast %357 : vector<1x64x64xbf16> to vector<64x64xbf16>
    %cst_157 = arith.constant dense<0.000000e+00> : vector<32x64xf32>
    %359 = tpu.matmul %356, %358, %cst_157 {dimension_numbers = #tpu.dot_dimension_numbers<[1], [0], [0], [1], [0, 0, 1, 1], [], []>} : vector<32x64xbf16>, vector<64x64xbf16>, vector<32x64xf32> -> vector<32x64xf32>
    %c1_158 = arith.constant 1 : index
    %c0_159 = arith.constant 0 : index
    %c0_160 = arith.constant 0 : index
    %360 = vector.load %arg10[%c1_158, %c0_159, %c0_160] : memref<2x1x64xf32, #tpu.memory_space<vmem>>, vector<1x1x64xf32>
    %361 = vector.shape_cast %360 : vector<1x1x64xf32> to vector<1x64xf32>
    %362 = vector.broadcast %361 : vector<1x64xf32> to vector<32x64xf32>
    %363 = arith.addf %359, %362 : vector<32x64xf32>
    %364 = arith.addf %247, %363 : vector<32x64xf32>
    %c1_161 = arith.constant 1 : index
    %c0_162 = arith.constant 0 : index
    %c0_163 = arith.constant 0 : index
    %365 = vector.load %arg11[%c1_161, %c0_162, %c0_163] : memref<2x1x64xf32, #tpu.memory_space<vmem>>, vector<1x1x64xf32>
    %366 = vector.shape_cast %365 : vector<1x1x64xf32> to vector<1x64xf32>
    %c1_164 = arith.constant 1 : index
    %c0_165 = arith.constant 0 : index
    %c0_166 = arith.constant 0 : index
    %367 = vector.load %arg12[%c1_164, %c0_165, %c0_166] : memref<2x1x64xf32, #tpu.memory_space<vmem>>, vector<1x1x64xf32>
    %368 = vector.shape_cast %367 : vector<1x1x64xf32> to vector<1x64xf32>
    %cst_167 = arith.constant dense<0.000000e+00> : vector<32xf32>
    %369 = vector.multi_reduction <add>, %364, %cst_167 [1] : vector<32x64xf32> to vector<32xf32>
    %370 = vector.shape_cast %369 : vector<32xf32> to vector<32x1xf32>
    %cst_168 = arith.constant 6.400000e+01 : f32
    %371 = vector.broadcast %cst_168 : f32 to vector<32x1xf32>
    %372 = arith.divf %370, %371 : vector<32x1xf32>
    %373 = vector.broadcast %372 : vector<32x1xf32> to vector<32x64xf32>
    %374 = arith.subf %364, %373 : vector<32x64xf32>
    %375 = arith.mulf %374, %374 : vector<32x64xf32>
    %cst_169 = arith.constant dense<0.000000e+00> : vector<32xf32>
    %376 = vector.multi_reduction <add>, %375, %cst_169 [1] : vector<32x64xf32> to vector<32xf32>
    %377 = vector.shape_cast %376 : vector<32xf32> to vector<32x1xf32>
    %cst_170 = arith.constant 6.400000e+01 : f32
    %378 = vector.broadcast %cst_170 : f32 to vector<32x1xf32>
    %379 = arith.divf %377, %378 : vector<32x1xf32>
    %cst_171 = arith.constant 9.99999974E-6 : f32
    %380 = vector.broadcast %cst_171 : f32 to vector<32x1xf32>
    %381 = arith.addf %379, %380 : vector<32x1xf32>
    %382 = math.rsqrt %381 : vector<32x1xf32>
    %383 = vector.broadcast %382 : vector<32x1xf32> to vector<32x64xf32>
    %384 = arith.mulf %374, %383 : vector<32x64xf32>
    %385 = vector.broadcast %366 : vector<1x64xf32> to vector<32x64xf32>
    %386 = arith.mulf %384, %385 : vector<32x64xf32>
    %387 = vector.broadcast %368 : vector<1x64xf32> to vector<32x64xf32>
    %388 = arith.addf %386, %387 : vector<32x64xf32>
    %389 = arith.truncf %388 : vector<32x64xf32> to vector<32x64xbf16>
    %c1_172 = arith.constant 1 : index
    %c0_173 = arith.constant 0 : index
    %c0_174 = arith.constant 0 : index
    %390 = vector.load %arg13[%c1_172, %c0_173, %c0_174] : memref<2x64x128xbf16, #tpu.memory_space<vmem>>, vector<1x64x128xbf16>
    %391 = vector.shape_cast %390 : vector<1x64x128xbf16> to vector<64x128xbf16>
    %cst_175 = arith.constant dense<0.000000e+00> : vector<32x128xf32>
    %392 = tpu.matmul %389, %391, %cst_175 {dimension_numbers = #tpu.dot_dimension_numbers<[1], [0], [0], [1], [0, 0, 1, 1], [], []>} : vector<32x64xbf16>, vector<64x128xbf16>, vector<32x128xf32> -> vector<32x128xf32>
    %c1_176 = arith.constant 1 : index
    %c0_177 = arith.constant 0 : index
    %c0_178 = arith.constant 0 : index
    %393 = vector.load %arg14[%c1_176, %c0_177, %c0_178] : memref<2x1x128xf32, #tpu.memory_space<vmem>>, vector<1x1x128xf32>
    %394 = vector.shape_cast %393 : vector<1x1x128xf32> to vector<1x128xf32>
    %395 = vector.broadcast %394 : vector<1x128xf32> to vector<32x128xf32>
    %396 = arith.addf %392, %395 : vector<32x128xf32>
    %cst_179 = arith.constant 5.000000e-01 : f32
    %397 = vector.broadcast %cst_179 : f32 to vector<32x128xf32>
    %398 = arith.mulf %397, %396 : vector<32x128xf32>
    %cst_180 = arith.constant 4.471500e-02 : f32
    %399 = vector.broadcast %cst_180 : f32 to vector<32x128xf32>
    %400 = arith.mulf %399, %396 : vector<32x128xf32>
    %401 = arith.mulf %400, %396 : vector<32x128xf32>
    %402 = arith.mulf %401, %396 : vector<32x128xf32>
    %403 = arith.addf %396, %402 : vector<32x128xf32>
    %cst_181 = arith.constant 0.797884583 : f32
    %404 = vector.broadcast %cst_181 : f32 to vector<32x128xf32>
    %405 = arith.mulf %404, %403 : vector<32x128xf32>
    %406 = math.tanh %405 : vector<32x128xf32>
    %cst_182 = arith.constant 1.000000e+00 : f32
    %407 = vector.broadcast %cst_182 : f32 to vector<32x128xf32>
    %408 = arith.addf %407, %406 : vector<32x128xf32>
    %409 = arith.mulf %398, %408 : vector<32x128xf32>
    %410 = arith.truncf %409 : vector<32x128xf32> to vector<32x128xbf16>
    %c1_183 = arith.constant 1 : index
    %c0_184 = arith.constant 0 : index
    %c0_185 = arith.constant 0 : index
    %411 = vector.load %arg15[%c1_183, %c0_184, %c0_185] : memref<2x128x64xbf16, #tpu.memory_space<vmem>>, vector<1x128x64xbf16>
    %412 = vector.shape_cast %411 : vector<1x128x64xbf16> to vector<128x64xbf16>
    %cst_186 = arith.constant dense<0.000000e+00> : vector<32x64xf32>
    %413 = tpu.matmul %410, %412, %cst_186 {dimension_numbers = #tpu.dot_dimension_numbers<[1], [0], [0], [1], [0, 0, 1, 1], [], []>} : vector<32x128xbf16>, vector<128x64xbf16>, vector<32x64xf32> -> vector<32x64xf32>
    %c1_187 = arith.constant 1 : index
    %c0_188 = arith.constant 0 : index
    %c0_189 = arith.constant 0 : index
    %414 = vector.load %arg16[%c1_187, %c0_188, %c0_189] : memref<2x1x64xf32, #tpu.memory_space<vmem>>, vector<1x1x64xf32>
    %415 = vector.shape_cast %414 : vector<1x1x64xf32> to vector<1x64xf32>
    %416 = vector.broadcast %415 : vector<1x64xf32> to vector<32x64xf32>
    %417 = arith.addf %413, %416 : vector<32x64xf32>
    %418 = arith.addf %388, %417 : vector<32x64xf32>
    %c0_190 = arith.constant 0 : index
    %c0_191 = arith.constant 0 : index
    %419 = vector.load %arg17[%c0_190, %c0_191] : memref<1x64xf32, #tpu.memory_space<vmem>>, vector<1x64xf32>
    %c0_192 = arith.constant 0 : index
    %c0_193 = arith.constant 0 : index
    %420 = vector.load %arg18[%c0_192, %c0_193] : memref<1x64xf32, #tpu.memory_space<vmem>>, vector<1x64xf32>
    %cst_194 = arith.constant dense<0.000000e+00> : vector<32xf32>
    %421 = vector.multi_reduction <add>, %418, %cst_194 [1] : vector<32x64xf32> to vector<32xf32>
    %422 = vector.shape_cast %421 : vector<32xf32> to vector<32x1xf32>
    %cst_195 = arith.constant 6.400000e+01 : f32
    %423 = vector.broadcast %cst_195 : f32 to vector<32x1xf32>
    %424 = arith.divf %422, %423 : vector<32x1xf32>
    %425 = vector.broadcast %424 : vector<32x1xf32> to vector<32x64xf32>
    %426 = arith.subf %418, %425 : vector<32x64xf32>
    %427 = arith.mulf %426, %426 : vector<32x64xf32>
    %cst_196 = arith.constant dense<0.000000e+00> : vector<32xf32>
    %428 = vector.multi_reduction <add>, %427, %cst_196 [1] : vector<32x64xf32> to vector<32xf32>
    %429 = vector.shape_cast %428 : vector<32xf32> to vector<32x1xf32>
    %cst_197 = arith.constant 6.400000e+01 : f32
    %430 = vector.broadcast %cst_197 : f32 to vector<32x1xf32>
    %431 = arith.divf %429, %430 : vector<32x1xf32>
    %cst_198 = arith.constant 9.99999974E-6 : f32
    %432 = vector.broadcast %cst_198 : f32 to vector<32x1xf32>
    %433 = arith.addf %431, %432 : vector<32x1xf32>
    %434 = math.rsqrt %433 : vector<32x1xf32>
    %435 = vector.broadcast %434 : vector<32x1xf32> to vector<32x64xf32>
    %436 = arith.mulf %426, %435 : vector<32x64xf32>
    %437 = vector.broadcast %419 : vector<1x64xf32> to vector<32x64xf32>
    %438 = arith.mulf %436, %437 : vector<32x64xf32>
    %439 = vector.broadcast %420 : vector<1x64xf32> to vector<32x64xf32>
    %440 = arith.addf %438, %439 : vector<32x64xf32>
    %441 = vector.shape_cast %440 : vector<32x64xf32> to vector<2x16x64xf32>
    %c0_199 = arith.constant 0 : index
    %c0_200 = arith.constant 0 : index
    %442 = vector.load %arg19[%c0_199, %c0_200] : memref<1x64xf32, #tpu.memory_space<vmem>>, vector<1x64xf32>
    %443 = vector.shape_cast %442 : vector<1x64xf32> to vector<1x1x64xf32>
    %444 = vector.broadcast %443 : vector<1x1x64xf32> to vector<2x16x64xf32>
    %445 = arith.mulf %441, %444 : vector<2x16x64xf32>
    %cst_201 = arith.constant dense<0.000000e+00> : vector<2x16xf32>
    %446 = vector.multi_reduction <add>, %445, %cst_201 [2] : vector<2x16x64xf32> to vector<2x16xf32>
    %447 = vector.shape_cast %446 : vector<2x16xf32> to vector<2x16x1xf32>
    %c0_202 = arith.constant 0 : index
    %c0_203 = arith.constant 0 : index
    %448 = memref.load %arg20[%c0_202, %c0_203] : memref<1x1xf32, #tpu.memory_space<smem>>
    %449 = vector.broadcast %448 : f32 to vector<2x16x1xf32>
    %450 = arith.addf %447, %449 : vector<2x16x1xf32>
    %cst_204 = arith.constant dense<0xFF800000> : vector<2x1xf32>
    %451 = vector.multi_reduction <maximumf>, %450, %cst_204 [1] : vector<2x16x1xf32> to vector<2x1xf32>
    %452 = vector.shape_cast %451 : vector<2x1xf32> to vector<2x1x1xf32>
    %453 = vector.broadcast %452 : vector<2x1x1xf32> to vector<2x16x1xf32>
    %454 = arith.subf %450, %453 : vector<2x16x1xf32>
    %455 = math.exp %454 : vector<2x16x1xf32>
    %cst_205 = arith.constant dense<0.000000e+00> : vector<2x1xf32>
    %456 = vector.multi_reduction <add>, %455, %cst_205 [1] : vector<2x16x1xf32> to vector<2x1xf32>
    %457 = vector.shape_cast %456 : vector<2x1xf32> to vector<2x1x1xf32>
    %458 = tpu.reciprocal %457 {approx = true} : vector<2x1x1xf32> -> vector<2x1x1xf32>
    %459 = vector.broadcast %458 : vector<2x1x1xf32> to vector<2x16x1xf32>
    %460 = arith.mulf %455, %459 : vector<2x16x1xf32>
    %461 = vector.broadcast %460 : vector<2x16x1xf32> to vector<2x16x64xf32>
    %462 = arith.mulf %461, %441 : vector<2x16x64xf32>
    %cst_206 = arith.constant dense<0.000000e+00> : vector<2x64xf32>
    %463 = vector.multi_reduction <add>, %462, %cst_206 [1] : vector<2x16x64xf32> to vector<2x64xf32>
    %464 = arith.truncf %463 : vector<2x64xf32> to vector<2x64xbf16>
    %c0_207 = arith.constant 0 : index
    %c0_208 = arith.constant 0 : index
    %465 = vector.load %arg21[%c0_207, %c0_208] : memref<64x128xbf16, #tpu.memory_space<vmem>>, vector<64x128xbf16>
    %cst_209 = arith.constant dense<0.000000e+00> : vector<2x128xf32>
    %466 = tpu.matmul %464, %465, %cst_209 {dimension_numbers = #tpu.dot_dimension_numbers<[1], [0], [0], [1], [0, 0, 1, 1], [], []>} : vector<2x64xbf16>, vector<64x128xbf16>, vector<2x128xf32> -> vector<2x128xf32>
    %c0_210 = arith.constant 0 : index
    %c0_211 = arith.constant 0 : index
    %467 = vector.load %arg22[%c0_210, %c0_211] : memref<1x128xf32, #tpu.memory_space<vmem>>, vector<1x128xf32>
    %468 = vector.broadcast %467 : vector<1x128xf32> to vector<2x128xf32>
    %469 = arith.addf %466, %468 : vector<2x128xf32>
    %470 = vector.shape_cast %469 : vector<2x128xf32> to vector<2x1x128xf32>
    %c0_212 = arith.constant 0 : index
    %c0_213 = arith.constant 0 : index
    %c0_214 = arith.constant 0 : index
    %471 = vector.load %arg23[%c0_212, %c0_213, %c0_214] : memref<2x1x128xf32, #tpu.memory_space<vmem>>, vector<2x1x128xf32>
    tpu.vector_store %arg23[%c0_212, %c0_213, %c0_214], %470 {strides = array<i32>} : memref<2x1x128xf32, #tpu.memory_space<vmem>>, vector<2x1x128xf32>,
    return
  }
  func.func @transform_0(%arg0: i32) -> (i32, i32, i32) {
    %c0_i32 = arith.constant 0 : i32
    %c0_i32_0 = arith.constant 0 : i32
    %c0_i32_1 = arith.constant 0 : i32
    return %arg0, %c0_i32, %c0_i32_0 : i32, i32, i32
  }
  func.func @transform_1(%arg0: i32) -> (i32, i32) {
    %c0_i32 = arith.constant 0 : i32
    %c0_i32_0 = arith.constant 0 : i32
    %c0_i32_1 = arith.constant 0 : i32
    return %c0_i32, %c0_i32_0 : i32, i32
  }
  func.func @transform_2(%arg0: i32) -> (i32, i32) {
    %c0_i32 = arith.constant 0 : i32
    %c0_i32_0 = arith.constant 0 : i32
    %c0_i32_1 = arith.constant 0 : i32
    return %c0_i32, %c0_i32_0 : i32, i32
  }
  func.func @transform_3(%arg0: i32) -> (i32, i32, i32) {
    %c0_i32 = arith.constant 0 : i32
    %c0_i32_0 = arith.constant 0 : i32
    %c0_i32_1 = arith.constant 0 : i32
    %c0_i32_2 = arith.constant 0 : i32
    return %c0_i32, %c0_i32_0, %c0_i32_1 : i32, i32, i32
  }
  func.func @transform_4(%arg0: i32) -> (i32, i32, i32) {
    %c0_i32 = arith.constant 0 : i32
    %c0_i32_0 = arith.constant 0 : i32
    %c0_i32_1 = arith.constant 0 : i32
    %c0_i32_2 = arith.constant 0 : i32
    return %c0_i32, %c0_i32_0, %c0_i32_1 : i32, i32, i32
  }
  func.func @transform_5(%arg0: i32) -> (i32, i32, i32) {
    %c0_i32 = arith.constant 0 : i32
    %c0_i32_0 = arith.constant 0 : i32
    %c0_i32_1 = arith.constant 0 : i32
    %c0_i32_2 = arith.constant 0 : i32
    return %c0_i32, %c0_i32_0, %c0_i32_1 : i32, i32, i32
  }
  func.func @transform_6(%arg0: i32) -> (i32, i32, i32) {
    %c0_i32 = arith.constant 0 : i32
    %c0_i32_0 = arith.constant 0 : i32
    %c0_i32_1 = arith.constant 0 : i32
    %c0_i32_2 = arith.constant 0 : i32
    return %c0_i32, %c0_i32_0, %c0_i32_1 : i32, i32, i32
  }
  func.func @transform_7(%arg0: i32) -> (i32, i32, i32) {
    %c0_i32 = arith.constant 0 : i32
    %c0_i32_0 = arith.constant 0 : i32
    %c0_i32_1 = arith.constant 0 : i32
    %c0_i32_2 = arith.constant 0 : i32
    return %c0_i32, %c0_i32_0, %c0_i32_1 : i32, i32, i32
  }
  func.func @transform_8(%arg0: i32) -> (i32, i32, i32) {
    %c0_i32 = arith.constant 0 : i32
    %c0_i32_0 = arith.constant 0 : i32
    %c0_i32_1 = arith.constant 0 : i32
    %c0_i32_2 = arith.constant 0 : i32
    return %c0_i32, %c0_i32_0, %c0_i32_1 : i32, i32, i32
  }
  func.func @transform_9(%arg0: i32) -> (i32, i32, i32) {
    %c0_i32 = arith.constant 0 : i32
    %c0_i32_0 = arith.constant 0 : i32
    %c0_i32_1 = arith.constant 0 : i32
    %c0_i32_2 = arith.constant 0 : i32
    return %c0_i32, %c0_i32_0, %c0_i32_1 : i32, i32, i32
  }
  func.func @transform_10(%arg0: i32) -> (i32, i32, i32) {
    %c0_i32 = arith.constant 0 : i32
    %c0_i32_0 = arith.constant 0 : i32
    %c0_i32_1 = arith.constant 0 : i32
    %c0_i32_2 = arith.constant 0 : i32
    return %c0_i32, %c0_i32_0, %c0_i32_1 : i32, i32, i32
  }
  func.func @transform_11(%arg0: i32) -> (i32, i32, i32) {
    %c0_i32 = arith.constant 0 : i32
    %c0_i32_0 = arith.constant 0 : i32
    %c0_i32_1 = arith.constant 0 : i32
    %c0_i32_2 = arith.constant 0 : i32
    return %c0_i32, %c0_i32_0, %c0_i32_1 : i32, i32, i32
  }
  func.func @transform_12(%arg0: i32) -> (i32, i32, i32) {
    %c0_i32 = arith.constant 0 : i32
    %c0_i32_0 = arith.constant 0 : i32
    %c0_i32_1 = arith.constant 0 : i32
    %c0_i32_2 = arith.constant 0 : i32
    return %c0_i32, %c0_i32_0, %c0_i32_1 : i32, i32, i32
  }
  func.func @transform_13(%arg0: i32) -> (i32, i32, i32) {
    %c0_i32 = arith.constant 0 : i32
    %c0_i32_0 = arith.constant 0 : i32
    %c0_i32_1 = arith.constant 0 : i32
    %c0_i32_2 = arith.constant 0 : i32
    return %c0_i32, %c0_i32_0, %c0_i32_1 : i32, i32, i32
  }
  func.func @transform_14(%arg0: i32) -> (i32, i32, i32) {
    %c0_i32 = arith.constant 0 : i32
    %c0_i32_0 = arith.constant 0 : i32
    %c0_i32_1 = arith.constant 0 : i32
    %c0_i32_2 = arith.constant 0 : i32
    return %c0_i32, %c0_i32_0, %c0_i32_1 : i32, i32, i32
  }
  func.func @transform_15(%arg0: i32) -> (i32, i32, i32) {
    %c0_i32 = arith.constant 0 : i32
    %c0_i32_0 = arith.constant 0 : i32
    %c0_i32_1 = arith.constant 0 : i32
    %c0_i32_2 = arith.constant 0 : i32
    return %c0_i32, %c0_i32_0, %c0_i32_1 : i32, i32, i32
  }
  func.func @transform_16(%arg0: i32) -> (i32, i32) {
    %c0_i32 = arith.constant 0 : i32
    %c0_i32_0 = arith.constant 0 : i32
    %c0_i32_1 = arith.constant 0 : i32
    return %c0_i32, %c0_i32_0 : i32, i32
  }
  func.func @transform_17(%arg0: i32) -> (i32, i32) {
    %c0_i32 = arith.constant 0 : i32
    %c0_i32_0 = arith.constant 0 : i32
    %c0_i32_1 = arith.constant 0 : i32
    return %c0_i32, %c0_i32_0 : i32, i32
  }
  func.func @transform_18(%arg0: i32) -> (i32, i32) {
    %c0_i32 = arith.constant 0 : i32
    %c0_i32_0 = arith.constant 0 : i32
    %c0_i32_1 = arith.constant 0 : i32
    return %c0_i32, %c0_i32_0 : i32, i32
  }
  func.func @transform_19(%arg0: i32) -> (i32, i32) {
    %c0_i32 = arith.constant 0 : i32
    %c0_i32_0 = arith.constant 0 : i32
    %c0_i32_1 = arith.constant 0 : i32
    return %c0_i32, %c0_i32_0 : i32, i32
  }
  func.func @transform_20(%arg0: i32) -> (i32, i32) {
    %c0_i32 = arith.constant 0 : i32
    %c0_i32_0 = arith.constant 0 : i32
    %c0_i32_1 = arith.constant 0 : i32
    return %c0_i32, %c0_i32_0 : i32, i32
  }
  func.func @transform_21(%arg0: i32) -> (i32, i32) {
    %c0_i32 = arith.constant 0 : i32
    %c0_i32_0 = arith.constant 0 : i32
    %c0_i32_1 = arith.constant 0 : i32
    return %c0_i32, %c0_i32_0 : i32, i32
  }
  func.func @transform_22(%arg0: i32) -> (i32, i32, i32) {
    %c0_i32 = arith.constant 0 : i32
    %c0_i32_0 = arith.constant 0 : i32
    %c0_i32_1 = arith.constant 0 : i32
    return %arg0, %c0_i32, %c0_i32_0 : i32, i32, i32
  }
}

</mosaic_0001>

<bundles_post_ra>
// kernel: cct_forward.1
= control target key start
LH: loop header
LB: loop body
LE: loop exit
PB: predicated region body
PF: predicated region fallthrough
CT: control target
= control target key end

     0   :  { %s5971_s0 = inlined_call_operand.vmem [shape: bf16[2,64,32], index: 0, kind: input, shape index: {}]   ;;  %s5972_s1 = inlined_call_operand.vmem [shape: bf16[32,64], index: 1, kind: input, shape index: {}]   ;;  %s5973_s2 = inlined_call_operand.vmem [shape: f32[16,64], index: 2, kind: input, shape index: {}]   ;;  %s5974_s3 = inlined_call_operand.vmem [shape: f32[2,1,64], index: 3, kind: input, shape index: {}]   ;;  %s5975_s4 = inlined_call_operand.vmem [shape: f32[2,1,64], index: 4, kind: input, shape index: {}]   ;;  %s5976_s5 = inlined_call_operand.vmem [shape: bf16[2,64,64], index: 5, kind: input, shape index: {}]   ;;  %s5977_s6 = inlined_call_operand.vmem [shape: bf16[2,64,64], index: 6, kind: input, shape index: {}]   ;;  %s5978_s7 = inlined_call_operand.vmem [shape: bf16[2,64,64], index: 7, kind: input, shape index: {}]   ;;  %s5979_s8 = inlined_call_operand.vmem [shape: bf16[2,64,64], index: 8, kind: input, shape index: {}]   ;;  %s5980_s9 = inlined_call_operand.vmem [shape: f32[2,1,64], index: 9, kind: input, shape index: {}]   ;;  %s5981_s10 = inlined_call_operand.vmem [shape: f32[2,1,64], index: 10, kind: input, shape index: {}]   ;;  %s5982_s11 = inlined_call_operand.vmem [shape: f32[2,1,64], index: 11, kind: input, shape index: {}]   ;;  %s5983_s12 = inlined_call_operand.vmem [shape: bf16[2,64,128], index: 12, kind: input, shape index: {}]   ;;  %s5984_s13 = inlined_call_operand.vmem [shape: f32[2,1,128], index: 13, kind: input, shape index: {}]   ;;  %s5985_s14 = inlined_call_operand.vmem [shape: bf16[2,128,64], index: 14, kind: input, shape index: {}]   ;;  %s5986_s15 = inlined_call_operand.vmem [shape: f32[2,1,64], index: 15, kind: input, shape index: {}]   ;;  %s5987_s16 = inlined_call_operand.vmem [shape: f32[1,64], index: 16, kind: input, shape index: {}]   ;;  %s5988_s17 = inlined_call_operand.vmem [shape: f32[1,64], index: 17, kind: input, shape index: {}]   ;;  %s5989_s18 = inlined_call_operand.vmem [shape: f32[1,64], index: 18, kind: input, shape index: {}]   ;;  %s5990_s19 = inlined_call_operand.<no memory space> [shape: f32[1,1], index: 19, kind: input, shape index: {}]   ;;  %s5991_s20 = inlined_call_operand.vmem [shape: bf16[64,128], index: 20, kind: input, shape index: {}]   ;;  %s5992_s21 = inlined_call_operand.vmem [shape: f32[1,128], index: 21, kind: input, shape index: {}]   ;;  %s5993_s22 = inlined_call_operand.hbm [shape: f32[2,1,128], index: 22, kind: output, shape index: {}]  }
   0x1   :  { %6011 = sst [smem:[#allocation6_spill]] %s5971_s0 }
   0x2   :  { %6012 = sst [smem:[#allocation7_spill]] %s5972_s1 }
   0x3   :  { %6013 = sst [smem:[#allocation8_spill]] %s5973_s2 }
   0x4   :  { %6014 = sst [smem:[#allocation9_spill]] %s5974_s3 }
   0x5   :  { %6015 = sst [smem:[#allocation10_spill]] %s5975_s4 }
   0x6   :  { %6016 = sst [smem:[#allocation11_spill]] %s5976_s5 }
   0x7   :  { %6017 = sst [smem:[#allocation12_spill]] %s5977_s6 }
   0x8   :  { %s6018_s29 = sld [smem:[#allocation7_spill]]  ;;  %vm146_vm0 = vcmask 261120  }
   0x9   :  { %s6019_s1 = sld [smem:[#allocation6_spill]] }
   0xe   :  { %v4179_v0 = vld [vmem:[%s6018_s29 + $0x8] sm:$0xff]  ;;  %v4178_v1 = vld [vmem:[%s6018_s29] sm:$0xff] }
   0xf   :  { %177 = vmatpush.bf16.msra.mxu0 %v4179_v0  ;;  %4240 = vmatpush.bf16.msra.mxu1 %v4179_v0  ;;  %v4170_v2 = vld [vmem:[%s6019_s1] sm:$0xff] }
  0x13   :  { %178 = vmatpush.bf16.msra.mxu0 %v4178_v1  ;;  %4241 = vmatpush.bf16.msra.mxu1 %v4178_v1 }
  0x14   :  { %28 = vsyncpa [#allocation4], 0  ;;  %v4171_v3 = vld [vmem:[%s6019_s1 + $0x8] sm:$0xff]  ;;  %v4172_v4 = vld [vmem:[%s6019_s1 + $0x10] sm:$0xff]  ;;  %vm236_vm1 = vcmask 517120   ;;  %vm272_vm2 = vcmask 519169  }
  0x15   :  { %v4173_v5 = vld [vmem:[%s6019_s1 + $0x18] sm:$0xff]  ;;  %v4174_v6 = vld [vmem:[%s6019_s1 + $0x20] sm:$0xff]  ;;  %v4175_v8 = vld [vmem:[%s6019_s1 + $0x28] sm:$0xff]  ;;  %vm307_vm3 = vcmask 521219   ;;  %vm342_vm4 = vcmask 523269   ;;  %vm265_vm5 = vcmask 523264  }
  0x16   :  { %3806 = vmatmul.msk.bf16.vlgmr.msra.gmra.mxu0 %vm146_vm0, %v4170_v2  ;;  %v4177_v7 = vld [vmem:[%s6019_s1 + $0x38] sm:$0xff]  ;;  %v4176_v9 = vld [vmem:[%s6019_s1 + $0x30] sm:$0xff]  ;;  %vm809_vm6 = vcmask 1040384   ;;  %vm812_vm7 = vcmask 1041408   ;;  %vm815_vm8 = vcmask 1042432   ;;  %vm818_vm9 = vcmask 1043456  }
  0x17   :  { %3813 = vmatmul.msk.bf16.vlgmr.msra.gmra.mxu1 %vm146_vm0, %v4177_v7  ;;  %vm821_vm10 = vcmask 1044480   ;;  %vm824_vm11 = vcmask 1045504   ;;  %vm827_vm12 = vcmask 1046528   ;;  %s6020_s24 = sld [smem:[#allocation8_spill]]  ;;  %s4554_s30 = smov 112  }
  0x18   :  { %s6021_s27 = sld [smem:[#allocation11_spill]]  ;;  %s6005_s4 = smov 96  }
  0x19   :  { %s6022_s29 = sld [smem:[#allocation12_spill]]  ;;  %s6003_s0 = smov 80  }
  0x1a   :  { %s6023_s26 = sld [smem:[#allocation9_spill]]  ;;  %s6001_s23 = smov 16  }
  0x1b   :  { %s6024_s28 = sld [smem:[#allocation10_spill]]  ;;  %s6009_s1 = smov 32  }
  0x1c   :  { %s6007_s5 = smov 48   ;;  %s4561_s25 = smov 1  }
  0x26   :  { %3807 = vmatmul.msk.bf16.gmra.mxu0 %vm146_vm0, %v4171_v3 }
  0x36   :  { %3808 = vmatmul.msk.bf16.gmra.mxu0 %vm146_vm0, %v4172_v4 }
  0x46   :  { %3809 = vmatmul.msk.bf16.gmra.mxu0 %vm146_vm0, %v4173_v5 }
  0x56   :  { %3810 = vmatmul.msk.bf16.gmra.mxu0 %vm146_vm0, %v4174_v6 }
  0x66   :  { %3811 = vmatmul.msk.bf16.gmra.mxu0 %vm146_vm0, %v4175_v8 }
  0x76   :  { %3812 = vmatmul.msk.bf16.gmra.mxu0 %vm146_vm0, %v4176_v9 }
  0x93   :  { %v180_v10 = vpop.f32.mrf.mxu0 }
  0x94   :  { %v220_v11 = vmax.f32 %v180_v10, 0.0 }
  0x96   :  { %v237_v12 = vsel %vm236_vm1, %v220_v11, -inf  ;;  %v273_v13 = vsel %vm272_vm2, %v220_v11, -inf  ;;  %v308_v14 = vsel %vm307_vm3, %v220_v11, -inf  ;;  %v343_v15 = vsel %vm342_vm4, %v220_v11, -inf }
  0x97   :  { %v238_v16 = vrot.slane %v237_v12, 4  ;;  %v274_v17 = vrot.slane %v273_v13, 4  ;;  %v309_v18 = vrot.slane %v308_v14, 4  ;;  %v344_v19 = vrot.slane %v343_v15, 4 }
  0x99   :  { %v239_v20 = vmax.f32 %v237_v12, %v238_v16  ;;  %v275_v21 = vmax.f32 %v273_v13, %v274_v17  ;;  %v310_v22 = vmax.f32 %v308_v14, %v309_v18  ;;  %v345_v23 = vmax.f32 %v343_v15, %v344_v19 }
  0x9b   :  { %v240_v24 = vrot.slane %v239_v20, 2  ;;  %v276_v25 = vrot.slane %v275_v21, 2  ;;  %v311_v26 = vrot.slane %v310_v22, 2  ;;  %v346_v27 = vrot.slane %v345_v23, 2  ;;  %v182_v28 = vpop.f32.mrf.mxu0 }
  0x9c   :  { %v221_v29 = vmax.f32 %v182_v28, 0.0 }
  0x9d   :  { %v241_v30 = vmax.f32 %v239_v20, %v240_v24  ;;  %v277_v31 = vmax.f32 %v275_v21, %v276_v25  ;;  %v312_v32 = vmax.f32 %v310_v22, %v311_v26  ;;  %v347_v33 = vmax.f32 %v345_v23, %v346_v27 }
  0x9e   :  { %v244_v34 = vsel %vm236_vm1, %v221_v29, -inf  ;;  %v280_v35 = vsel %vm272_vm2, %v221_v29, -inf  ;;  %v315_v36 = vsel %vm307_vm3, %v221_v29, -inf  ;;  %v350_v37 = vsel %vm342_vm4, %v221_v29, -inf }
  0x9f   :  { %v242_v38 = vrot.slane %v241_v30, 1  ;;  %v278_v39 = vrot.slane %v277_v31, 1  ;;  %v313_v40 = vrot.slane %v312_v32, 1  ;;  %v348_v41 = vrot.slane %v347_v33, 1 }
  0xa0   :  { %v245_v42 = vrot.slane %v244_v34, 4  ;;  %v281_v43 = vrot.slane %v280_v35, 4  ;;  %v316_v44 = vrot.slane %v315_v36, 4  ;;  %v351_v45 = vrot.slane %v350_v37, 4 }
  0xa1   :  { %v243_v46 = vmax.f32 %v241_v30, %v242_v38  ;;  %v279_v47 = vmax.f32 %v277_v31, %v278_v39  ;;  %v314_v48 = vmax.f32 %v312_v32, %v313_v40  ;;  %v349_v53 = vmax.f32 %v347_v33, %v348_v41 }
  0xa2   :  { %v246_v49 = vmax.f32 %v244_v34, %v245_v42  ;;  %v282_v50 = vmax.f32 %v280_v35, %v281_v43  ;;  %v317_v51 = vmax.f32 %v315_v36, %v316_v44  ;;  %v352_v52 = vmax.f32 %v350_v37, %v351_v45 }
  0xa3   :  { %v185_v54 = vpop.f32.mrf.mxu0  ;;  %v4724_v59 = vsel %vm265_vm5, %v243_v46, -inf  ;;  %v4727_v60 = vsel %vm265_vm5, %v279_v47, -inf  ;;  %v4730_v61 = vsel %vm265_vm5, %v314_v48, -inf  ;;  %v4737_v18 = vsel %vm265_vm5, %v349_v53, -inf }
  0xa4   :  { %v247_v55 = vrot.slane %v246_v49, 2  ;;  %v283_v56 = vrot.slane %v282_v50, 2  ;;  %v318_v57 = vrot.slane %v317_v51, 2  ;;  %v353_v58 = vrot.slane %v352_v52, 2 }
  0xa5   :  { %v222_v62 = vmax.f32 %v185_v54, 0.0 }
  0xa6   :  { %v248_v63 = vmax.f32 %v246_v49, %v247_v55  ;;  %v284_v0 = vmax.f32 %v282_v50, %v283_v56  ;;  %v319_v1 = vmax.f32 %v317_v51, %v318_v57  ;;  %v354_v2 = vmax.f32 %v352_v52, %v353_v58 }
  0xa7   :  { %v377_v3 = vsel %vm236_vm1, %v222_v62, -inf  ;;  %v413_v4 = vsel %vm272_vm2, %v222_v62, -inf  ;;  %v449_v5 = vsel %vm307_vm3, %v222_v62, -inf  ;;  %v485_v6 = vsel %vm342_vm4, %v222_v62, -inf }
  0xa8   :  { %v249_v7 = vrot.slane %v248_v63, 1  ;;  %v285_v8 = vrot.slane %v284_v0, 1  ;;  %v320_v9 = vrot.slane %v319_v1, 1  ;;  %v355_v10 = vrot.slane %v354_v2, 1 }
  0xa9   :  { %v378_v11 = vrot.slane %v377_v3, 4  ;;  %v414_v12 = vrot.slane %v413_v4, 4  ;;  %v450_v13 = vrot.slane %v449_v5, 4  ;;  %v486_v14 = vrot.slane %v485_v6, 4 }
  0xaa   :  { %v250_v15 = vmax.f32 %v248_v63, %v249_v7  ;;  %v286_v16 = vmax.f32 %v284_v0, %v285_v8  ;;  %v321_v17 = vmax.f32 %v319_v1, %v320_v9  ;;  %v4745_v27 = vmax.f32 %v354_v2, %v355_v10 }
  0xab   :  { %v379_v19 = vmax.f32 %v377_v3, %v378_v11  ;;  %v415_v20 = vmax.f32 %v413_v4, %v414_v12  ;;  %v451_v21 = vmax.f32 %v449_v5, %v450_v13  ;;  %v487_v22 = vmax.f32 %v485_v6, %v486_v14  ;;  %v187_v23 = vpop.f32.mrf.mxu0 }
  0xac   :  { %v4740_v24 = vsel %vm265_vm5, %v250_v15, -inf  ;;  %v4743_v25 = vsel %vm265_vm5, %v286_v16, -inf  ;;  %v223_v26 = vmax.f32 %v187_v23, 0.0  ;;  %v4750_v31 = vsel %vm265_vm5, %v321_v17, -inf }
  0xad   :  { %v268_v28 = vmax.f32 %v4724_v59, %v4740_v24  ;;  %v380_v29 = vrot.slane %v379_v19, 2  ;;  %v416_v30 = vrot.slane %v415_v20, 2  ;;  %v452_v32 = vrot.slane %v451_v21, 2 }
  0xae   :  { %v488_v33 = vrot.slane %v487_v22, 2  ;;  %v384_v34 = vsel %vm236_vm1, %v223_v26, -inf  ;;  %v420_v35 = vsel %vm272_vm2, %v223_v26, -inf  ;;  %v456_v42 = vsel %vm307_vm3, %v223_v26, -inf }
  0xaf   :  { %v381_v36 = vmax.f32 %v379_v19, %v380_v29  ;;  %v417_v37 = vmax.f32 %v415_v20, %v416_v30  ;;  %v385_v38 = vrot.slane %v384_v34, 4  ;;  %v421_v39 = vrot.slane %v420_v35, 4 }
  0xb0   :  { %v453_v40 = vmax.f32 %v451_v21, %v452_v32  ;;  %v4754_v41 = vmax.f32 %v487_v22, %v488_v33  ;;  %v492_v43 = vsel %vm342_vm4, %v223_v26, -inf  ;;  %v303_v48 = vmax.f32 %v4727_v60, %v4743_v25 }
  0xb1   :  { %v382_v44 = vrot.slane %v381_v36, 1  ;;  %v418_v45 = vrot.slane %v417_v37, 1  ;;  %v386_v46 = vmax.f32 %v384_v34, %v385_v38  ;;  %v422_v47 = vmax.f32 %v420_v35, %v421_v39 }
  0xb2   :  { %v454_v49 = vrot.slane %v453_v40, 1  ;;  %v457_v50 = vrot.slane %v456_v42, 4  ;;  %v493_v51 = vrot.slane %v492_v43, 4  ;;  %v490_v53 = vrot.slane %v4754_v41, 1 }
  0xb3   :  { %v383_v52 = vmax.f32 %v381_v36, %v382_v44  ;;  %v387_v54 = vrot.slane %v386_v46, 2  ;;  %v423_v55 = vrot.slane %v422_v47, 2  ;;  %v190_v56 = vpop.f32.mrf.mxu0  ;;  %v4761_v57 = vmax.f32 %v417_v37, %v418_v45 }
  0xb4   :  { %v458_v58 = vmax.f32 %v456_v42, %v457_v50  ;;  %v494_v62 = vmax.f32 %v492_v43, %v493_v51  ;;  %v224_v63 = vmax.f32 %v190_v56, 0.0  ;;  %v4764_v1 = vmax.f32 %v453_v40, %v454_v49 }
  0xb5   :  { %v405_v0 = vsel %vm265_vm5, %v383_v52, -inf  ;;  %v388_v2 = vmax.f32 %v386_v46, %v387_v54  ;;  %v424_v3 = vmax.f32 %v422_v47, %v423_v55  ;;  %v338_v26 = vmax.f32 %v4730_v61, %v4750_v31 }
  0xb6   :  { %v459_v4 = vrot.slane %v458_v58, 2  ;;  %v495_v5 = vrot.slane %v494_v62, 2  ;;  %v521_v6 = vsel %vm236_vm1, %v224_v63, -inf  ;;  %v557_v7 = vsel %vm272_vm2, %v224_v63, -inf }
  0xb7   :  { %v389_v8 = vrot.slane %v388_v2, 1  ;;  %v425_v9 = vrot.slane %v424_v3, 1  ;;  %v522_v10 = vrot.slane %v521_v6, 4  ;;  %v558_v11 = vrot.slane %v557_v7, 4 }
  0xb8   :  { %v460_v12 = vmax.f32 %v458_v58, %v459_v4  ;;  %v4768_v13 = vmax.f32 %v494_v62, %v495_v5  ;;  %v593_v14 = vsel %vm307_vm3, %v224_v63, -inf  ;;  %v629_v15 = vsel %vm342_vm4, %v224_v63, -inf }
  0xb9   :  { %v390_v16 = vmax.f32 %v388_v2, %v389_v8  ;;  %v426_v17 = vmax.f32 %v424_v3, %v425_v9  ;;  %v523_v19 = vmax.f32 %v521_v6, %v522_v10  ;;  %v559_v20 = vmax.f32 %v557_v7, %v558_v11 }
  0xba   :  { %v461_v21 = vrot.slane %v460_v12, 1  ;;  %v594_v22 = vrot.slane %v593_v14, 4  ;;  %v630_v23 = vrot.slane %v629_v15, 4  ;;  %v497_v30 = vrot.slane %v4768_v13, 1 }
  0xbb   :  { %v4775_v29 = vsel %vm265_vm5, %v390_v16, -inf  ;;  %v524_v32 = vrot.slane %v523_v19, 2  ;;  %v560_v33 = vrot.slane %v559_v20, 2  ;;  %v192_v34 = vpop.f32.mrf.mxu0  ;;  %v4781_v36 = vsel %vm265_vm5, %v426_v17, -inf }
  0xbc   :  { %v407_v35 = vmax.f32 %v4740_v24, %v4775_v29  ;;  %v595_v37 = vmax.f32 %v593_v14, %v594_v22  ;;  %v631_v38 = vmax.f32 %v629_v15, %v630_v23  ;;  %v225_v42 = vmax.f32 %v192_v34, 0.0 }
  0xbd   :  { %v525_v39 = vmax.f32 %v523_v19, %v524_v32  ;;  %v561_v40 = vmax.f32 %v559_v20, %v560_v33  ;;  %v4785_v43 = vsel %vm265_vm5, %v4745_v27, -inf  ;;  %v4787_v44 = vmax.f32 %v460_v12, %v461_v21 }
  0xbe   :  { %v596_v45 = vrot.slane %v595_v37, 2  ;;  %v632_v46 = vrot.slane %v631_v38, 2  ;;  %v373_v47 = vmax.f32 %v4737_v18, %v4785_v43  ;;  %v528_v51 = vsel %vm236_vm1, %v225_v42, -inf }
  0xbf   :  { %v526_v49 = vrot.slane %v525_v39, 1  ;;  %v562_v50 = vrot.slane %v561_v40, 1  ;;  %v564_v52 = vsel %vm272_vm2, %v225_v42, -inf  ;;  %v529_v56 = vrot.slane %v528_v51, 4 }
  0xc0   :  { %v597_v54 = vmax.f32 %v595_v37, %v596_v45  ;;  %v633_v55 = vmax.f32 %v631_v38, %v632_v46  ;;  %v565_v58 = vrot.slane %v564_v52, 4  ;;  %v600_v63 = vsel %vm307_vm3, %v225_v42, -inf }
  0xc1   :  { %v527_v62 = vmax.f32 %v525_v39, %v526_v49  ;;  %v563_v27 = vmax.f32 %v561_v40, %v562_v50  ;;  %v636_v2 = vsel %vm342_vm4, %v225_v42, -inf  ;;  %v530_v5 = vmax.f32 %v528_v51, %v529_v56 }
  0xc2   :  { %v598_v3 = vrot.slane %v597_v54, 1  ;;  %v634_v4 = vrot.slane %v633_v55, 1  ;;  %v566_v6 = vmax.f32 %v564_v52, %v565_v58  ;;  %v601_v8 = vrot.slane %v600_v63, 4 }
  0xc3   :  { %v549_v7 = vsel %vm265_vm5, %v527_v62, -inf  ;;  %v637_v9 = vrot.slane %v636_v2, 4  ;;  %v195_v10 = vpop.f32.mrf.mxu0  ;;  %v4796_v11 = vmax.f32 %v407_v35, %v405_v0  ;;  %v585_v12 = vsel %vm265_vm5, %v563_v27, -inf }
  0xc4   :  { %v599_v14 = vmax.f32 %v597_v54, %v598_v3  ;;  %v531_v15 = vrot.slane %v530_v5, 2  ;;  %v567_v16 = vrot.slane %v566_v6, 2  ;;  %v635_v17 = vmax.f32 %v633_v55, %v634_v4 }
  0xc5   :  { %v602_v19 = vmax.f32 %v600_v63, %v601_v8  ;;  %v638_v20 = vmax.f32 %v636_v2, %v637_v9  ;;  %v226_v21 = vmax.f32 %v195_v10, 0.0  ;;  %v441_v33 = vsel %vm265_vm5, %v4761_v57, -inf }
  0xc6   :  { %v4800_v22 = vsel %vm265_vm5, %v599_v14, -inf  ;;  %v532_v23 = vmax.f32 %v530_v5, %v531_v15  ;;  %v568_v32 = vmax.f32 %v566_v6, %v567_v16  ;;  %v4815_v5 = vsel %vm265_vm5, %v635_v17, -inf }
  0xc7   :  { %v603_v34 = vrot.slane %v602_v19, 2  ;;  %v639_v0 = vrot.slane %v638_v20, 2  ;;  %v665_v35 = vsel %vm236_vm1, %v226_v21, -inf  ;;  %v701_v37 = vsel %vm272_vm2, %v226_v21, -inf }
  0xc8   :  { %v533_v38 = vrot.slane %v532_v23, 1  ;;  %v569_v39 = vrot.slane %v568_v32, 1  ;;  %v666_v40 = vrot.slane %v665_v35, 4  ;;  %v702_v42 = vrot.slane %v701_v37, 4 }
  0xc9   :  { %v604_v45 = vmax.f32 %v602_v19, %v603_v34  ;;  %v640_v46 = vmax.f32 %v638_v20, %v639_v0  ;;  %v737_v49 = vsel %vm307_vm3, %v226_v21, -inf  ;;  %v773_v50 = vsel %vm342_vm4, %v226_v21, -inf }
  0xca   :  { %v534_v51 = vmax.f32 %v532_v23, %v533_v38  ;;  %v570_v52 = vmax.f32 %v568_v32, %v569_v39  ;;  %v667_v54 = vmax.f32 %v665_v35, %v666_v40  ;;  %v703_v57 = vmax.f32 %v701_v37, %v702_v42 }
  0xcb   :  { %v605_v55 = vrot.slane %v604_v45, 1  ;;  %v641_v56 = vrot.slane %v640_v46, 1  ;;  %v738_v58 = vrot.slane %v737_v49, 4  ;;  %v774_v62 = vrot.slane %v773_v50, 4  ;;  %v197_v27 = vpop.f32.mrf.mxu0 }
  0xcc   :  { %v4809_v63 = vsel %vm265_vm5, %v534_v51, -inf  ;;  %v4812_v2 = vsel %vm265_vm5, %v570_v52, -inf  ;;  %v668_v3 = vrot.slane %v667_v54, 2  ;;  %v704_v4 = vrot.slane %v703_v57, 2 }
  0xcd   :  { %v551_v6 = vmax.f32 %v4775_v29, %v4809_v63  ;;  %v587_v8 = vmax.f32 %v4781_v36, %v4812_v2  ;;  %v606_v9 = vmax.f32 %v604_v45, %v605_v55  ;;  %v739_v15 = vmax.f32 %v737_v49, %v738_v58 }
  0xce   :  { %v669_v10 = vmax.f32 %v667_v54, %v668_v3  ;;  %v705_v14 = vmax.f32 %v703_v57, %v704_v4  ;;  %v775_v16 = vmax.f32 %v773_v50, %v774_v62  ;;  %v642_v21 = vmax.f32 %v640_v46, %v641_v56 }
  0xcf   :  { %v4821_v19 = vmax.f32 %v551_v6, %v549_v7  ;;  %v4823_v20 = vmax.f32 %v587_v8, %v585_v12  ;;  %v443_v17 = vmax.f32 %v4743_v25, %v4781_v36  ;;  %v740_v34 = vrot.slane %v739_v15, 2 }
  0xd0   :  { %v670_v23 = vrot.slane %v669_v10, 1  ;;  %v706_v32 = vrot.slane %v705_v14, 1  ;;  %v776_v29 = vrot.slane %v775_v16, 2  ;;  %v477_v0 = vsel %vm265_vm5, %v4764_v1, -inf }
  0xd1   :  { %v4831_v35 = vsel %vm265_vm5, %v4787_v44, -inf  ;;  %v491_v7 = vmax.f32 %v4754_v41, %v490_v53  ;;  %v498_v12 = vmax.f32 %v4768_v13, %v497_v30  ;;  %v741_v38 = vmax.f32 %v739_v15, %v740_v34 }
  0xd2   :  { %v671_v36 = vmax.f32 %v669_v10, %v670_v23  ;;  %v707_v37 = vmax.f32 %v705_v14, %v706_v32  ;;  %v4839_v39 = vmax.f32 %v775_v16, %v776_v29  ;;  %v444_v40 = vmax.f32 %v443_v17, %v441_v33 }
  0xd3   :  { %v479_v1 = vmax.f32 %v4750_v31, %v4831_v35  ;;  %v4844_v44 = vsel %vm265_vm5, %v498_v12, -inf  ;;  %v742_v53 = vrot.slane %v741_v38, 1  ;;  %v513_v13 = vsel %vm265_vm5, %v491_v7, -inf  ;;  %v200_v46 = vpop.f32.mrf.mxu0  ;;  %v4879_v31 = vld [vmem:[%s6020_s24] sm:$0xff] }
  0xd4   :  { %v4847_v42 = vsel %vm265_vm5, %v671_v36, -inf  ;;  %v4850_v41 = vsel %vm265_vm5, %v707_v37, -inf  ;;  %v778_v30 = vrot.slane %v4839_v39, 1  ;;  %v515_v33 = vmax.f32 %v4785_v43, %v4844_v44 }
  0xd5   :  { %v810_v45 = vsel %vm809_vm6, %v268_v28, %v303_v48  ;;  %v480_v49 = vmax.f32 %v479_v1, %v477_v0  ;;  %v4867_v51 = vmax.f32 %v741_v38, %v742_v53  ;;  %v227_v24 = vmax.f32 %v197_v27, 0.0 }
  0xd6   :  { %v813_v50 = vsel %vm812_vm7, %v810_v45, %v338_v26  ;;  %v228_v25 = vmax.f32 %v200_v46, 0.0  ;;  %v516_v61 = vmax.f32 %v515_v33, %v513_v13  ;;  %v4882_v18 = vsel %vm265_vm5, %v606_v9, -inf }
  0xd7   :  { %v816_v60 = vsel %vm815_vm8, %v813_v50, %v373_v47  ;;  %v4885_v48 = vsel %vm265_vm5, %v642_v21, -inf  ;;  %v672_v43 = vsel %vm236_vm1, %v227_v24, -inf  ;;  %v708_v47 = vsel %vm272_vm2, %v227_v24, -inf }
  0xd8   :  { %v819_v59 = vsel %vm818_vm9, %v816_v60, %v4796_v11  ;;  %v744_v11 = vsel %vm307_vm3, %v227_v24, -inf  ;;  %v673_v54 = vrot.slane %v672_v43, 4  ;;  %v709_v57 = vrot.slane %v708_v47, 4 }
  0xd9   :  { %v822_v28 = vsel %vm821_vm10, %v819_v59, %v444_v40  ;;  %v745_v55 = vrot.slane %v744_v11, 4  ;;  %v780_v58 = vsel %vm342_vm4, %v227_v24, -inf  ;;  %v251_v62 = vsel %vm236_vm1, %v228_v25, -inf }
  0xda   :  { %v825_v26 = vsel %vm824_vm11, %v822_v28, %v480_v49  ;;  %v287_v27 = vsel %vm272_vm2, %v228_v25, -inf  ;;  %v674_v3 = vmax.f32 %v672_v43, %v673_v54  ;;  %v710_v4 = vmax.f32 %v708_v47, %v709_v57 }
  0xdb   :  { %v828_v52 = vsel %vm827_vm12, %v825_v26, %v516_v61  ;;  %v746_v6 = vmax.f32 %v744_v11, %v745_v55  ;;  %v781_v8 = vrot.slane %v780_v58, 4  ;;  %v252_v10 = vrot.slane %v251_v62, 4  ;;  %v202_v32 = vpop.f32.mrf.mxu0 }
  0xdc   :  { %v4893_v56 = vadd.f32 %v4879_v31, %v828_v52  ;;  %v288_v14 = vrot.slane %v287_v27, 4  ;;  %v322_v15 = vsel %vm307_vm3, %v228_v25, -inf  ;;  %v675_v16 = vrot.slane %v674_v3, 2 }
  0xdd   :  { %v711_v21 = vrot.slane %v710_v4, 2  ;;  %v747_v17 = vrot.slane %v746_v6, 2  ;;  %v782_v23 = vmax.f32 %v780_v58, %v781_v8  ;;  %v253_v34 = vmax.f32 %v251_v62, %v252_v10 }
  0xde   :  { %v852_v9 = vsel %vm265_vm5, %v4893_v56, 0.0  ;;  %v289_v29 = vmax.f32 %v287_v27, %v288_v14  ;;  %v323_v0 = vrot.slane %v322_v15, 4  ;;  %v357_v7 = vsel %vm342_vm4, %v228_v25, -inf }
  0xdf   :  { %853 = vadd.xlane.f32.xlu0 %v852_v9  ;;  %v676_v12 = vmax.f32 %v674_v3, %v675_v16  ;;  %v712_v36 = vmax.f32 %v710_v4, %v711_v21  ;;  %v748_v37 = vmax.f32 %v746_v6, %v747_v17  ;;  %v783_v38 = vrot.slane %v782_v23, 2 }
  0xe0   :  { %v254_v40 = vrot.slane %v253_v34, 2  ;;  %v290_v1 = vrot.slane %v289_v29, 2  ;;  %v324_v53 = vmax.f32 %v322_v15, %v323_v0  ;;  %v358_v13 = vrot.slane %v357_v7, 4 }
  0xe1   :  { %v677_v33 = vrot.slane %v676_v12, 1  ;;  %v713_v45 = vrot.slane %v712_v36, 1  ;;  %v749_v46 = vrot.slane %v748_v37, 1  ;;  %v784_v49 = vmax.f32 %v782_v23, %v783_v38 }
  0xe2   :  { %v255_v50 = vmax.f32 %v253_v34, %v254_v40  ;;  %v291_v60 = vmax.f32 %v289_v29, %v290_v1  ;;  %v325_v59 = vrot.slane %v324_v53, 2  ;;  %v359_v24 = vmax.f32 %v357_v7, %v358_v13 }
  0xe3   :  { %v678_v61 = vmax.f32 %v676_v12, %v677_v33  ;;  %v714_v28 = vmax.f32 %v712_v36, %v713_v45  ;;  %v4902_v26 = vmax.f32 %v748_v37, %v749_v46  ;;  %v785_v25 = vrot.slane %v784_v49, 1  ;;  %v205_v14 = vpop.f32.mrf.mxu0 }
  0xe4   :  { %v256_v43 = vrot.slane %v255_v50, 1  ;;  %v292_v47 = vrot.slane %v291_v60, 1  ;;  %v326_v11 = vmax.f32 %v324_v53, %v325_v59  ;;  %v360_v52 = vrot.slane %v359_v24, 2 }
  0xe5   :  { %v4905_v54 = vsel %vm265_vm5, %v678_v61, -inf  ;;  %v4908_v57 = vsel %vm265_vm5, %v714_v28, -inf  ;;  %v4910_v55 = vmax.f32 %v784_v49, %v785_v25  ;;  %v229_v58 = vmax.f32 %v202_v32, 0.0 }
  0xe6   :  { %v695_v62 = vmax.f32 %v4809_v63, %v4905_v54  ;;  %v257_v27 = vmax.f32 %v255_v50, %v256_v43  ;;  %v293_v3 = vmax.f32 %v291_v60, %v292_v47  ;;  %v327_v4 = vrot.slane %v326_v11, 1 }
  0xe7   :  { %v361_v6 = vmax.f32 %v359_v24, %v360_v52  ;;  %v258_v8 = vsel %vm236_vm1, %v229_v58, -inf  ;;  %v294_v9 = vsel %vm272_vm2, %v229_v58, -inf  ;;  %v329_v10 = vsel %vm307_vm3, %v229_v58, -inf }
  0xe8   :  { %v4918_v15 = vsel %vm265_vm5, %v257_v27, -inf  ;;  %v4921_v16 = vsel %vm265_vm5, %v293_v3, -inf  ;;  %v328_v21 = vmax.f32 %v326_v11, %v327_v4  ;;  %v259_v17 = vrot.slane %v258_v8, 4 }
  0xe9   :  { %v362_v23 = vrot.slane %v361_v6, 1  ;;  %v295_v32 = vrot.slane %v294_v9, 4  ;;  %v330_v34 = vrot.slane %v329_v10, 4  ;;  %v364_v29 = vsel %vm342_vm4, %v229_v58, -inf }
  0xea   :  { %v4925_v0 = vsel %vm265_vm5, %v328_v21, -inf  ;;  %v260_v7 = vmax.f32 %v258_v8, %v259_v17  ;;  %v365_v12 = vrot.slane %v364_v29, 4  ;;  %v230_v36 = vmax.f32 %v205_v14, 0.0 }
  0xeb   :  { %v4927_v37 = vmax.f32 %v361_v6, %v362_v23  ;;  %v296_v38 = vmax.f32 %v294_v9, %v295_v32  ;;  %v331_v40 = vmax.f32 %v329_v10, %v330_v34  ;;  %v623_v1 = vmax.f32 %v4831_v35, %v4882_v18  ;;  %v207_v9 = vpop.f32.mrf.mxu0 }
  0xec   :  { %v261_v53 = vrot.slane %v260_v7, 2  ;;  %v366_v13 = vmax.f32 %v364_v29, %v365_v12  ;;  %v391_v33 = vsel %vm236_vm1, %v230_v36, -inf  ;;  %v427_v45 = vsel %vm272_vm2, %v230_v36, -inf }
  0xed   :  { %v297_v46 = vrot.slane %v296_v38, 2  ;;  %v332_v49 = vrot.slane %v331_v40, 2  ;;  %v392_v50 = vrot.slane %v391_v33, 4  ;;  %v428_v60 = vrot.slane %v427_v45, 4 }
  0xee   :  { %v262_v59 = vmax.f32 %v260_v7, %v261_v53  ;;  %v367_v24 = vrot.slane %v366_v13, 2  ;;  %v463_v61 = vsel %vm307_vm3, %v230_v36, -inf  ;;  %v499_v28 = vsel %vm342_vm4, %v230_v36, -inf }
  0xef   :  { %v298_v25 = vmax.f32 %v296_v38, %v297_v46  ;;  %v333_v43 = vmax.f32 %v331_v40, %v332_v49  ;;  %v393_v47 = vmax.f32 %v391_v33, %v392_v50  ;;  %v429_v35 = vmax.f32 %v427_v45, %v428_v60 }
  0xf0   :  { %v263_v11 = vrot.slane %v262_v59, 1  ;;  %v368_v52 = vmax.f32 %v366_v13, %v367_v24  ;;  %v464_v58 = vrot.slane %v463_v61, 4  ;;  %v500_v27 = vrot.slane %v499_v28, 4 }
  0xf1   :  { %v299_v3 = vrot.slane %v298_v25, 1  ;;  %v334_v4 = vrot.slane %v333_v43, 1  ;;  %v394_v6 = vrot.slane %v393_v47, 2  ;;  %v430_v8 = vrot.slane %v429_v35, 2 }
  0xf2   :  { %v264_v10 = vmax.f32 %v262_v59, %v263_v11  ;;  %v369_v14 = vrot.slane %v368_v52, 1  ;;  %v465_v21 = vmax.f32 %v463_v61, %v464_v58  ;;  %v501_v17 = vmax.f32 %v499_v28, %v500_v27 }
  0xf3   :  { %v300_v23 = vmax.f32 %v298_v25, %v299_v3  ;;  %v4935_v32 = vmax.f32 %v333_v43, %v334_v4  ;;  %v395_v34 = vmax.f32 %v393_v47, %v394_v6  ;;  %v431_v29 = vmax.f32 %v429_v35, %v430_v8  ;;  %v210_v35 = vpop.f32.mrf.mxu0  ;;  %v4997_v6 = vld [vmem:[%s6020_s24 + $0x8] sm:$0xff]  ;;  %s6028_s24 = smov 32  }
  0xf4   :  { %v4938_v7 = vsel %vm265_vm5, %v264_v10, -inf  ;;  %v4940_v12 = vmax.f32 %v368_v52, %v369_v14  ;;  %v466_v36 = vrot.slane %v465_v21, 2  ;;  %v502_v38 = vrot.slane %v501_v17, 2 }
  0xf5   :  { %v271_v40 = vmax.f32 %v4918_v15, %v4938_v7  ;;  %v4945_v53 = vsel %vm265_vm5, %v300_v23, -inf  ;;  %v396_v13 = vrot.slane %v395_v34, 1  ;;  %v432_v33 = vrot.slane %v431_v29, 1 }
  0xf6   :  { %v306_v45 = vmax.f32 %v4921_v16, %v4945_v53  ;;  %v467_v46 = vmax.f32 %v465_v21, %v466_v36  ;;  %v4949_v49 = vmax.f32 %v501_v17, %v502_v38  ;;  %v624_v50 = vmax.f32 %v623_v1, %v4800_v22 }
  0xf7   :  { %v397_v60 = vmax.f32 %v395_v34, %v396_v13  ;;  %v4952_v59 = vmax.f32 %v431_v29, %v432_v33  ;;  %v659_v24 = vmax.f32 %v4844_v44, %v4885_v48  ;;  %v696_v61 = vmax.f32 %v695_v62, %v4847_v42 }
  0xf8   :  { %v468_v28 = vrot.slane %v467_v46, 1  ;;  %v504_v25 = vrot.slane %v4949_v49, 1  ;;  %v731_v43 = vmax.f32 %v4812_v2, %v4908_v57  ;;  %v765_v22 = vsel %vm265_vm5, %v4867_v51, -inf }
  0xf9   :  { %v4966_v1 = vsel %vm265_vm5, %v397_v60, -inf  ;;  %v660_v47 = vmax.f32 %v659_v24, %v4815_v5  ;;  %v766_v44 = vsel %vm265_vm5, %v4902_v26, -inf  ;;  %v779_v63 = vmax.f32 %v4839_v39, %v778_v30  ;;  %v215_v39 = vpop.f32.mrf.mxu1 }
  0xfa   :  { %v4974_v42 = vmax.f32 %v467_v46, %v468_v28  ;;  %v732_v54 = vmax.f32 %v731_v43, %v4850_v41  ;;  %v767_v2 = vmax.f32 %v4882_v18, %v766_v44  ;;  %v802_v51 = vsel %vm265_vm5, %v4910_v55, -inf }
  0xfb   :  { %v801_v57 = vsel %vm265_vm5, %v779_v63, -inf  ;;  %v803_v5 = vmax.f32 %v4885_v48, %v802_v51  ;;  %v830_v26 = vsel %vm809_vm6, %v4821_v19, %v4823_v20  ;;  %v231_v62 = vmax.f32 %v207_v9, 0.0 }
  0xfc   :  { %v768_v30 = vmax.f32 %v767_v2, %v765_v22  ;;  %v832_v11 = vsel %vm812_vm7, %v830_v26, %v624_v50  ;;  %v232_v41 = vmax.f32 %v210_v35, 0.0  ;;  %v4986_v52 = vmax.f32 %v215_v39, 0.0 }
  0xfd   :  { %v804_v18 = vmax.f32 %v803_v5, %v801_v57  ;;  %v834_v55 = vsel %vm815_vm8, %v832_v11, %v660_v47  ;;  %v398_v58 = vsel %vm236_vm1, %v231_v62, -inf  ;;  %v434_v48 = vsel %vm272_vm2, %v231_v62, -inf }
  0xfe   :  { %v836_v27 = vsel %vm818_vm9, %v834_v55, %v696_v61  ;;  %v399_v3 = vrot.slane %v398_v58, 4  ;;  %v435_v19 = vrot.slane %v434_v48, 4  ;;  %v470_v20 = vsel %vm307_vm3, %v231_v62, -inf }
  0xff   :  { %v838_v4 = vsel %vm821_vm10, %v836_v27, %v732_v54  ;;  %v471_v8 = vrot.slane %v470_v20, 4  ;;  %v506_v9 = vsel %vm342_vm4, %v231_v62, -inf  ;;  %v535_v10 = vsel %vm236_vm1, %v232_v41, -inf }
 0x100   :  { %v840_v14 = vsel %vm824_vm11, %v838_v4, %v768_v30  ;;  %v400_v21 = vmax.f32 %v398_v58, %v399_v3  ;;  %v436_v17 = vmax.f32 %v434_v48, %v435_v19  ;;  %v507_v23 = vrot.slane %v506_v9, 4 }
 0x101   :  { %v842_v34 = vsel %vm827_vm12, %v840_v14, %v804_v18  ;;  %v472_v29 = vmax.f32 %v470_v20, %v471_v8  ;;  %v536_v36 = vrot.slane %v535_v10, 4  ;;  %v571_v38 = vsel %vm272_vm2, %v232_v41, -inf }
 0x102   :  { %v5005_v13 = vadd.f32 %v4997_v6, %v842_v34  ;;  %v401_v33 = vrot.slane %v400_v21, 2  ;;  %v437_v46 = vrot.slane %v436_v17, 2  ;;  %v508_v50 = vmax.f32 %v506_v9, %v507_v23 }
 0x103   :  { %v473_v60 = vrot.slane %v472_v29, 2  ;;  %v537_v24 = vmax.f32 %v535_v10, %v536_v36  ;;  %v572_v61 = vrot.slane %v571_v38, 4  ;;  %v607_v28 = vsel %vm307_vm3, %v232_v41, -inf }
 0x104   :  { %v855_v43 = vsel %vm265_vm5, %v5005_v13, 0.0  ;;  %v402_v22 = vmax.f32 %v400_v21, %v401_v33  ;;  %v438_v47 = vmax.f32 %v436_v17, %v437_v46  ;;  %v509_v44 = vrot.slane %v508_v50, 2 }
 0x105   :  { %856 = vadd.xlane.f32.xlu0 %v855_v43  ;;  %v474_v63 = vmax.f32 %v472_v29, %v473_v60  ;;  %v538_v54 = vrot.slane %v537_v24, 2  ;;  %v573_v2 = vmax.f32 %v571_v38, %v572_v61  ;;  %v608_v51 = vrot.slane %v607_v28, 4  ;;  %v212_v60 = vpop.f32.mrf.mxu0 }
 0x106   :  { %v403_v57 = vrot.slane %v402_v22, 1  ;;  %v439_v5 = vrot.slane %v438_v47, 1  ;;  %v510_v26 = vmax.f32 %v508_v50, %v509_v44  ;;  %v643_v62 = vsel %vm342_vm4, %v232_v41, -inf }
 0x107   :  { %v475_v35 = vrot.slane %v474_v63, 1  ;;  %v539_v39 = vmax.f32 %v537_v24, %v538_v54  ;;  %v574_v30 = vrot.slane %v573_v2, 2  ;;  %v609_v11 = vmax.f32 %v607_v28, %v608_v51 }
 0x108   :  { %v404_v18 = vmax.f32 %v402_v22, %v403_v57  ;;  %v440_v55 = vmax.f32 %v438_v47, %v439_v5  ;;  %v511_v58 = vrot.slane %v510_v26, 1  ;;  %v644_v48 = vrot.slane %v643_v62, 4  ;;  %v217_v22 = vpop.f32.mrf.mxu1 }
 0x109   :  { %v5011_v27 = vmax.f32 %v474_v63, %v475_v35  ;;  %v540_v3 = vrot.slane %v539_v39, 1  ;;  %v575_v19 = vmax.f32 %v573_v2, %v574_v30  ;;  %v610_v20 = vrot.slane %v609_v11, 2 }
 0x10a   :  { %v5014_v4 = vsel %vm265_vm5, %v404_v18, -inf  ;;  %v5017_v8 = vsel %vm265_vm5, %v440_v55, -inf  ;;  %v5019_v41 = vmax.f32 %v510_v26, %v511_v58  ;;  %v645_v9 = vmax.f32 %v643_v62, %v644_v48 }
 0x10b   :  { %v411_v10 = vmax.f32 %v4938_v7, %v5014_v4  ;;  %v541_v14 = vmax.f32 %v539_v39, %v540_v3  ;;  %v576_v21 = vrot.slane %v575_v19, 1  ;;  %v611_v17 = vmax.f32 %v609_v11, %v610_v20 }
 0x10c   :  { %v646_v23 = vrot.slane %v645_v9, 2  ;;  %v679_v34 = vsel %vm236_vm1, %v4986_v52, -inf  ;;  %v715_v29 = vsel %vm272_vm2, %v4986_v52, -inf  ;;  %v751_v36 = vsel %vm307_vm3, %v4986_v52, -inf }
 0x10d   :  { %v5030_v38 = vsel %vm265_vm5, %v541_v14, -inf  ;;  %v577_v33 = vmax.f32 %v575_v19, %v576_v21  ;;  %v612_v46 = vrot.slane %v611_v17, 1  ;;  %v680_v50 = vrot.slane %v679_v34, 4 }
 0x10e   :  { %v647_v24 = vmax.f32 %v645_v9, %v646_v23  ;;  %v716_v61 = vrot.slane %v715_v29, 4  ;;  %v752_v28 = vrot.slane %v751_v36, 4  ;;  %v787_v43 = vsel %vm342_vm4, %v4986_v52, -inf }
 0x10f   :  { %v5035_v47 = vsel %vm265_vm5, %v577_v33, -inf  ;;  %v613_v44 = vmax.f32 %v611_v17, %v612_v46  ;;  %v681_v63 = vmax.f32 %v679_v34, %v680_v50  ;;  %v788_v54 = vrot.slane %v787_v43, 4 }
 0x110   :  { %v648_v2 = vrot.slane %v647_v24, 1  ;;  %v717_v51 = vmax.f32 %v715_v29, %v716_v61  ;;  %v753_v57 = vmax.f32 %v751_v36, %v752_v28  ;;  %v233_v5 = vmax.f32 %v212_v60, 0.0 }
 0x111   :  { %v5038_v26 = vsel %vm265_vm5, %v613_v44, -inf  ;;  %v682_v62 = vrot.slane %v681_v63, 2  ;;  %v789_v35 = vmax.f32 %v787_v43, %v788_v54  ;;  %v235_v39 = vmax.f32 %v217_v22, 0.0 }
 0x112   :  { %v649_v30 = vmax.f32 %v647_v24, %v648_v2  ;;  %v718_v11 = vrot.slane %v717_v51, 2  ;;  %v754_v52 = vrot.slane %v753_v57, 2  ;;  %v542_v18 = vsel %vm236_vm1, %v233_v5, -inf }
 0x113   :  { %v683_v55 = vmax.f32 %v681_v63, %v682_v62  ;;  %v790_v58 = vrot.slane %v789_v35, 2  ;;  %v543_v48 = vrot.slane %v542_v18, 4  ;;  %v578_v3 = vsel %vm272_vm2, %v233_v5, -inf }
 0x114   :  { %v5043_v19 = vsel %vm265_vm5, %v649_v30, -inf  ;;  %v719_v20 = vmax.f32 %v717_v51, %v718_v11  ;;  %v755_v9 = vmax.f32 %v753_v57, %v754_v52  ;;  %v579_v14 = vrot.slane %v578_v3, 4 }
 0x115   :  { %v684_v21 = vrot.slane %v683_v55, 1  ;;  %v5045_v17 = vmax.f32 %v789_v35, %v790_v58  ;;  %v544_v23 = vmax.f32 %v542_v18, %v543_v48  ;;  %v614_v34 = vsel %vm307_vm3, %v233_v5, -inf }
 0x116   :  { %v720_v29 = vrot.slane %v719_v20, 1  ;;  %v756_v36 = vrot.slane %v755_v9, 1  ;;  %v580_v33 = vmax.f32 %v578_v3, %v579_v14  ;;  %v615_v46 = vrot.slane %v614_v34, 4 }
 0x117   :  { %v685_v50 = vmax.f32 %v683_v55, %v684_v21  ;;  %v792_v60 = vrot.slane %v5045_v17, 1  ;;  %v545_v24 = vrot.slane %v544_v23, 2  ;;  %v650_v61 = vsel %vm342_vm4, %v233_v5, -inf }
 0x118   :  { %v721_v28 = vmax.f32 %v719_v20, %v720_v29  ;;  %v5050_v43 = vmax.f32 %v755_v9, %v756_v36  ;;  %v581_v22 = vrot.slane %v580_v33, 2  ;;  %v616_v44 = vmax.f32 %v614_v34, %v615_v46 }
 0x119   :  { %v5053_v63 = vsel %vm265_vm5, %v685_v50, -inf  ;;  %v546_v54 = vmax.f32 %v544_v23, %v545_v24  ;;  %v651_v2 = vrot.slane %v650_v61, 4  ;;  %v686_v51 = vsel %vm236_vm1, %v235_v39, -inf }
 0x11a   :  { %v5057_v57 = vsel %vm265_vm5, %v721_v28, -inf  ;;  %v582_v62 = vmax.f32 %v580_v33, %v581_v22  ;;  %v617_v35 = vrot.slane %v616_v44, 2  ;;  %v687_v30 = vrot.slane %v686_v51, 4 }
 0x11b   :  { %v547_v11 = vrot.slane %v546_v54, 1  ;;  %v652_v5 = vmax.f32 %v650_v61, %v651_v2  ;;  %v722_v52 = vsel %vm272_vm2, %v235_v39, -inf  ;;  %v758_v18 = vsel %vm307_vm3, %v235_v39, -inf }
 0x11c   :  { %v583_v55 = vrot.slane %v582_v62, 1  ;;  %v618_v58 = vmax.f32 %v616_v44, %v617_v35  ;;  %v688_v48 = vmax.f32 %v686_v51, %v687_v30  ;;  %v723_v3 = vrot.slane %v722_v52, 4 }
 0x11d   :  { %v548_v20 = vmax.f32 %v546_v54, %v547_v11  ;;  %v653_v9 = vrot.slane %v652_v5, 2  ;;  %v759_v14 = vrot.slane %v758_v18, 4  ;;  %v794_v21 = vsel %vm342_vm4, %v235_v39, -inf }
 0x11e   :  { %v584_v23 = vmax.f32 %v582_v62, %v583_v55  ;;  %v619_v34 = vrot.slane %v618_v58, 1  ;;  %v689_v29 = vrot.slane %v688_v48, 2  ;;  %v724_v36 = vmax.f32 %v722_v52, %v723_v3 }
 0x11f   :  { %v554_v33 = vsel %vm265_vm5, %v548_v20, -inf  ;;  %v654_v46 = vmax.f32 %v652_v5, %v653_v9  ;;  %v760_v50 = vmax.f32 %v758_v18, %v759_v14  ;;  %v795_v24 = vrot.slane %v794_v21, 4 }
 0x120   :  { %v555_v61 = vmax.f32 %v5014_v4, %v554_v33  ;;  %v590_v28 = vsel %vm265_vm5, %v584_v23, -inf  ;;  %v620_v22 = vmax.f32 %v618_v58, %v619_v34  ;;  %v690_v44 = vmax.f32 %v688_v48, %v689_v29 }
 0x121   :  { %v591_v54 = vmax.f32 %v5017_v8, %v590_v28  ;;  %v655_v2 = vrot.slane %v654_v46, 1  ;;  %v725_v51 = vrot.slane %v724_v36, 2  ;;  %v761_v39 = vrot.slane %v760_v50, 2 }
 0x122   :  { %v556_v62 = vmax.f32 %v555_v61, %v5030_v38  ;;  %v626_v35 = vsel %vm265_vm5, %v620_v22, -inf  ;;  %v691_v30 = vrot.slane %v690_v44, 1  ;;  %v796_v11 = vmax.f32 %v794_v21, %v795_v24 }
 0x123   :  { %v592_v5 = vmax.f32 %v591_v54, %v5035_v47  ;;  %v656_v52 = vmax.f32 %v654_v46, %v655_v2  ;;  %v726_v18 = vmax.f32 %v724_v36, %v725_v51  ;;  %v762_v55 = vmax.f32 %v760_v50, %v761_v39 }
 0x124   :  { %v692_v3 = vmax.f32 %v690_v44, %v691_v30  ;;  %v797_v20 = vrot.slane %v796_v11, 2  ;;  %v340_v58 = vsel %vm265_vm5, %v4935_v32, -inf  ;;  %v374_v48 = vsel %vm265_vm5, %v4927_v37, -inf }
 0x125   :  { %v727_v9 = vrot.slane %v726_v18, 1  ;;  %v763_v14 = vrot.slane %v762_v55, 1  ;;  %v341_v38 = vmax.f32 %v4925_v0, %v340_v58  ;;  %v375_v21 = vsel %vm265_vm5, %v4940_v12, -inf }
 0x126   :  { %v698_v47 = vsel %vm265_vm5, %v692_v3, -inf  ;;  %v798_v23 = vmax.f32 %v796_v11, %v797_v20  ;;  %v376_v34 = vmax.f32 %v374_v48, %v375_v21  ;;  %v412_v29 = vmax.f32 %v411_v10, %v4966_v1 }
 0x127   :  { %v699_v32 = vmax.f32 %v554_v33, %v698_v47  ;;  %v728_v36 = vmax.f32 %v726_v18, %v727_v9  ;;  %v764_v46 = vmax.f32 %v762_v55, %v763_v14  ;;  %v445_v37 = vsel %vm265_vm5, %v4952_v59, -inf }
 0x128   :  { %v799_v50 = vrot.slane %v798_v23, 1  ;;  %v447_v0 = vmax.f32 %v4945_v53, %v5017_v8  ;;  %v481_v12 = vsel %vm265_vm5, %v4974_v42, -inf  ;;  %v482_v24 = vsel %vm265_vm5, %v5011_v27, -inf }
 0x129   :  { %v734_v61 = vsel %vm265_vm5, %v728_v36, -inf  ;;  %v483_v4 = vmax.f32 %v340_v58, %v482_v24  ;;  %v505_v1 = vmax.f32 %v4949_v49, %v504_v25  ;;  %v518_v59 = vsel %vm265_vm5, %v5019_v41, -inf }
 0x12a   :  { %v800_v10 = vmax.f32 %v798_v23, %v799_v50  ;;  %v448_v33 = vmax.f32 %v447_v0, %v445_v37  ;;  %v519_v22 = vmax.f32 %v375_v21, %v518_v59  ;;  %v811_v42 = vsel %vm809_vm6, %v271_v40, %v306_v45 }
 0x12b   :  { %v484_v27 = vmax.f32 %v483_v4, %v481_v12  ;;  %v517_v8 = vsel %vm265_vm5, %v505_v1, -inf  ;;  %v814_v44 = vsel %vm812_vm7, %v811_v42, %v341_v38  ;;  %v627_v49 = vmax.f32 %v482_v24, %v626_v35 }
 0x12c   :  { %v520_v25 = vmax.f32 %v519_v22, %v517_v8  ;;  %v817_v41 = vsel %vm815_vm8, %v814_v44, %v376_v34  ;;  %v662_v54 = vsel %vm265_vm5, %v656_v52, -inf  ;;  %v700_v2 = vmax.f32 %v699_v32, %v5053_v63 }
 0x12d   :  { %v820_v16 = vsel %vm818_vm9, %v817_v41, %v412_v29  ;;  %v628_v53 = vmax.f32 %v627_v49, %v5038_v26  ;;  %v663_v15 = vmax.f32 %v518_v59, %v662_v54  ;;  %v735_v7 = vmax.f32 %v590_v28, %v734_v61  ;;  %v4183_v41 = vld [vmem:[%s6021_s27 + $0x18] sm:$0xff] }
 0x12e   :  { %v823_v40 = vsel %vm821_vm10, %v820_v16, %v448_v33  ;;  %v769_v45 = vsel %vm265_vm5, %v5050_v43, -inf  ;;  %v770_v51 = vsel %vm265_vm5, %v764_v46, -inf  ;;  %v793_v39 = vmax.f32 %v5045_v17, %v792_v60  ;;  %1005 = vmatpush.bf16.msrb.mxu1 %v4183_v41 }
 0x12f   :  { %v826_v30 = vsel %vm824_vm11, %v823_v40, %v484_v27  ;;  %v664_v63 = vmax.f32 %v663_v15, %v5043_v19  ;;  %v736_v11 = vmax.f32 %v735_v7, %v5057_v57  ;;  %v771_v26 = vmax.f32 %v626_v35, %v770_v51  ;;  %v4186_v15 = vld [vmem:[%s6022_s29 + $0x10] sm:$0xff]  ;;  %v4185_v51 = vld [vmem:[%s6022_s29 + $0x8] sm:$0xff] }
 0x130   :  { %v829_v28 = vsel %vm827_vm12, %v826_v30, %v520_v25  ;;  %v805_v52 = vsel %vm265_vm5, %v793_v39, -inf  ;;  %v806_v18 = vsel %vm265_vm5, %v800_v10, -inf  ;;  %v831_v43 = vsel %vm809_vm6, %v556_v62, %v592_v5  ;;  %v4190_v7 = vld [vmem:[%s5978_s7 + $0x10] sm:$0xff]  ;;  %v4189_v39 = vld [vmem:[%s5978_s7 + $0x8] sm:$0xff] }
 0x131   :  { %v5124_v55 = vadd.f32 %v4879_v31, %v829_v28  ;;  %v772_v3 = vmax.f32 %v771_v26, %v769_v45  ;;  %v807_v17 = vmax.f32 %v662_v54, %v806_v18  ;;  %v833_v60 = vsel %vm812_vm7, %v831_v43, %v628_v53  ;;  %v4187_v54 = vld [vmem:[%s6022_s29 + $0x18] sm:$0xff]  ;;  %v4182_v53 = vld [vmem:[%s6021_s27 + $0x10] sm:$0xff]  ;;  %v4181_v45 = vld [vmem:[%s6021_s27 + $0x8] sm:$0xff] }
 0x132   :  { %v835_v19 = vsel %vm815_vm8, %v833_v60, %v664_v63  ;;  %v4553_v5 = vmov 64.0   ;;  %1056 = vmatpush.bf16.msra.mxu2 %v4187_v54  ;;  %1006 = vmatpush.bf16.msrb.mxu1 %v4182_v53  ;;  %v4180_v26 = vld [vmem:[%s6021_s27] sm:$0xff] }
 0x133   :  { %v858_v57 = vsel %vm265_vm5, %v5124_v55, 0.0  ;;  %v808_v35 = vmax.f32 %v807_v17, %v805_v52  ;;  %v837_v20 = vsel %vm818_vm9, %v835_v19, %v700_v2  ;;  %4329 = vrcp.f32 %v4553_v5  ;;  %v4191_v2 = vld [vmem:[%s5978_s7 + $0x18] sm:$0xff]  ;;  %v4184_v28 = vld [vmem:[%s6022_s29] sm:$0xff] }
 0x134   :  { %859 = vadd.xlane.f32.xlu2 %v858_v57  ;;  %v839_v58 = vsel %vm821_vm10, %v837_v20, %v736_v11  ;;  %1107 = vmatpush.bf16.msra.mxu3 %v4191_v2  ;;  %v4188_v52 = vld [vmem:[%s5978_s7] sm:$0xff] }
 0x135   :  { %v841_v62 = vsel %vm824_vm11, %v839_v58, %v772_v3  ;;  %v4311_v5 = vld [vmem:[%s6023_s26] ss:$0 sm:$0xff] }
 0x136   :  { %v843_v31 = vsel %vm827_vm12, %v841_v62, %v808_v35  ;;  %1057 = vmatpush.bf16.msra.mxu2 %v4186_v15  ;;  %1007 = vmatpush.bf16.msrb.mxu1 %v4181_v45  ;;  %vm1148_vm12 = vcmask 130048  }
 0x137   :  { %v5135_v48 = vadd.f32 %v4997_v6, %v843_v31 }
 0x138   :  { %1108 = vmatpush.bf16.msra.mxu3 %v4190_v7 }
 0x139   :  { %v861_v9 = vsel %vm265_vm5, %v5135_v48, 0.0  ;;  %v4330_v14 = vpop.eup %4329 }
 0x13a   :  { %v865_v38 = vmul.f32 64.0, %v4330_v14  ;;  %vm869_vm13 = vweird.f32 %v4330_v14  ;;  %1058 = vmatpush.bf16.msra.mxu2 %v4185_v51  ;;  %1008 = vmatpush.bf16.msrb.mxu1 %v4180_v26 }
 0x13c   :  { %862 = vadd.xlane.f32.xlu2 %v861_v9  ;;  %v866_v21 = vsub.f32 1.0, %v865_v38  ;;  %1109 = vmatpush.bf16.msra.mxu3 %v4189_v39 }
 0x13e   :  { %v867_v47 = vmul.f32 %v4330_v14, %v866_v21  ;;  %1059 = vmatpush.bf16.msra.mxu2 %v4184_v28  ;;  %v4312_v21 = vld [vmem:[%s6024_s28] ss:$0 sm:$0xff] }
 0x140   :  { %v868_v23 = vadd.f32 %v4330_v14, %v867_v47  ;;  %1110 = vmatpush.bf16.msra.mxu3 %v4188_v52 }
 0x142   :  { %v5139_v34 = vsel %vm869_vm13, %v4330_v14, %v868_v23  ;;  %vm1797_vm13 = vcmask 392192  }
 0x152   :  { %v854_v29 = vpop.xlane.xlu0 %853 }
 0x153   :  { %v871_v32 = vmul.f32 %v5139_v34, %v854_v29 }
 0x155   :  { %v5143_v36 = vsub.f32 %v4893_v56, %v871_v32 }
 0x157   :  { %v879_v6 = vmul.f32 %v5143_v36, %v5143_v36 }
 0x159   :  { %v883_v46 = vsel %vm265_vm5, %v879_v6, 0.0 }
 0x15a   :  { %884 = vadd.xlane.f32.xlu1 %v883_v46 }
 0x178   :  { %v857_v37 = vpop.xlane.xlu0 %856 }
 0x179   :  { %v872_v50 = vmul.f32 %v5139_v34, %v857_v37 }
 0x17b   :  { %v5150_v0 = vsub.f32 %v5005_v13, %v872_v50 }
 0x17d   :  { %v880_v12 = vmul.f32 %v5150_v0, %v5150_v0 }
 0x17f   :  { %v886_v24 = vsel %vm265_vm5, %v880_v12, 0.0 }
 0x180   :  { %887 = vadd.xlane.f32.xlu1 %v886_v24 }
 0x1a7   :  { %v860_v61 = vpop.xlane.xlu2 %859 }
 0x1a8   :  { %v873_v4 = vmul.f32 %v5139_v34, %v860_v61 }
 0x1aa   :  { %v5157_v1 = vsub.f32 %v5124_v55, %v873_v4 }
 0x1ac   :  { %v881_v59 = vmul.f32 %v5157_v1, %v5157_v1 }
 0x1ae   :  { %v889_v10 = vsel %vm265_vm5, %v881_v59, 0.0 }
 0x1af   :  { %890 = vadd.xlane.f32.xlu0 %v889_v10  ;;  %v863_v33 = vpop.xlane.xlu2 %862 }
 0x1b0   :  { %v874_v22 = vmul.f32 %v5139_v34, %v863_v33 }
 0x1b2   :  { %v5164_v42 = vsub.f32 %v5135_v48, %v874_v22 }
 0x1b4   :  { %v882_v27 = vmul.f32 %v5164_v42, %v5164_v42 }
 0x1b6   :  { %v892_v8 = vsel %vm265_vm5, %v882_v27, 0.0 }
 0x1b7   :  { %893 = vadd.xlane.f32.xlu1 %v892_v8 }
 0x1cd   :  { %v885_v44 = vpop.xlane.xlu1 %884 }
 0x1ce   :  { %v895_v49 = vmul.f32 %v885_v44, %v5139_v34 }
 0x1d0   :  { %v899_v25 = vadd.f32 1e-05, %v895_v49 }
 0x1d2   :  { %4331 = vrsqrt.f32 %v899_v25  ;;  %vm909_vm15 = vweird.f32 %v899_v25 }
 0x1d8   :  { %v4332_v16 = vpop.eup %4331 }
 0x1d9   :  { %v904_v40 = vmul.f32 %v4332_v16, %v899_v25  ;;  %vm910_vm14 = vweird.f32 %v4332_v16 }
 0x1da   :  { %vm911_vm1 = vmor %vm909_vm15, %vm910_vm14 }
 0x1db   :  { %v905_v30 = vmul.f32 %v4332_v16, %v904_v40 }
 0x1dd   :  { %v906_v43 = vmul.f32 0.5, %v905_v30 }
 0x1df   :  { %v907_v3 = vsub.f32 1.5, %v906_v43 }
 0x1e1   :  { %v908_v60 = vmul.f32 %v4332_v16, %v907_v3 }
 0x1e3   :  { %v912_v35 = vsel %vm911_vm1, %v4332_v16, %v908_v60 }
 0x1e4   :  { %v943_v62 = vmul.f32 %v912_v35, %v5143_v36 }
 0x1e6   :  { %v950_v38 = vmul.f32 %v4311_v5, %v943_v62 }
 0x1e8   :  { %v957_v23 = vadd.f32 %v4312_v21, %v950_v38 }
 0x1f3   :  { %v888_v63 = vpop.xlane.xlu1 %887 }
 0x1f4   :  { %v896_v11 = vmul.f32 %v888_v63, %v5139_v34 }
 0x1f6   :  { %v900_v18 = vadd.f32 1e-05, %v896_v11 }
 0x1f8   :  { %4333 = vrsqrt.f32 %v900_v18  ;;  %vm919_vm3 = vweird.f32 %v900_v18 }
 0x1fe   :  { %v4334_v17 = vpop.eup %4333 }
 0x1ff   :  { %v914_v19 = vmul.f32 %v4334_v17, %v900_v18  ;;  %vm920_vm2 = vweird.f32 %v4334_v17 }
 0x200   :  { %vm921_vm4 = vmor %vm919_vm3, %vm920_vm2 }
 0x201   :  { %v915_v57 = vmul.f32 %v4334_v17, %v914_v19 }
 0x203   :  { %v916_v20 = vmul.f32 0.5, %v915_v57 }
 0x205   :  { %v917_v58 = vsub.f32 1.5, %v916_v20 }
 0x207   :  { %v918_v31 = vmul.f32 %v4334_v17, %v917_v58 }
 0x209   :  { %v922_v9 = vsel %vm921_vm4, %v4334_v17, %v918_v31 }
 0x20a   :  { %v944_v14 = vmul.f32 %v922_v9, %v5150_v0 }
 0x20c   :  { %v951_v47 = vmul.f32 %v4311_v5, %v944_v14 }
 0x20e   :  { %v958_v29 = vadd.f32 %v4312_v21, %v951_v47 }
 0x210   :  { %v961_v32 = vpack.c.bf16 %v958_v29, %v957_v23 }
 0x212   :  { %3830 = vmatmul.msk.bf16.vlgmr.msrb.gmra.mxu1 %vm265_vm5, %v961_v32  ;;  %3848 = vmatmul.msk.bf16.vlgmr.msra.gmra.mxu2 %vm265_vm5, %v961_v32 }
 0x213   :  { %3866 = vmatmul.msk.bf16.vlgmr.msra.gmra.mxu3 %vm265_vm5, %v961_v32 }
 0x222   :  { %v891_v36 = vpop.xlane.xlu0 %890 }
 0x223   :  { %v897_v6 = vmul.f32 %v891_v36, %v5139_v34 }
 0x225   :  { %v901_v46 = vadd.f32 1e-05, %v897_v6 }
 0x227   :  { %4335 = vrsqrt.f32 %v901_v46  ;;  %vm929_vm7 = vweird.f32 %v901_v46 }
 0x22a   :  { %v894_v37 = vpop.xlane.xlu1 %893 }
 0x22b   :  { %v898_v50 = vmul.f32 %v894_v37, %v5139_v34 }
 0x22d   :  { %v4336_v0 = vpop.eup %4335  ;;  %v902_v12 = vadd.f32 1e-05, %v898_v50 }
 0x22e   :  { %v924_v24 = vmul.f32 %v4336_v0, %v901_v46  ;;  %vm930_vm6 = vweird.f32 %v4336_v0 }
 0x22f   :  { %4337 = vrsqrt.f32 %v902_v12  ;;  %vm931_vm8 = vmor %vm929_vm7, %vm930_vm6  ;;  %vm939_vm10 = vweird.f32 %v902_v12 }
 0x230   :  { %v925_v61 = vmul.f32 %v4336_v0, %v924_v24 }
 0x232   :  { %v926_v4 = vmul.f32 0.5, %v925_v61 }
 0x234   :  { %v927_v59 = vsub.f32 1.5, %v926_v4 }
 0x235   :  { %v4338_v10 = vpop.eup %4337 }
 0x236   :  { %v928_v33 = vmul.f32 %v4336_v0, %v927_v59  ;;  %v934_v22 = vmul.f32 %v4338_v10, %v902_v12  ;;  %vm940_vm9 = vweird.f32 %v4338_v10 }
 0x237   :  { %vm941_vm11 = vmor %vm939_vm10, %vm940_vm9 }
 0x238   :  { %v935_v27 = vmul.f32 %v4338_v10, %v934_v22  ;;  %v932_v8 = vsel %vm931_vm8, %v4336_v0, %v928_v33 }
 0x239   :  { %v945_v25 = vmul.f32 %v932_v8, %v5157_v1 }
 0x23a   :  { %v936_v44 = vmul.f32 0.5, %v935_v27 }
 0x23b   :  { %v952_v16 = vmul.f32 %v4311_v5, %v945_v25 }
 0x23c   :  { %v937_v49 = vsub.f32 1.5, %v936_v44 }
 0x23d   :  { %v959_v15 = vadd.f32 %v4312_v21, %v952_v16 }
 0x23e   :  { %v938_v41 = vmul.f32 %v4338_v10, %v937_v49 }
 0x240   :  { %v942_v54 = vsel %vm941_vm11, %v4338_v10, %v938_v41 }
 0x241   :  { %v946_v2 = vmul.f32 %v942_v54, %v5164_v42 }
 0x243   :  { %v953_v53 = vmul.f32 %v4311_v5, %v946_v2 }
 0x245   :  { %v960_v7 = vadd.f32 %v4312_v21, %v953_v53 }
 0x247   :  { %v962_v40 = vpack.c.bf16 %v960_v7, %v959_v15 }
 0x249   :  { %3831 = vmatmul.msk.bf16.gmra.mxu1 %vm265_vm5, %v962_v40  ;;  %3849 = vmatmul.msk.bf16.gmra.mxu2 %vm265_vm5, %v962_v40 }
 0x24a   :  { %3867 = vmatmul.msk.bf16.gmra.mxu3 %vm265_vm5, %v962_v40 }
 0x28f   :  { %v1010_v45 = vpop.f32.mrf.mxu1 }
 0x290   :  { %v1122_v18 = vmul.f32 0.25, %v1010_v45 }
 0x292   :  { %v1126_v20 = vpack.c.bf16 %v1122_v18, %v1122_v18 }
 0x294   :  { %v1140_v5 = vunpack.c.l.b16 %v1126_v20 }
 0x295   :  { %v1061_v51 = vpop.f32.mrf.mxu2 }
 0x296   :  { %v1112_v1 = vpop.f32.mrf.mxu3  ;;  %v1130_v30 = vpack.c.bf16 %v1061_v51, %v1061_v51 }
 0x297   :  { %v1012_v39 = vpop.f32.mrf.mxu1  ;;  %v1134_v63 = vpack.c.bf16 %v1112_v1, %v1112_v1 }
 0x298   :  { %v1123_v26 = vmul.f32 0.25, %v1012_v39  ;;  %v1145_v43 = vunpack.c.l.b16 %v1130_v30 }
 0x299   :  { %v1254_v17 = vunpack.c.l.b16 %v1134_v63 }
 0x29a   :  { %v1127_v19 = vpack.c.bf16 %v1123_v26, %v1123_v26 }
 0x29c   :  { %v1141_v62 = vunpack.c.l.b16 %v1127_v19 }
 0x29d   :  { %v1063_v11 = vpop.f32.mrf.mxu2 }
 0x29e   :  { %v1131_v42 = vpack.c.bf16 %v1063_v11, %v1063_v11  ;;  %v1114_v28 = vpop.f32.mrf.mxu3  ;;  %v5232_v31 = vpack.c.b16 %v1141_v62, %v1140_v5 }
 0x29f   :  { %v1135_v52 = vpack.c.bf16 %v1114_v28, %v1114_v28 }
 0x2a0   :  { %v1146_v3 = vunpack.c.l.b16 %v1131_v42 }
 0x2a1   :  { %v1255_v60 = vunpack.c.l.b16 %v1135_v52 }
 0x2a2   :  { %v5225_v57 = vpack.c.b16 %v1146_v3, %v1145_v43 }
 0x2a3   :  { %v5227_v35 = vpack.c.b16 %v1255_v60, %v1254_v17 }
 0x2a4   :  { %v1153_v58 = vsel %vm1148_vm12, %v5225_v57, 0 }
 0x2a5   :  { %1268 = vmatpush.bf16.msrb.mxu3 %v5227_v35  ;;  %1162 = vmatpush.bf16.xpose.msra.mxu1 %v1153_v58 }
 0x2ac   :  { %3868 = vmatmul.msk.bf16.vlgmr.msra.gmra.mxu1 %vm1148_vm12, %v5232_v31 }
 0x2c6   :  { %v1015_v9 = vpop.f32.mrf.mxu1 }
 0x2c7   :  { %v1124_v37 = vmul.f32 0.25, %v1015_v9 }
 0x2c9   :  { %v1128_v10 = vpack.c.bf16 %v1124_v37, %v1124_v37 }
 0x2cb   :  { %v1171_v27 = vunpack.c.l.b16 %v1128_v10 }
 0x2cc   :  { %v1066_v14 = vpop.f32.mrf.mxu2 }
 0x2cd   :  { %v1117_v38 = vpop.f32.mrf.mxu3  ;;  %v1132_v47 = vpack.c.bf16 %v1066_v14, %v1066_v14 }
 0x2ce   :  { %v1017_v21 = vpop.f32.mrf.mxu1  ;;  %v1136_v23 = vpack.c.bf16 %v1117_v38, %v1117_v38 }
 0x2cf   :  { %v1125_v32 = vmul.f32 0.25, %v1017_v21  ;;  %v1176_v50 = vunpack.c.l.b16 %v1132_v47 }
 0x2d0   :  { %v1282_v12 = vunpack.c.l.b16 %v1136_v23 }
 0x2d1   :  { %v1129_v61 = vpack.c.bf16 %v1125_v32, %v1125_v32 }
 0x2d3   :  { %v1172_v22 = vunpack.c.l.b16 %v1129_v61 }
 0x2d4   :  { %v1068_v29 = vpop.f32.mrf.mxu2 }
 0x2d5   :  { %v1133_v36 = vpack.c.bf16 %v1068_v29, %v1068_v29  ;;  %v1119_v6 = vpop.f32.mrf.mxu3  ;;  %v5243_v8 = vpack.c.b16 %v1172_v22, %v1171_v27 }
 0x2d6   :  { %v1137_v46 = vpack.c.bf16 %v1119_v6, %v1119_v6 }
 0x2d7   :  { %v1177_v0 = vunpack.c.l.b16 %v1133_v36 }
 0x2d8   :  { %v1283_v24 = vunpack.c.l.b16 %v1137_v46 }
 0x2d9   :  { %v5236_v4 = vpack.c.b16 %v1177_v0, %v1176_v50 }
 0x2da   :  { %v5238_v59 = vpack.c.b16 %v1283_v24, %v1282_v12 }
 0x2db   :  { %v1183_v33 = vsel %vm1148_vm12, %v5236_v4, 0 }
 0x2dc   :  { %1296 = vmatpush.bf16.msrb.mxu1 %v5238_v59  ;;  %1192 = vmatpush.bf16.xpose.msrb.mxu2 %v1183_v33 }
 0x2e3   :  { %3869 = vmatmul.msk.bf16.vlgmr.msrb.gmra.mxu2 %vm1148_vm12, %v5243_v8 }
 0x329   :  { %v1164_v44 = vpop.f32.mrf.mxu1 }
 0x32a   :  { %v1199_v49 = vsel %vm1148_vm12, %v1164_v44, -inf }
 0x32b   :  { %1200 = vmax.xlane.f32.xlu2 %v1199_v49 }
 0x331   :  { %v1166_v25 = vpop.f32.mrf.mxu1 }
 0x332   :  { %v1202_v41 = vsel %vm1148_vm12, %v1166_v25, -inf }
 0x333   :  { %1203 = vmax.xlane.f32.xlu0 %v1202_v41 }
 0x343   :  { %1329 = vrot.lane.b32.xlu2 %v5236_v4, %s4554_s30 }
 0x347   :  { %1305 = vrot.lane.b32.xlu0 %v5225_v57, %s4554_s30 }
 0x34f   :  { %1327 = vrot.lane.b32.xlu0 %v5243_v8, %s4554_s30 }
 0x366   :  { %v1194_v54 = vpop.f32.mrf.mxu2 }
 0x367   :  { %v1205_v2 = vsel %vm1148_vm12, %v1194_v54, -inf }
 0x36e   :  { %v1196_v28 = vpop.f32.mrf.mxu2 }
 0x36f   :  { %v1208_v52 = vsel %vm1148_vm12, %v1196_v28, -inf }
 0x379   :  { %1206 = vmax.xlane.f32.xlu0 %v1205_v2 }
 0x39e   :  { %v1201_v16 = vpop.xlane.xlu2 %1200 }
 0x39f   :  { %v1211_v53 = vsub.f32 %v1164_v44, %v1201_v16 }
 0x3a1   :  { %v1215_v15 = vmul.f32 1.442695, %v1211_v53 }
 0x3a3   :  { %4339 = vpow2.f32 %v1215_v15 }
 0x3a6   :  { %v1330_v7 = vpop.permute.xlu2 %1329  ;;  %v1204_v40 = vpop.xlane.xlu0 %1203 }
 0x3a7   :  { %v1335_v45 = vsel %vm1148_vm12, %v1330_v7, 0  ;;  %v1212_v51 = vsub.f32 %v1166_v25, %v1204_v40 }
 0x3a8   :  { %1344 = vmatpush.bf16.xpose.msra.mxu3 %v1335_v45 }
 0x3a9   :  { %v4340_v1 = vpop.eup %4339  ;;  %v1217_v39 = vmul.f32 1.442695, %v1212_v51 }
 0x3aa   :  { %v1223_v30 = vsel %vm1148_vm12, %v4340_v1, 0.0 }
 0x3ab   :  { %4341 = vpow2.f32 %v1217_v39  ;;  %1224 = vadd.xlane.f32.xlu1 %v1223_v30 }
 0x3b1   :  { %v4342_v63 = vpop.eup %4341 }
 0x3b2   :  { %v1226_v11 = vsel %vm1148_vm12, %v4342_v63, 0.0 }
 0x3b3   :  { %1227 = vadd.xlane.f32.xlu2 %v1226_v11 }
 0x3b9   :  { %v1306_v26 = vpop.permute.xlu0 %1305 }
 0x3ba   :  { %v1311_v42 = vsel %vm1148_vm12, %v1306_v26, 0 }
 0x3bb   :  { %1320 = vmatpush.bf16.xpose.msra.mxu2 %v1311_v42 }
 0x3c1   :  { %v1328_v47 = vpop.permute.xlu0 %1327 }
 0x3c4   :  { %1303 = vrot.lane.b32.xlu1 %v5232_v31, %s4554_s30 }
 0x3cb   :  { %1451 = vrot.lane.b32.xlu2 %v5225_v57, %s6005_s4 }
 0x3cc   :  { %1449 = vrot.lane.b32.xlu1 %v5232_v31, %s6005_s4 }
 0x3ec   :  { %v1207_v29 = vpop.xlane.xlu0 %1206 }
 0x3ed   :  { %v1213_v32 = vsub.f32 %v1194_v54, %v1207_v29 }
 0x3ef   :  { %v1219_v36 = vmul.f32 1.442695, %v1213_v32 }
 0x3f4   :  { %1209 = vmax.xlane.f32.xlu2 %v1208_v52 }
 0x41e   :  { %v1225_v18 = vpop.xlane.xlu1 %1224 }
 0x41f   :  { %4343 = vrcp.f32 %v1225_v18 }
 0x425   :  { %v4344_v3 = vpop.eup %4343 }
 0x426   :  { %v1228_v43 = vpop.xlane.xlu2 %1227  ;;  %v1239_v17 = vmul.f32 %v4344_v3, %v4340_v1 }
 0x427   :  { %4345 = vrcp.f32 %v1228_v43 }
 0x428   :  { %v1243_v19 = vpack.c.bf16 %v1239_v17, %v1239_v17  ;;  %4347 = vpow2.f32 %v1219_v36 }
 0x42a   :  { %v1249_v62 = vunpack.c.l.b16 %v1243_v19 }
 0x42d   :  { %v4346_v60 = vpop.eup %4345 }
 0x42e   :  { %v1240_v20 = vmul.f32 %v4346_v60, %v4342_v63  ;;  %v1452_v9 = vpop.permute.xlu2 %1451  ;;  %v4348_v37 = vpop.eup %4347 }
 0x42f   :  { %v1457_v38 = vsel %vm1148_vm12, %v1452_v9, 0  ;;  %v1229_v0 = vsel %vm1148_vm12, %v4348_v37, 0.0 }
 0x430   :  { %v1244_v58 = vpack.c.bf16 %v1240_v20, %v1240_v20 }
 0x432   :  { %v1250_v5 = vunpack.c.l.b16 %v1244_v58 }
 0x434   :  { %v1251_v14 = vpack.c.b16 %v1250_v5, %v1249_v62 }
 0x436   :  { %v1304_v21 = vpop.permute.xlu1 %1303  ;;  %3870 = vmatmul.msk.bf16.vlgmr.msrb.gmra.mxu3 %vm1148_vm12, %v1251_v14 }
 0x437   :  { %1466 = vmatpush.bf16.xpose.msrb.mxu3 %v1457_v38  ;;  %3872 = vmatmul.msk.bf16.vlgmr.msra.gmra.mxu2 %vm1148_vm12, %v1304_v21 }
 0x43e   :  { %v1450_v23 = vpop.permute.xlu1 %1449 }
 0x446   :  { %3873 = vmatmul.msk.bf16.vlgmr.msra.gmra.mxu3 %vm1148_vm12, %v1328_v47 }
 0x456   :  { %3876 = vmatmul.msk.bf16.vlgmr.msrb.gmra.mxu3 %vm1148_vm12, %v1450_v23 }
 0x467   :  { %v1210_v10 = vpop.xlane.xlu2 %1209 }
 0x468   :  { %v1214_v33 = vsub.f32 %v1196_v28, %v1210_v10 }
 0x46a   :  { %v1221_v27 = vmul.f32 1.442695, %v1214_v33 }
 0x46c   :  { %4349 = vpow2.f32 %v1221_v27 }
 0x472   :  { %v4350_v49 = vpop.eup %4349 }
 0x473   :  { %v1232_v25 = vsel %vm1148_vm12, %v4350_v49, 0.0 }
 0x4b9   :  { %v5277_v24 = vpop.f32.mrf.mxu3 }
 0x4ba   :  { %v1322_v6 = vpop.f32.mrf.mxu2 }
 0x4bb   :  { %v1351_v46 = vsel %vm1148_vm12, %v1322_v6, -inf }
 0x4bc   :  { %1352 = vmax.xlane.f32.xlu1 %v1351_v46 }
 0x4c1   :  { %v5279_v61 = vpop.f32.mrf.mxu3 }
 0x4c2   :  { %v1324_v50 = vpop.f32.mrf.mxu2 }
 0x4c3   :  { %v1354_v12 = vsel %vm1148_vm12, %v1324_v50, -inf }
 0x4c4   :  { %1230 = vadd.xlane.f32.xlu1 %v1229_v0  ;;  %1355 = vmax.xlane.f32.xlu0 %v1354_v12 }
 0x4c9   :  { %v5281_v22 = vpop.f32.mrf.mxu3 }
 0x4ca   :  { %v1357_v30 = vsel %vm1148_vm12, %v5281_v22, -inf }
 0x4d1   :  { %v5283_v44 = vpop.f32.mrf.mxu3 }
 0x4d2   :  { %v1360_v26 = vsel %vm1148_vm12, %v5283_v44, -inf }
 0x4d8   :  { %1404 = vrot.lane.b32.xlu0 %v5227_v35, %s4554_s30 }
 0x4d9   :  { %v1468_v41 = vpop.f32.mrf.mxu3 }
 0x4da   :  { %v1497_v54 = vsel %vm1148_vm12, %v1468_v41, -inf }
 0x4e1   :  { %v5293_v63 = vpop.f32.mrf.mxu3 }
 0x4e2   :  { %v1500_v42 = vsel %vm1148_vm12, %v5293_v63, -inf }
 0x502   :  { %1233 = vadd.xlane.f32.xlu0 %v1232_v25 }
 0x50a   :  { %1498 = vmax.xlane.f32.xlu0 %v1497_v54 }
 0x51e   :  { %1473 = vrot.lane.b32.xlu0 %v5243_v8, %s6005_s4 }
 0x52f   :  { %v1353_v2 = vpop.xlane.xlu1 %1352 }
 0x530   :  { %v1363_v16 = vsub.f32 %v1322_v6, %v1353_v2 }
 0x532   :  { %v1367_v53 = vmul.f32 1.442695, %v1363_v16 }
 0x534   :  { %4351 = vpow2.f32 %v1367_v53 }
 0x537   :  { %v1356_v15 = vpop.xlane.xlu0 %1355  ;;  %v1231_v28 = vpop.xlane.xlu1 %1230 }
 0x538   :  { %v1364_v7 = vsub.f32 %v1324_v50, %v1356_v15 }
 0x53a   :  { %v4352_v40 = vpop.eup %4351  ;;  %v1369_v45 = vmul.f32 1.442695, %v1364_v7 }
 0x53b   :  { %v1375_v51 = vsel %vm1148_vm12, %v4352_v40, 0.0 }
 0x53c   :  { %4353 = vpow2.f32 %v1369_v45  ;;  %1376 = vadd.xlane.f32.xlu2 %v1375_v51 }
 0x53d   :  { %4355 = vrcp.f32 %v1231_v28 }
 0x542   :  { %v4354_v1 = vpop.eup %4353 }
 0x543   :  { %v1378_v39 = vsel %vm1148_vm12, %v4354_v1, 0.0  ;;  %v4356_v18 = vpop.eup %4355 }
 0x544   :  { %1379 = vadd.xlane.f32.xlu1 %v1378_v39  ;;  %1358 = vmax.xlane.f32.xlu2 %v1357_v30  ;;  %v1241_v43 = vmul.f32 %v4356_v18, %v4348_v37 }
 0x546   :  { %v1245_v17 = vpack.c.bf16 %v1241_v43, %v1241_v43 }
 0x548   :  { %v1277_v5 = vunpack.c.l.b16 %v1245_v17 }
 0x54a   :  { %v1405_v11 = vpop.permute.xlu0 %1404 }
 0x54b   :  { %1417 = vmatpush.bf16.msra.mxu1 %v1405_v11 }
 0x54c   :  { %1361 = vmax.xlane.f32.xlu1 %v1360_v26  ;;  %1501 = vmax.xlane.f32.xlu2 %v1500_v42 }
 0x565   :  { %1429 = vrot.lane.b32.xlu1 %v5238_v59, %s4554_s30 }
 0x575   :  { %v1234_v52 = vpop.xlane.xlu0 %1233 }
 0x576   :  { %4357 = vrcp.f32 %v1234_v52 }
 0x57c   :  { %v4358_v3 = vpop.eup %4357 }
 0x57d   :  { %v1242_v60 = vmul.f32 %v4358_v3, %v4350_v49  ;;  %v1499_v19 = vpop.xlane.xlu0 %1498 }
 0x57e   :  { %v1509_v20 = vsub.f32 %v1468_v41, %v1499_v19 }
 0x57f   :  { %v1246_v58 = vpack.c.bf16 %v1242_v60, %v1242_v60 }
 0x580   :  { %v1513_v62 = vmul.f32 1.442695, %v1509_v20 }
 0x581   :  { %v1278_v9 = vunpack.c.l.b16 %v1246_v58 }
 0x582   :  { %4359 = vpow2.f32 %v1513_v62 }
 0x583   :  { %v1279_v14 = vpack.c.b16 %v1278_v9, %v1277_v5 }
 0x585   :  { %3871 = vmatmul.msk.bf16.vlgmr.msrb.gmra.mxu1 %vm1148_vm12, %v1279_v14 }
 0x588   :  { %v5302_v38 = vpop.eup %4359 }
 0x589   :  { %v1521_v21 = vsel %vm1148_vm12, %v5302_v38, 0.0 }
 0x58a   :  { %1522 = vadd.xlane.f32.xlu0 %v1521_v21 }
 0x59e   :  { %1619 = vrot.lane.b32.xlu0 %v5243_v8, %s6003_s0 }
 0x5af   :  { %v1377_v47 = vpop.xlane.xlu2 %1376 }
 0x5b0   :  { %4361 = vrcp.f32 %v1377_v47 }
 0x5b6   :  { %v4362_v32 = vpop.eup %4361 }
 0x5b7   :  { %v1380_v23 = vpop.xlane.xlu1 %1379  ;;  %v1359_v29 = vpop.xlane.xlu2 %1358  ;;  %v1391_v46 = vmul.f32 %v4362_v32, %v4352_v40 }
 0x5b8   :  { %4363 = vrcp.f32 %v1380_v23  ;;  %v1365_v36 = vsub.f32 %v5281_v22, %v1359_v29 }
 0x5b9   :  { %v1395_v50 = vpack.c.bf16 %v1391_v46, %v1391_v46 }
 0x5ba   :  { %v1371_v6 = vmul.f32 1.442695, %v1365_v36 }
 0x5bb   :  { %v1401_v49 = vunpack.c.l.b16 %v1395_v50 }
 0x5bc   :  { %4365 = vpow2.f32 %v1371_v6 }
 0x5be   :  { %v4364_v37 = vpop.eup %4363 }
 0x5bf   :  { %v1392_v0 = vmul.f32 %v4364_v37, %v4354_v1  ;;  %v1362_v12 = vpop.xlane.xlu1 %1361 }
 0x5c0   :  { %v1366_v10 = vsub.f32 %v5283_v44, %v1362_v12  ;;  %v1502_v44 = vpop.xlane.xlu2 %1501 }
 0x5c1   :  { %v1396_v33 = vpack.c.bf16 %v1392_v0, %v1392_v0  ;;  %v1510_v53 = vsub.f32 %v5293_v63, %v1502_v44  ;;  %v1474_v63 = vpop.permute.xlu0 %1473 }
 0x5c2   :  { %v4366_v27 = vpop.eup %4365  ;;  %v1373_v8 = vmul.f32 1.442695, %v1366_v10 }
 0x5c3   :  { %v1402_v25 = vunpack.c.l.b16 %v1396_v33  ;;  %v1381_v41 = vsel %vm1148_vm12, %v4366_v27, 0.0  ;;  %v1515_v15 = vmul.f32 1.442695, %v1510_v53 }
 0x5c4   :  { %4367 = vpow2.f32 %v1373_v8  ;;  %1382 = vadd.xlane.f32.xlu2 %v1381_v41 }
 0x5c5   :  { %v1403_v54 = vpack.c.b16 %v1402_v25, %v1401_v49  ;;  %4369 = vpow2.f32 %v1515_v15 }
 0x5c7   :  { %3874 = vmatmul.msk.bf16.vlgmr.msra.gmra.mxu1 %vm1148_vm12, %v1403_v54 }
 0x5ca   :  { %v4368_v22 = vpop.eup %4367 }
 0x5cb   :  { %v1384_v2 = vsel %vm1148_vm12, %v4368_v22, 0.0  ;;  %v4370_v7 = vpop.eup %4369 }
 0x5cc   :  { %1385 = vadd.xlane.f32.xlu1 %v1384_v2  ;;  %v1524_v40 = vsel %vm1148_vm12, %v4370_v7, 0.0 }
 0x5d7   :  { %v1430_v16 = vpop.permute.xlu1 %1429 }
 0x5d8   :  { %1442 = vmatpush.bf16.msrb.mxu2 %v1430_v16 }
 0x5dc   :  { %1475 = vrot.lane.b32.xlu2 %v5236_v4, %s6005_s4 }
 0x5e5   :  { %1597 = vrot.lane.b32.xlu1 %v5225_v57, %s6003_s0 }
 0x5ed   :  { %1550 = vrot.lane.b32.xlu1 %v5227_v35, %s6005_s4 }
 0x5f5   :  { %1595 = vrot.lane.b32.xlu1 %v5232_v31, %s6003_s0 }
 0x5fd   :  { %1621 = vrot.lane.b32.xlu1 %v5236_v4, %s6003_s0  ;;  %v1523_v19 = vpop.xlane.xlu0 %1522 }
 0x602   :  { %v5334_v6 = vpop.f32.mrf.mxu1 }
 0x605   :  { %1525 = vadd.xlane.f32.xlu2 %v1524_v40 }
 0x60a   :  { %v5336_v46 = vpop.f32.mrf.mxu1 }
 0x610   :  { %v1620_v36 = vpop.permute.xlu0 %1619 }
 0x637   :  { %v1383_v45 = vpop.xlane.xlu2 %1382 }
 0x638   :  { %4371 = vrcp.f32 %v1383_v45 }
 0x63e   :  { %v4372_v1 = vpop.eup %4371 }
 0x63f   :  { %v1386_v57 = vpop.xlane.xlu1 %1385  ;;  %v1476_v51 = vpop.permute.xlu2 %1475  ;;  %v1393_v30 = vmul.f32 %v4372_v1, %v4366_v27 }
 0x640   :  { %4373 = vrcp.f32 %v1386_v57  ;;  %v1481_v39 = vsel %vm1148_vm12, %v1476_v51, 0 }
 0x641   :  { %1490 = vmatpush.bf16.xpose.msrb.mxu1 %v1481_v39  ;;  %v1397_v11 = vpack.c.bf16 %v1393_v30, %v1393_v30  ;;  %4375 = vrcp.f32 %v1523_v19 }
 0x643   :  { %v1426_v42 = vunpack.c.l.b16 %v1397_v11 }
 0x644   :  { %v1419_v37 = vpop.f32.mrf.mxu1 }
 0x646   :  { %v4374_v31 = vpop.eup %4373 }
 0x647   :  { %v1394_v26 = vmul.f32 %v4374_v31, %v4368_v22  ;;  %v4376_v62 = vpop.eup %4375 }
 0x648   :  { %3877 = vmatmul.msk.bf16.vlgmr.msrb.gmra.mxu1 %vm1148_vm12, %v1474_v63  ;;  %v1537_v5 = vmul.f32 %v4376_v62, %v5302_v38 }
 0x649   :  { %v1398_v4 = vpack.c.bf16 %v1394_v26, %v1394_v26 }
 0x64a   :  { %v1541_v14 = vpack.c.bf16 %v1537_v5, %v1537_v5 }
 0x64b   :  { %v1427_v28 = vunpack.c.l.b16 %v1398_v4 }
 0x64c   :  { %v1547_v23 = vunpack.c.l.b16 %v1541_v14  ;;  %v1421_v50 = vpop.f32.mrf.mxu1 }
 0x64d   :  { %v1428_v52 = vpack.c.b16 %v1427_v28, %v1426_v42  ;;  %v4251_v22 = vpack.i.bf16 %v1421_v50, %v1419_v37 }
 0x64f   :  { %3875 = vmatmul.msk.bf16.vlgmr.msrb.gmra.mxu2 %vm1148_vm12, %v1428_v52 }
 0x657   :  { %v1598_v18 = vpop.permute.xlu1 %1597 }
 0x658   :  { %v1603_v43 = vsel %vm1148_vm12, %v1598_v18, 0 }
 0x659   :  { %1612 = vmatpush.bf16.xpose.msra.mxu1 %v1603_v43 }
 0x65f   :  { %v1551_v3 = vpop.permute.xlu1 %1550 }
 0x660   :  { %1563 = vmatpush.bf16.msra.mxu2 %v1551_v3 }
 0x667   :  { %v1596_v17 = vpop.permute.xlu1 %1595 }
 0x668   :  { %3880 = vmatmul.msk.bf16.vlgmr.msra.gmra.mxu1 %vm1148_vm12, %v1596_v17 }
 0x66f   :  { %v1622_v60 = vpop.permute.xlu1 %1621 }
 0x670   :  { %v1627_v20 = vsel %vm1148_vm12, %v1622_v60, 0 }
 0x671   :  { %1636 = vmatpush.bf16.xpose.msrb.mxu2 %v1627_v20 }
 0x678   :  { %v1526_v58 = vpop.xlane.xlu2 %1525 }
 0x679   :  { %4377 = vrcp.f32 %v1526_v58 }
 0x67f   :  { %v4378_v9 = vpop.eup %4377 }
 0x680   :  { %v1538_v21 = vmul.f32 %v4378_v9, %v4370_v7 }
 0x682   :  { %v1542_v47 = vpack.c.bf16 %v1538_v21, %v1538_v21 }
 0x684   :  { %v1548_v29 = vunpack.c.l.b16 %v1542_v47 }
 0x686   :  { %v1549_v32 = vpack.c.b16 %v1548_v29, %v1547_v23 }
 0x688   :  { %3878 = vmatmul.msk.bf16.vlgmr.msra.gmra.mxu2 %vm1148_vm12, %v1549_v32 }
 0x698   :  { %3881 = vmatmul.msk.bf16.vlgmr.msrb.gmra.mxu2 %vm1148_vm12, %v1620_v36 }
 0x6c5   :  { %v1492_v0 = vpop.f32.mrf.mxu1 }
 0x6c6   :  { %v1503_v38 = vsel %vm1148_vm12, %v1492_v0, -inf }
 0x6c7   :  { %1504 = vmax.xlane.f32.xlu1 %v1503_v38 }
 0x6cd   :  { %v1494_v12 = vpop.f32.mrf.mxu1 }
 0x6ce   :  { %v1506_v10 = vsel %vm1148_vm12, %v1494_v12, -inf }
 0x6cf   :  { %1507 = vmax.xlane.f32.xlu2 %v1506_v10 }
 0x6d2   :  { %v5340_v33 = vpop.f32.mrf.mxu2 }
 0x6da   :  { %v5342_v27 = vpop.f32.mrf.mxu2 }
 0x6db   :  { %v4266_v8 = vpack.i.bf16 %v5342_v27, %v5340_v33 }
 0x6e5   :  { %v1614_v49 = vpop.f32.mrf.mxu1 }
 0x6e6   :  { %v1643_v25 = vsel %vm1148_vm12, %v1614_v49, -inf }
 0x6e7   :  { %1644 = vmax.xlane.f32.xlu2 %v1643_v25 }
 0x6ed   :  { %v1616_v41 = vpop.f32.mrf.mxu1 }
 0x6ee   :  { %v1646_v54 = vsel %vm1148_vm12, %v1616_v41, -inf }
 0x6ef   :  { %1647 = vmax.xlane.f32.xlu0 %v1646_v54 }
 0x703   :  { %1696 = vrot.lane.b32.xlu0 %v5227_v35, %s6003_s0 }
 0x70b   :  { %4252 = vrot.lane.b32.xlu0 %v4251_v22, %s6001_s23  ;;  %v1565_v2 = vpop.f32.mrf.mxu2 }
 0x713   :  { %v1567_v16 = vpop.f32.mrf.mxu2 }
 0x714   :  { %v4256_v44 = vpack.i.bf16 %v1567_v16, %v1565_v2 }
 0x716   :  { %4257 = vrot.lane.b32.xlu0 %v4256_v44, %s6009_s1 }
 0x71b   :  { %v1638_v1 = vpop.f32.mrf.mxu2 }
 0x71c   :  { %v1649_v30 = vsel %vm1148_vm12, %v1638_v1, -inf }
 0x723   :  { %v1640_v63 = vpop.f32.mrf.mxu2 }
 0x724   :  { %v1652_v11 = vsel %vm1148_vm12, %v1640_v63, -inf }
 0x73a   :  { %v1505_v53 = vpop.xlane.xlu1 %1504 }
 0x73b   :  { %v1511_v15 = vsub.f32 %v1492_v0, %v1505_v53 }
 0x73d   :  { %v1517_v7 = vmul.f32 1.442695, %v1511_v15 }
 0x73f   :  { %4379 = vpow2.f32 %v1517_v7 }
 0x742   :  { %v1508_v40 = vpop.xlane.xlu2 %1507 }
 0x743   :  { %v1512_v45 = vsub.f32 %v1494_v12, %v1508_v40 }
 0x745   :  { %v4380_v57 = vpop.eup %4379  ;;  %v1519_v51 = vmul.f32 1.442695, %v1512_v45 }
 0x746   :  { %v1527_v35 = vsel %vm1148_vm12, %v4380_v57, 0.0 }
 0x747   :  { %4381 = vpow2.f32 %v1519_v51  ;;  %1528 = vadd.xlane.f32.xlu2 %v1527_v35 }
 0x74d   :  { %v4382_v39 = vpop.eup %4381 }
 0x74e   :  { %v1530_v31 = vsel %vm1148_vm12, %v4382_v39, 0.0 }
 0x74f   :  { %1650 = vmax.xlane.f32.xlu2 %v1649_v30  ;;  %1531 = vadd.xlane.f32.xlu1 %v1530_v31 }
 0x757   :  { %1653 = vmax.xlane.f32.xlu2 %v1652_v11 }
 0x75a   :  { %v1645_v26 = vpop.xlane.xlu2 %1644 }
 0x75b   :  { %v1655_v4 = vsub.f32 %v1614_v49, %v1645_v26 }
 0x75d   :  { %v1659_v42 = vmul.f32 1.442695, %v1655_v4 }
 0x75f   :  { %4383 = vpow2.f32 %v1659_v42 }
 0x762   :  { %v1648_v28 = vpop.xlane.xlu0 %1647 }
 0x763   :  { %v1656_v52 = vsub.f32 %v1616_v41, %v1648_v28 }
 0x765   :  { %v4384_v18 = vpop.eup %4383  ;;  %v1661_v43 = vmul.f32 1.442695, %v1656_v52 }
 0x766   :  { %v1667_v3 = vsel %vm1148_vm12, %v4384_v18, 0.0 }
 0x767   :  { %4385 = vpow2.f32 %v1661_v43  ;;  %1668 = vadd.xlane.f32.xlu1 %v1667_v3  ;;  %v4195_v3 = vld [vmem:[%s5979_s8 + $0x18] sm:$0xff] }
 0x768   :  { %1850 = vmatpush.bf16.msra.mxu2 %v4195_v3 }
 0x76d   :  { %v4386_v17 = vpop.eup %4385 }
 0x76e   :  { %v1670_v60 = vsel %vm1148_vm12, %v4386_v17, 0.0 }
 0x76f   :  { %1575 = vrot.lane.b32.xlu2 %v5238_v59, %s6005_s4  ;;  %1671 = vadd.xlane.f32.xlu1 %v1670_v60  ;;  %v4193_v60 = vld [vmem:[%s5979_s8 + $0x8] sm:$0xff]  ;;  %s6029_s4 = smov 48  }
 0x775   :  { %v1697_v49 = vpop.permute.xlu0 %1696 }
 0x7ba   :  { %v1529_v19 = vpop.xlane.xlu2 %1528 }
 0x7bb   :  { %4387 = vrcp.f32 %v1529_v19  ;;  %v4192_v19 = vld [vmem:[%s5979_s8] sm:$0xff] }
 0x7c1   :  { %v4388_v9 = vpop.eup %4387 }
 0x7c2   :  { %v1532_v20 = vpop.xlane.xlu1 %1531  ;;  %v1651_v58 = vpop.xlane.xlu2 %1650  ;;  %v1539_v21 = vmul.f32 %v4388_v9, %v4380_v57 }
 0x7c3   :  { %4389 = vrcp.f32 %v1532_v20  ;;  %v1657_v62 = vsub.f32 %v1638_v1, %v1651_v58  ;;  %v4253_v58 = vpop.permute.xlu0 %4252 }
 0x7c4   :  { %v1543_v50 = vpack.c.bf16 %v1539_v21, %v1539_v21  ;;  %v4254_v21 = vunpack.i.l.bf16 %v4253_v58 }
 0x7c5   :  { %v1663_v5 = vmul.f32 1.442695, %v1657_v62 }
 0x7c6   :  { %v1572_v12 = vunpack.c.l.b16 %v1543_v50 }
 0x7c7   :  { %4391 = vpow2.f32 %v1663_v5 }
 0x7c9   :  { %v4390_v14 = vpop.eup %4389 }
 0x7ca   :  { %v1540_v47 = vmul.f32 %v4390_v14, %v4382_v39  ;;  %v1654_v23 = vpop.xlane.xlu2 %1653  ;;  %v4255_v14 = vunpack.i.h.bf16 %v4253_v58 }
 0x7cb   :  { %v1658_v29 = vsub.f32 %v1640_v63, %v1654_v23  ;;  %v4258_v9 = vpop.permute.xlu0 %4257 }
 0x7cc   :  { %v1544_v32 = vpack.c.bf16 %v1540_v47, %v1540_v47  ;;  %v4260_v47 = vunpack.i.h.bf16 %v4258_v9  ;;  %v4259_v23 = vunpack.i.l.bf16 %v4258_v9 }
 0x7cd   :  { %v4392_v36 = vpop.eup %4391  ;;  %v1665_v37 = vmul.f32 1.442695, %v1658_v29 }
 0x7ce   :  { %v1673_v0 = vsel %vm1148_vm12, %v4392_v36, 0.0  ;;  %v1573_v38 = vunpack.c.l.b16 %v1544_v32  ;;  %v1790_v32 = vsel %vm1148_vm12, %v5279_v61, %v4255_v14 }
 0x7cf   :  { %4393 = vpow2.f32 %v1665_v37  ;;  %1674 = vadd.xlane.f32.xlu1 %v1673_v0  ;;  %v1794_v0 = vsel %vm146_vm0, %v1790_v32, %v4260_v47 }
 0x7d0   :  { %v1574_v25 = vpack.c.b16 %v1573_v38, %v1572_v12 }
 0x7d2   :  { %v1576_v10 = vpop.permute.xlu2 %1575 }
 0x7d3   :  { %1588 = vmatpush.bf16.msra.mxu3 %v1576_v10 }
 0x7d5   :  { %v4394_v41 = vpop.eup %4393 }
 0x7d6   :  { %3879 = vmatmul.msk.bf16.vlgmr.msra.gmra.mxu3 %vm1148_vm12, %v1574_v25  ;;  %v1676_v54 = vsel %vm1148_vm12, %v4394_v41, 0.0 }
 0x7d7   :  { %1709 = vmatpush.bf16.msrb.mxu3 %v1697_v49  ;;  %1677 = vadd.xlane.f32.xlu2 %v1676_v54 }
 0x7da   :  { %v1669_v22 = vpop.xlane.xlu1 %1668 }
 0x7db   :  { %4395 = vrcp.f32 %v1669_v22 }
 0x7e1   :  { %v4396_v16 = vpop.eup %4395 }
 0x7e2   :  { %v1672_v2 = vpop.xlane.xlu1 %1671  ;;  %v1683_v44 = vmul.f32 %v4396_v16, %v4384_v18 }
 0x7e3   :  { %4397 = vrcp.f32 %v1672_v2 }
 0x7e4   :  { %v1687_v15 = vpack.c.bf16 %v1683_v44, %v1683_v44 }
 0x7e6   :  { %v1693_v45 = vunpack.c.l.b16 %v1687_v15 }
 0x7e8   :  { %1721 = vrot.lane.b32.xlu1 %v5238_v59, %s6003_s0 }
 0x7e9   :  { %v4398_v53 = vpop.eup %4397 }
 0x7ea   :  { %v1684_v7 = vmul.f32 %v4398_v53, %v4386_v17  ;;  %v4194_v17 = vld [vmem:[%s5979_s8 + $0x10] sm:$0xff] }
 0x7eb   :  { %1851 = vmatpush.bf16.msra.mxu2 %v4194_v17 }
 0x7ec   :  { %v1688_v40 = vpack.c.bf16 %v1684_v7, %v1684_v7 }
 0x7ee   :  { %v1694_v57 = vunpack.c.l.b16 %v1688_v40 }
 0x7ef   :  { %1852 = vmatpush.bf16.msra.mxu2 %v4193_v60 }
 0x7f0   :  { %v1695_v51 = vpack.c.b16 %v1694_v57, %v1693_v45  ;;  %4267 = vrot.lane.b32.xlu1 %v4266_v8, %s6001_s23 }
 0x7f2   :  { %3882 = vmatmul.msk.bf16.vlgmr.msrb.gmra.mxu3 %vm1148_vm12, %v1695_v51 }
 0x7f3   :  { %1853 = vmatpush.bf16.msra.mxu2 %v4192_v19 }
 0x842   :  { %v1675_v35 = vpop.xlane.xlu1 %1674 }
 0x843   :  { %4399 = vrcp.f32 %v1675_v35 }
 0x849   :  { %v4400_v39 = vpop.eup %4399 }
 0x84a   :  { %v1678_v1 = vpop.xlane.xlu2 %1677  ;;  %v1685_v30 = vmul.f32 %v4400_v39, %v4392_v36  ;;  %v1789_v36 = vsel %vm1148_vm12, %v5277_v24, %v4254_v21 }
 0x84b   :  { %4401 = vrcp.f32 %v1678_v1  ;;  %v1793_v38 = vsel %vm146_vm0, %v1789_v36, %v4259_v23 }
 0x84c   :  { %v1689_v11 = vpack.c.bf16 %v1685_v30, %v1685_v30 }
 0x84e   :  { %v1718_v4 = vunpack.c.l.b16 %v1689_v11 }
 0x851   :  { %v4402_v59 = vpop.eup %4401 }
 0x852   :  { %v1686_v31 = vmul.f32 %v4402_v59, %v4394_v41 }
 0x854   :  { %v1690_v63 = vpack.c.bf16 %v1686_v31, %v1686_v31 }
 0x856   :  { %v1719_v26 = vunpack.c.l.b16 %v1690_v63 }
 0x858   :  { %v1720_v28 = vpack.c.b16 %v1719_v26, %v1718_v4 }
 0x859   :  { %v1590_v33 = vpop.f32.mrf.mxu3 }
 0x85a   :  { %v1722_v42 = vpop.permute.xlu1 %1721 }
 0x85b   :  { %1734 = vmatpush.bf16.msrb.mxu1 %v1722_v42 }
 0x85e   :  { %3883 = vmatmul.msk.bf16.vlgmr.msrb.gmra.mxu1 %vm1148_vm12, %v1720_v28 }
 0x861   :  { %v1592_v27 = vpop.f32.mrf.mxu3 }
 0x862   :  { %v4271_v43 = vpack.i.bf16 %v1592_v27, %v1590_v33  ;;  %v4268_v25 = vpop.permute.xlu1 %4267 }
 0x863   :  { %v4270_v54 = vunpack.i.h.bf16 %v4268_v25  ;;  %v4269_v61 = vunpack.i.l.bf16 %v4268_v25 }
 0x865   :  { %v1792_v16 = vsel %vm1148_vm12, %v5336_v46, %v4270_v54  ;;  %v1791_v44 = vsel %vm1148_vm12, %v5334_v6, %v4269_v61  ;;  %v4313_v46 = vld [vmem:[%s5980_s9] ss:$0 sm:$0xff] }
 0x875   :  { %v1711_v8 = vpop.f32.mrf.mxu3 }
 0x87d   :  { %v1713_v52 = vpop.f32.mrf.mxu3 }
 0x87e   :  { %v4261_v18 = vpack.i.bf16 %v1713_v52, %v1711_v8 }
 0x880   :  { %4262 = vrot.lane.b32.xlu0 %v4261_v18, %s6007_s5 }
 0x888   :  { %4272 = vrot.lane.b32.xlu0 %v4271_v43, %s6009_s1 }
 0x8db   :  { %v1736_v20 = vpop.f32.mrf.mxu1 }
 0x8e3   :  { %v1738_v62 = vpop.f32.mrf.mxu1 }
 0x8e4   :  { %v4276_v5 = vpack.i.bf16 %v1738_v62, %v1736_v20 }
 0x8e6   :  { %4277 = vrot.lane.b32.xlu1 %v4276_v5, %s6007_s5 }
 0x8f2   :  { %v4263_v29 = vpop.permute.xlu0 %4262 }
 0x8f3   :  { %v4265_v37 = vunpack.i.h.bf16 %v4263_v29  ;;  %v4264_v50 = vunpack.i.l.bf16 %v4263_v29 }
 0x8f5   :  { %v1799_v12 = vsel %vm1797_vm13, %v1794_v0, %v4265_v37  ;;  %v1798_v10 = vsel %vm1797_vm13, %v1793_v38, %v4264_v50  ;;  %v4199_v37 = vld [vmem:[%s5983_s12 + $0x18] sm:$0xff]  ;;  %v4198_v50 = vld [vmem:[%s5983_s12 + $0x10] sm:$0xff] }
 0x8f6   :  { %v1802_v49 = vpack.c.bf16 %v1799_v12, %v1798_v10  ;;  %2021 = vmatpush.bf16.msra.mxu3 %v4199_v37  ;;  %v4197_v12 = vld [vmem:[%s5983_s12 + $0x8] sm:$0xff] }
 0x8f7   :  { %v4201_v37 = vld [vmem:[%s5985_s14 + $0x8] sm:$0xff] }
 0x8f8   :  { %3900 = vmatmul.msk.bf16.vlgmr.msra.gmra.mxu2 %vm265_vm5, %v1802_v49 }
 0x8fa   :  { %v4273_v41 = vpop.permute.xlu0 %4272  ;;  %2022 = vmatpush.bf16.msra.mxu3 %v4198_v50  ;;  %v4200_v50 = vld [vmem:[%s5985_s14] sm:$0xff] }
 0x8fb   :  { %v4275_v22 = vunpack.i.h.bf16 %v4273_v41  ;;  %v4274_v2 = vunpack.i.l.bf16 %v4273_v41  ;;  %v4196_v41 = vld [vmem:[%s5983_s12] sm:$0xff] }
 0x8fd   :  { %v1796_v7 = vsel %vm146_vm0, %v1792_v16, %v4275_v22  ;;  %v1795_v40 = vsel %vm146_vm0, %v1791_v44, %v4274_v2 }
 0x8fe   :  { %2023 = vmatpush.bf16.msra.mxu3 %v4197_v12 }
 0x902   :  { %2024 = vmatpush.bf16.msra.mxu3 %v4196_v41 }
 0x958   :  { %v4278_v24 = vpop.permute.xlu1 %4277 }
 0x959   :  { %v4280_v53 = vunpack.i.h.bf16 %v4278_v24  ;;  %v4279_v15 = vunpack.i.l.bf16 %v4278_v24 }
 0x95b   :  { %v1800_v45 = vsel %vm1797_vm13, %v1795_v40, %v4279_v15  ;;  %v1801_v57 = vsel %vm1797_vm13, %v1796_v7, %v4280_v53  ;;  %v4314_v40 = vld [vmem:[%s5981_s10] ss:$0 sm:$0xff] }
 0x95c   :  { %v1803_v51 = vpack.c.bf16 %v1801_v57, %v1800_v45 }
 0x95e   :  { %3901 = vmatmul.msk.bf16.gmra.mxu2 %vm265_vm5, %v1803_v51 }
 0x97b   :  { %v1855_v35 = vpop.f32.mrf.mxu2 }
 0x97c   :  { %v1856_v1 = vadd.f32 %v4313_v46, %v1855_v35 }
 0x97e   :  { %v1865_v6 = vadd.f32 %v1856_v1, %v4893_v56 }
 0x980   :  { %v1871_v39 = vsel %vm265_vm5, %v1865_v6, 0.0 }
 0x981   :  { %1872 = vadd.xlane.f32.xlu2 %v1871_v39 }
 0x983   :  { %v1857_v59 = vpop.f32.mrf.mxu2 }
 0x984   :  { %v1858_v30 = vadd.f32 %v4313_v46, %v1857_v59 }
 0x986   :  { %v1866_v31 = vadd.f32 %v1858_v30, %v5005_v13 }
 0x988   :  { %v1874_v63 = vsel %vm265_vm5, %v1866_v31, 0.0 }
 0x989   :  { %1875 = vadd.xlane.f32.xlu0 %v1874_v63 }
 0x9e1   :  { %v1860_v11 = vpop.f32.mrf.mxu2 }
 0x9e2   :  { %v1861_v26 = vadd.f32 %v4313_v46, %v1860_v11 }
 0x9e4   :  { %v1867_v4 = vadd.f32 %v1861_v26, %v5124_v55 }
 0x9e6   :  { %v1877_v42 = vsel %vm265_vm5, %v1867_v4, 0.0 }
 0x9e7   :  { %1878 = vadd.xlane.f32.xlu1 %v1877_v42 }
 0x9e9   :  { %v1862_v28 = vpop.f32.mrf.mxu2 }
 0x9ea   :  { %v1863_v33 = vadd.f32 %v4313_v46, %v1862_v28  ;;  %v4315_v46 = vld [vmem:[%s5982_s11] ss:$0 sm:$0xff] }
 0x9ec   :  { %v1868_v56 = vadd.f32 %v1863_v33, %v5135_v48  ;;  %v4205_v33 = vld [vmem:[%s5985_s14 + $0x28] sm:$0xff] }
 0x9ee   :  { %v1880_v27 = vsel %vm265_vm5, %v1868_v56, 0.0 }
 0x9ef   :  { %1881 = vadd.xlane.f32.xlu2 %v1880_v27 }
 0x9f4   :  { %v1873_v8 = vpop.xlane.xlu2 %1872 }
 0x9f5   :  { %v1883_v13 = vmul.f32 %v1873_v8, %v5139_v34 }
 0x9f7   :  { %v1887_v52 = vsub.f32 %v1865_v6, %v1883_v13 }
 0x9f9   :  { %v1891_v18 = vmul.f32 %v1887_v52, %v1887_v52 }
 0x9fb   :  { %v1895_v43 = vsel %vm265_vm5, %v1891_v18, 0.0 }
 0x9fc   :  { %v1876_v3 = vpop.xlane.xlu0 %1875  ;;  %1896 = vadd.xlane.f32.xlu2 %v1895_v43 }
 0x9fd   :  { %v1884_v55 = vmul.f32 %v1876_v3, %v5139_v34 }
 0x9ff   :  { %v1888_v17 = vsub.f32 %v1866_v31, %v1884_v55  ;;  %v4207_v31 = vld [vmem:[%s5985_s14 + $0x38] sm:$0xff] }
 0xa00   :  { %2142 = vmatpush.bf16.msrb.mxu0 %v4207_v31 }
 0xa01   :  { %v1892_v60 = vmul.f32 %v1888_v17, %v1888_v17 }
 0xa03   :  { %v1898_v19 = vsel %vm265_vm5, %v1892_v60, 0.0 }
 0xa04   :  { %1899 = vadd.xlane.f32.xlu2 %v1898_v19 }
 0xa5a   :  { %v1879_v48 = vpop.xlane.xlu1 %1878 }
 0xa5b   :  { %v1885_v20 = vmul.f32 %v1879_v48, %v5139_v34 }
 0xa5d   :  { %v5420_v58 = vsub.f32 %v1867_v4, %v1885_v20  ;;  %v4206_v4 = vld [vmem:[%s5985_s14 + $0x30] sm:$0xff] }
 0xa5e   :  { %2143 = vmatpush.bf16.msrb.mxu0 %v4206_v4 }
 0xa5f   :  { %v1893_v62 = vmul.f32 %v5420_v58, %v5420_v58 }
 0xa61   :  { %v1901_v5 = vsel %vm265_vm5, %v1893_v62, 0.0 }
 0xa62   :  { %1902 = vadd.xlane.f32.xlu2 %v1901_v5  ;;  %v1882_v9 = vpop.xlane.xlu2 %1881  ;;  %2144 = vmatpush.bf16.msrb.mxu0 %v4205_v33 }
 0xa63   :  { %v1886_v14 = vmul.f32 %v1882_v9, %v5139_v34 }
 0xa65   :  { %v5426_v21 = vsub.f32 %v1868_v56, %v1886_v14 }
 0xa67   :  { %v1894_v47 = vmul.f32 %v5426_v21, %v5426_v21 }
 0xa69   :  { %v1904_v23 = vsel %vm265_vm5, %v1894_v47, 0.0 }
 0xa6a   :  { %1905 = vadd.xlane.f32.xlu2 %v1904_v23 }
 0xa6f   :  { %v1897_v29 = vpop.xlane.xlu2 %1896 }
 0xa70   :  { %v1907_v32 = vmul.f32 %v1897_v29, %v5139_v34 }
 0xa72   :  { %v1911_v36 = vadd.f32 1e-05, %v1907_v32 }
 0xa74   :  { %4403 = vrsqrt.f32 %v1911_v36  ;;  %vm1921_vm15 = vweird.f32 %v1911_v36 }
 0xa77   :  { %v1900_v0 = vpop.xlane.xlu2 %1899 }
 0xa78   :  { %v1908_v38 = vmul.f32 %v1900_v0, %v5139_v34  ;;  %v4316_v0 = vld [vmem:[%s5984_s13] ss:$0 sm:$0xff] }
 0xa7a   :  { %v4404_v10 = vpop.eup %4403  ;;  %v1912_v49 = vadd.f32 1e-05, %v1908_v38 }
 0xa7b   :  { %v1916_v25 = vmul.f32 %v4404_v10, %v1911_v36  ;;  %vm1922_vm14 = vweird.f32 %v4404_v10  ;;  %v4202_v36 = vld [vmem:[%s5985_s14 + $0x10] sm:$0xff] }
 0xa7c   :  { %4405 = vrsqrt.f32 %v1912_v49  ;;  %vm1923_vm1 = vmor %vm1921_vm15, %vm1922_vm14  ;;  %vm1931_vm3 = vweird.f32 %v1912_v49 }
 0xa7d   :  { %v1917_v54 = vmul.f32 %v4404_v10, %v1916_v25 }
 0xa7f   :  { %v1918_v61 = vmul.f32 0.5, %v1917_v54 }
 0xa81   :  { %v1919_v22 = vsub.f32 1.5, %v1918_v61 }
 0xa82   :  { %v4406_v2 = vpop.eup %4405 }
 0xa83   :  { %v1920_v24 = vmul.f32 %v4404_v10, %v1919_v22  ;;  %v1926_v16 = vmul.f32 %v4406_v2, %v1912_v49  ;;  %vm1932_vm2 = vweird.f32 %v4406_v2 }
 0xa84   :  { %vm1933_vm4 = vmor %vm1931_vm3, %vm1932_vm2 }
 0xa85   :  { %v1927_v44 = vmul.f32 %v4406_v2, %v1926_v16  ;;  %v1924_v53 = vsel %vm1923_vm1, %v4404_v10, %v1920_v24 }
 0xa86   :  { %v1955_v45 = vmul.f32 %v1924_v53, %v1887_v52 }
 0xa87   :  { %v1928_v15 = vmul.f32 0.5, %v1927_v44 }
 0xa88   :  { %v1962_v35 = vmul.f32 %v4314_v40, %v1955_v45 }
 0xa89   :  { %v1929_v7 = vsub.f32 1.5, %v1928_v15 }
 0xa8a   :  { %v5451_v39 = vadd.f32 %v4315_v46, %v1962_v35 }
 0xa8b   :  { %v1930_v57 = vmul.f32 %v4406_v2, %v1929_v7 }
 0xa8d   :  { %v1934_v51 = vsel %vm1933_vm4, %v4406_v2, %v1930_v57 }
 0xa8e   :  { %v1956_v1 = vmul.f32 %v1934_v51, %v1888_v17 }
 0xa90   :  { %v1963_v6 = vmul.f32 %v4314_v40, %v1956_v1 }
 0xa92   :  { %v5453_v59 = vadd.f32 %v4315_v46, %v1963_v6 }
 0xa94   :  { %v1973_v30 = vpack.c.bf16 %v5453_v59, %v5451_v39 }
 0xa96   :  { %3918 = vmatmul.msk.bf16.vlgmr.msra.gmra.mxu3 %vm265_vm5, %v1973_v30 }
 0xad5   :  { %v1903_v63 = vpop.xlane.xlu2 %1902 }
 0xad6   :  { %v1909_v11 = vmul.f32 %v1903_v63, %v5139_v34 }
 0xad8   :  { %v1913_v26 = vadd.f32 1e-05, %v1909_v11 }
 0xada   :  { %4407 = vrsqrt.f32 %v1913_v26  ;;  %vm1941_vm7 = vweird.f32 %v1913_v26 }
 0xadd   :  { %v1906_v42 = vpop.xlane.xlu2 %1905 }
 0xade   :  { %v1910_v28 = vmul.f32 %v1906_v42, %v5139_v34 }
 0xae0   :  { %v4408_v56 = vpop.eup %4407  ;;  %v1914_v27 = vadd.f32 1e-05, %v1910_v28 }
 0xae1   :  { %v1936_v8 = vmul.f32 %v4408_v56, %v1913_v26  ;;  %vm1942_vm6 = vweird.f32 %v4408_v56 }
 0xae2   :  { %4409 = vrsqrt.f32 %v1914_v27  ;;  %vm1943_vm8 = vmor %vm1941_vm7, %vm1942_vm6  ;;  %vm1951_vm10 = vweird.f32 %v1914_v27 }
 0xae3   :  { %v1937_v13 = vmul.f32 %v4408_v56, %v1936_v8 }
 0xae5   :  { %v1938_v52 = vmul.f32 0.5, %v1937_v13 }
 0xae7   :  { %v1939_v18 = vsub.f32 1.5, %v1938_v52 }
 0xae8   :  { %v4410_v43 = vpop.eup %4409 }
 0xae9   :  { %v1940_v3 = vmul.f32 %v4408_v56, %v1939_v18  ;;  %v1946_v55 = vmul.f32 %v4410_v43, %v1914_v27  ;;  %vm1952_vm9 = vweird.f32 %v4410_v43 }
 0xaea   :  { %vm1953_vm11 = vmor %vm1951_vm10, %vm1952_vm9 }
 0xaeb   :  { %v1947_v17 = vmul.f32 %v4410_v43, %v1946_v55  ;;  %v1944_v60 = vsel %vm1943_vm8, %v4408_v56, %v1940_v3 }
 0xaec   :  { %v1957_v20 = vmul.f32 %v1944_v60, %v5420_v58  ;;  %v4204_v58 = vld [vmem:[%s5985_s14 + $0x20] sm:$0xff] }
 0xaed   :  { %v1948_v19 = vmul.f32 0.5, %v1947_v17  ;;  %2145 = vmatpush.bf16.msrb.mxu0 %v4204_v58 }
 0xaee   :  { %v1964_v14 = vmul.f32 %v4314_v40, %v1957_v20  ;;  %v4317_v20 = vld [vmem:[%s5986_s15] ss:$0 sm:$0xff] }
 0xaef   :  { %v1949_v48 = vsub.f32 1.5, %v1948_v19 }
 0xaf0   :  { %v5471_v23 = vadd.f32 %v4315_v46, %v1964_v14 }
 0xaf1   :  { %v1950_v62 = vmul.f32 %v4410_v43, %v1949_v48 }
 0xaf3   :  { %v1954_v5 = vsel %vm1953_vm11, %v4410_v43, %v1950_v62 }
 0xaf4   :  { %v1958_v9 = vmul.f32 %v1954_v5, %v5426_v21  ;;  %v4203_v21 = vld [vmem:[%s5985_s14 + $0x18] sm:$0xff] }
 0xaf5   :  { %2146 = vmatpush.bf16.msrb.mxu0 %v4203_v21 }
 0xaf6   :  { %v1965_v47 = vmul.f32 %v4314_v40, %v1958_v9 }
 0xaf8   :  { %v5473_v29 = vadd.f32 %v4315_v46, %v1965_v47 }
 0xaf9   :  { %2147 = vmatpush.bf16.msrb.mxu0 %v4202_v36 }
 0xafa   :  { %v1974_v32 = vpack.c.bf16 %v5473_v29, %v5471_v23 }
 0xafc   :  { %3919 = vmatmul.msk.bf16.gmra.mxu3 %vm265_vm5, %v1974_v32 }
 0xafd   :  { %2148 = vmatpush.bf16.msrb.mxu0 %v4201_v37 }
 0xb01   :  { %2149 = vmatpush.bf16.msrb.mxu0 %v4200_v50 }
 0xb19   :  { %v2026_v38 = vpop.f32.mrf.mxu3 }
 0xb1a   :  { %v2027_v12 = vadd.f32 %v4316_v0, %v2026_v38 }
 0xb1c   :  { %v2040_v10 = vmul.f32 0.044715, %v2027_v12  ;;  %v2036_v45 = vmul.f32 0.5, %v2027_v12 }
 0xb1e   :  { %v2044_v49 = vmul.f32 %v2040_v10, %v2027_v12 }
 0xb20   :  { %v2048_v25 = vmul.f32 %v2044_v49, %v2027_v12 }
 0xb21   :  { %v2028_v41 = vpop.f32.mrf.mxu3 }
 0xb22   :  { %v2029_v54 = vadd.f32 %v4316_v0, %v2028_v41  ;;  %v2052_v61 = vadd.f32 %v2048_v25, %v2027_v12 }
 0xb24   :  { %v2041_v22 = vmul.f32 0.044715, %v2029_v54  ;;  %v2056_v24 = vmul.f32 0.7978846, %v2052_v61  ;;  %v2037_v57 = vmul.f32 0.5, %v2029_v54 }
 0xb26   :  { %v2045_v2 = vmul.f32 %v2041_v22, %v2029_v54  ;;  %4411 = vtanh.f32 %v2056_v24 }
 0xb28   :  { %v2049_v16 = vmul.f32 %v2045_v2, %v2029_v54 }
 0xb2a   :  { %v2053_v44 = vadd.f32 %v2049_v16, %v2029_v54 }
 0xb2c   :  { %v2057_v53 = vmul.f32 0.7978846, %v2053_v44  ;;  %v4412_v15 = vpop.eup %4411 }
 0xb2d   :  { %v2064_v7 = vadd.f32 1.0, %v4412_v15 }
 0xb2e   :  { %4413 = vtanh.f32 %v2057_v53 }
 0xb2f   :  { %v2068_v46 = vmul.f32 %v2064_v7, %v2036_v45 }
 0xb34   :  { %v4414_v40 = vpop.eup %4413 }
 0xb35   :  { %v2065_v51 = vadd.f32 1.0, %v4414_v40 }
 0xb37   :  { %v2069_v35 = vmul.f32 %v2065_v51, %v2037_v57 }
 0xb39   :  { %v2072_v1 = vpack.c.bf16 %v2069_v35, %v2068_v46 }
 0xb3b   :  { %2150 = vmatmul.bf16.vlgmr.msrb.gmra.mxu0 %v2072_v1 }
 0xb7f   :  { %v2031_v6 = vpop.f32.mrf.mxu3 }
 0xb80   :  { %v2032_v30 = vadd.f32 %v4316_v0, %v2031_v6  ;;  %v4211_v6 = vld [vmem:[%s6021_s27 + $0x38] sm:$0xff] }
 0xb81   :  { %2316 = vmatpush.bf16.msra.mxu1 %v4211_v6 }
 0xb82   :  { %v2042_v31 = vmul.f32 0.044715, %v2032_v30  ;;  %v2038_v3 = vmul.f32 0.5, %v2032_v30 }
 0xb84   :  { %v2046_v63 = vmul.f32 %v2042_v31, %v2032_v30  ;;  %v4219_v31 = vld [vmem:[%s5978_s7 + $0x38] sm:$0xff] }
 0xb85   :  { %2420 = vmatpush.bf16.msrb.mxu3 %v4219_v31 }
 0xb86   :  { %v2050_v11 = vmul.f32 %v2046_v63, %v2032_v30  ;;  %v4210_v63 = vld [vmem:[%s6021_s27 + $0x30] sm:$0xff] }
 0xb87   :  { %v2033_v26 = vpop.f32.mrf.mxu3  ;;  %2317 = vmatpush.bf16.msra.mxu1 %v4210_v63 }
 0xb88   :  { %v2034_v4 = vadd.f32 %v4316_v0, %v2033_v26  ;;  %v2054_v42 = vadd.f32 %v2050_v11, %v2032_v30  ;;  %v4215_v30 = vld [vmem:[%s6022_s29 + $0x38] sm:$0xff]  ;;  %v4214_v11 = vld [vmem:[%s6022_s29 + $0x30] sm:$0xff] }
 0xb89   :  { %2368 = vmatpush.bf16.msrb.mxu2 %v4215_v30  ;;  %v4218_v26 = vld [vmem:[%s5978_s7 + $0x30] sm:$0xff] }
 0xb8a   :  { %v2043_v28 = vmul.f32 0.044715, %v2034_v4  ;;  %v2058_v56 = vmul.f32 0.7978846, %v2054_v42  ;;  %v2039_v55 = vmul.f32 0.5, %v2034_v4  ;;  %2421 = vmatpush.bf16.msrb.mxu3 %v4218_v26 }
 0xb8c   :  { %v2047_v33 = vmul.f32 %v2043_v28, %v2034_v4  ;;  %4415 = vtanh.f32 %v2058_v56  ;;  %v4209_v28 = vld [vmem:[%s6021_s27 + $0x28] sm:$0xff] }
 0xb8d   :  { %2369 = vmatpush.bf16.msrb.mxu2 %v4214_v11  ;;  %v4217_v56 = vld [vmem:[%s5978_s7 + $0x28] sm:$0xff]  ;;  %2318 = vmatpush.bf16.msra.mxu1 %v4209_v28 }
 0xb8e   :  { %v2051_v27 = vmul.f32 %v2047_v33, %v2034_v4  ;;  %v4213_v33 = vld [vmem:[%s6022_s29 + $0x28] sm:$0xff]  ;;  %2422 = vmatpush.bf16.msrb.mxu3 %v4217_v56 }
 0xb90   :  { %v2055_v8 = vadd.f32 %v2051_v27, %v2034_v4 }
 0xb91   :  { %2370 = vmatpush.bf16.msrb.mxu2 %v4213_v33 }
 0xb92   :  { %v2059_v13 = vmul.f32 0.7978846, %v2055_v8  ;;  %v4416_v52 = vpop.eup %4415 }
 0xb93   :  { %v2066_v18 = vadd.f32 1.0, %v4416_v52  ;;  %v4208_v52 = vld [vmem:[%s6021_s27 + $0x20] sm:$0xff] }
 0xb94   :  { %4417 = vtanh.f32 %v2059_v13  ;;  %2319 = vmatpush.bf16.msra.mxu1 %v4208_v52 }
 0xb95   :  { %v2070_v60 = vmul.f32 %v2066_v18, %v2038_v3  ;;  %v4212_v18 = vld [vmem:[%s6022_s29 + $0x20] sm:$0xff] }
 0xb96   :  { %v4216_v3 = vld [vmem:[%s5978_s7 + $0x20] sm:$0xff]  ;;  %2371 = vmatpush.bf16.msrb.mxu2 %v4212_v18 }
 0xb97   :  { %2423 = vmatpush.bf16.msrb.mxu3 %v4216_v3 }
 0xb9a   :  { %v4418_v43 = vpop.eup %4417 }
 0xb9b   :  { %v2067_v17 = vadd.f32 1.0, %v4418_v43 }
 0xb9d   :  { %v2071_v19 = vmul.f32 %v2067_v17, %v2039_v55 }
 0xb9f   :  { %v2073_v48 = vpack.c.bf16 %v2071_v19, %v2070_v60 }
 0xba1   :  { %2155 = vmatmul.bf16.gmra.mxu0 %v2073_v48 }
 0xbb8   :  { %v2151_v62 = vpop.f32.mrf.mxu0 }
 0xbb9   :  { %v2152_v5 = vadd.f32 %v4317_v20, %v2151_v62 }
 0xbbb   :  { %v5500_v9 = vadd.f32 %v2152_v5, %v5451_v39 }
 0xbbd   :  { %v2169_v14 = vsel %vm265_vm5, %v5500_v9, 0.0 }
 0xbbe   :  { %2170 = vadd.xlane.f32.xlu0 %v2169_v14 }
 0xbc0   :  { %v2153_v47 = vpop.f32.mrf.mxu0 }
 0xbc1   :  { %v2154_v32 = vadd.f32 %v4317_v20, %v2153_v47  ;;  %v4318_v47 = vld [vmem:[%s6023_s26 + $0x1] ss:$0 sm:$0xff]  ;;  %s6025_s26 = smov 96  }
 0xbc3   :  { %v5505_v58 = vadd.f32 %v2154_v32, %v5453_v59 }
 0xbc5   :  { %v2172_v21 = vsel %vm265_vm5, %v5505_v58, 0.0 }
 0xbc6   :  { %2173 = vadd.xlane.f32.xlu1 %v2172_v21 }
 0xc1e   :  { %v2156_v36 = vpop.f32.mrf.mxu0 }
 0xc1f   :  { %v2157_v37 = vadd.f32 %v4317_v20, %v2156_v36 }
 0xc21   :  { %v5510_v50 = vadd.f32 %v2157_v37, %v5471_v23  ;;  %v4319_v37 = vld [vmem:[%s6024_s28 + $0x1] ss:$0 sm:$0xff]  ;;  %s6026_s28 = smov 80  }
 0xc23   :  { %v2175_v39 = vsel %vm265_vm5, %v5510_v50, 0.0 }
 0xc24   :  { %2176 = vadd.xlane.f32.xlu2 %v2175_v39 }
 0xc26   :  { %v2158_v0 = vpop.f32.mrf.mxu0 }
 0xc27   :  { %v2159_v38 = vadd.f32 %v4317_v20, %v2158_v0 }
 0xc29   :  { %v5515_v12 = vadd.f32 %v2159_v38, %v5473_v29 }
 0xc2b   :  { %v2178_v59 = vsel %vm265_vm5, %v5515_v12, 0.0 }
 0xc2c   :  { %2179 = vadd.xlane.f32.xlu0 %v2178_v59 }
 0xc31   :  { %v2171_v10 = vpop.xlane.xlu0 %2170 }
 0xc32   :  { %v2181_v49 = vmul.f32 %v2171_v10, %v5139_v34 }
 0xc34   :  { %v5521_v25 = vsub.f32 %v5500_v9, %v2181_v49 }
 0xc36   :  { %v2189_v23 = vmul.f32 %v5521_v25, %v5521_v25 }
 0xc38   :  { %v2193_v41 = vsel %vm265_vm5, %v2189_v23, 0.0 }
 0xc39   :  { %v2174_v54 = vpop.xlane.xlu1 %2173  ;;  %2194 = vadd.xlane.f32.xlu1 %v2193_v41 }
 0xc3a   :  { %v2182_v29 = vmul.f32 %v2174_v54, %v5139_v34 }
 0xc3c   :  { %v5528_v61 = vsub.f32 %v5505_v58, %v2182_v29 }
 0xc3e   :  { %v2190_v22 = vmul.f32 %v5528_v61, %v5528_v61 }
 0xc40   :  { %v2196_v2 = vsel %vm265_vm5, %v2190_v22, 0.0 }
 0xc41   :  { %2197 = vadd.xlane.f32.xlu2 %v2196_v2 }
 0xc97   :  { %v2177_v24 = vpop.xlane.xlu2 %2176 }
 0xc98   :  { %v2183_v16 = vmul.f32 %v2177_v24, %v5139_v34 }
 0xc9a   :  { %v5535_v44 = vsub.f32 %v5510_v50, %v2183_v16 }
 0xc9c   :  { %v2191_v53 = vmul.f32 %v5535_v44, %v5535_v44 }
 0xc9e   :  { %v2199_v15 = vsel %vm265_vm5, %v2191_v53, 0.0 }
 0xc9f   :  { %v2180_v7 = vpop.xlane.xlu0 %2179  ;;  %2200 = vadd.xlane.f32.xlu0 %v2199_v15 }
 0xca0   :  { %v2184_v40 = vmul.f32 %v2180_v7, %v5139_v34 }
 0xca2   :  { %v5542_v45 = vsub.f32 %v5515_v12, %v2184_v40 }
 0xca4   :  { %v2192_v57 = vmul.f32 %v5542_v45, %v5542_v45 }
 0xca6   :  { %v2202_v51 = vsel %vm265_vm5, %v2192_v57, 0.0 }
 0xca7   :  { %2203 = vadd.xlane.f32.xlu1 %v2202_v51 }
 0xcac   :  { %v2195_v46 = vpop.xlane.xlu1 %2194 }
 0xcad   :  { %v2205_v35 = vmul.f32 %v2195_v46, %v5139_v34 }
 0xcaf   :  { %v2209_v1 = vadd.f32 1e-05, %v2205_v35 }
 0xcb1   :  { %4419 = vrsqrt.f32 %v2209_v1  ;;  %vm2219_vm15 = vweird.f32 %v2209_v1 }
 0xcb4   :  { %v2198_v4 = vpop.xlane.xlu2 %2197 }
 0xcb5   :  { %v2206_v42 = vmul.f32 %v2198_v4, %v5139_v34 }
 0xcb7   :  { %v4420_v27 = vpop.eup %4419  ;;  %v2210_v8 = vadd.f32 1e-05, %v2206_v42 }
 0xcb8   :  { %v2214_v13 = vmul.f32 %v4420_v27, %v2209_v1  ;;  %vm2220_vm14 = vweird.f32 %v4420_v27 }
 0xcb9   :  { %4421 = vrsqrt.f32 %v2210_v8  ;;  %vm2221_vm1 = vmor %vm2219_vm15, %vm2220_vm14  ;;  %vm2229_vm3 = vweird.f32 %v2210_v8 }
 0xcba   :  { %v2215_v43 = vmul.f32 %v4420_v27, %v2214_v13 }
 0xcbc   :  { %v2216_v55 = vmul.f32 0.5, %v2215_v43 }
 0xcbe   :  { %v2217_v17 = vsub.f32 1.5, %v2216_v55 }
 0xcbf   :  { %v4422_v60 = vpop.eup %4421 }
 0xcc0   :  { %v2218_v19 = vmul.f32 %v4420_v27, %v2217_v17  ;;  %v2224_v48 = vmul.f32 %v4422_v60, %v2210_v8  ;;  %vm2230_vm2 = vweird.f32 %v4422_v60 }
 0xcc1   :  { %vm2231_vm4 = vmor %vm2229_vm3, %vm2230_vm2 }
 0xcc2   :  { %v2225_v20 = vmul.f32 %v4422_v60, %v2224_v48  ;;  %v2222_v62 = vsel %vm2221_vm1, %v4420_v27, %v2218_v19 }
 0xcc3   :  { %v2253_v32 = vmul.f32 %v2222_v62, %v5521_v25 }
 0xcc4   :  { %v2226_v5 = vmul.f32 0.5, %v2225_v20 }
 0xcc5   :  { %v2260_v39 = vmul.f32 %v4318_v47, %v2253_v32 }
 0xcc6   :  { %v2227_v14 = vsub.f32 1.5, %v2226_v5 }
 0xcc7   :  { %v2267_v59 = vadd.f32 %v4319_v37, %v2260_v39 }
 0xcc8   :  { %v2228_v21 = vmul.f32 %v4422_v60, %v2227_v14 }
 0xcca   :  { %v2232_v36 = vsel %vm2231_vm4, %v4422_v60, %v2228_v21 }
 0xccb   :  { %v2254_v0 = vmul.f32 %v2232_v36, %v5528_v61 }
 0xccd   :  { %v2261_v38 = vmul.f32 %v4318_v47, %v2254_v0 }
 0xccf   :  { %v2268_v10 = vadd.f32 %v4319_v37, %v2261_v38 }
 0xcd1   :  { %v2271_v49 = vpack.c.bf16 %v2268_v10, %v2267_v59 }
 0xcd3   :  { %3978 = vmatmul.msk.bf16.vlgmr.msra.gmra.mxu1 %vm265_vm5, %v2271_v49  ;;  %4004 = vmatmul.msk.bf16.vlgmr.msrb.gmra.mxu2 %vm265_vm5, %v2271_v49 }
 0xcd4   :  { %4030 = vmatmul.msk.bf16.vlgmr.msrb.gmra.mxu3 %vm265_vm5, %v2271_v49 }
 0xd12   :  { %v2201_v25 = vpop.xlane.xlu0 %2200 }
 0xd13   :  { %v2207_v23 = vmul.f32 %v2201_v25, %v5139_v34 }
 0xd15   :  { %v2211_v41 = vadd.f32 1e-05, %v2207_v23 }
 0xd17   :  { %4423 = vrsqrt.f32 %v2211_v41  ;;  %vm2239_vm7 = vweird.f32 %v2211_v41 }
 0xd1a   :  { %v2204_v54 = vpop.xlane.xlu1 %2203 }
 0xd1b   :  { %v2208_v29 = vmul.f32 %v2204_v54, %v5139_v34 }
 0xd1d   :  { %v4424_v22 = vpop.eup %4423  ;;  %v2212_v61 = vadd.f32 1e-05, %v2208_v29 }
 0xd1e   :  { %v2234_v2 = vmul.f32 %v4424_v22, %v2211_v41  ;;  %vm2240_vm6 = vweird.f32 %v4424_v22 }
 0xd1f   :  { %4425 = vrsqrt.f32 %v2212_v61  ;;  %vm2241_vm8 = vmor %vm2239_vm7, %vm2240_vm6  ;;  %vm2249_vm10 = vweird.f32 %v2212_v61 }
 0xd20   :  { %v2235_v24 = vmul.f32 %v4424_v22, %v2234_v2 }
 0xd22   :  { %v2236_v16 = vmul.f32 0.5, %v2235_v24 }
 0xd24   :  { %v2237_v53 = vsub.f32 1.5, %v2236_v16 }
 0xd25   :  { %v4426_v15 = vpop.eup %4425 }
 0xd26   :  { %v2238_v7 = vmul.f32 %v4424_v22, %v2237_v53  ;;  %v2244_v40 = vmul.f32 %v4426_v15, %v2212_v61  ;;  %vm2250_vm9 = vweird.f32 %v4426_v15 }
 0xd27   :  { %vm2251_vm11 = vmor %vm2249_vm10, %vm2250_vm9 }
 0xd28   :  { %v2245_v57 = vmul.f32 %v4426_v15, %v2244_v40  ;;  %v2242_v51 = vsel %vm2241_vm8, %v4424_v22, %v2238_v7 }
 0xd29   :  { %v2255_v1 = vmul.f32 %v2242_v51, %v5535_v44 }
 0xd2a   :  { %v2246_v46 = vmul.f32 0.5, %v2245_v57 }
 0xd2b   :  { %v2262_v63 = vmul.f32 %v4318_v47, %v2255_v1 }
 0xd2c   :  { %v2247_v35 = vsub.f32 1.5, %v2246_v46 }
 0xd2d   :  { %v2269_v26 = vadd.f32 %v4319_v37, %v2262_v63 }
 0xd2e   :  { %v2248_v6 = vmul.f32 %v4426_v15, %v2247_v35 }
 0xd30   :  { %v2252_v30 = vsel %vm2251_vm11, %v4426_v15, %v2248_v6 }
 0xd31   :  { %v2256_v31 = vmul.f32 %v2252_v30, %v5542_v45 }
 0xd33   :  { %v2263_v11 = vmul.f32 %v4318_v47, %v2256_v31 }
 0xd35   :  { %v2270_v4 = vadd.f32 %v4319_v37, %v2263_v11 }
 0xd37   :  { %v2272_v42 = vpack.c.bf16 %v2270_v4, %v2269_v26 }
 0xd39   :  { %3979 = vmatmul.msk.bf16.gmra.mxu1 %vm265_vm5, %v2272_v42  ;;  %4005 = vmatmul.msk.bf16.gmra.mxu2 %vm265_vm5, %v2272_v42 }
 0xd3a   :  { %4031 = vmatmul.msk.bf16.gmra.mxu3 %vm265_vm5, %v2272_v42 }
 0xd50   :  { %v2321_v28 = vpop.f32.mrf.mxu1 }
 0xd51   :  { %v2435_v33 = vmul.f32 0.25, %v2321_v28 }
 0xd53   :  { %v2439_v8 = vpack.c.bf16 %v2435_v33, %v2435_v33 }
 0xd55   :  { %v2453_v45 = vunpack.c.l.b16 %v2439_v8 }
 0xd56   :  { %v2373_v44 = vpop.f32.mrf.mxu2 }
 0xd57   :  { %v2425_v56 = vpop.f32.mrf.mxu3  ;;  %v2443_v18 = vpack.c.bf16 %v2373_v44, %v2373_v44 }
 0xd58   :  { %v2323_v27 = vpop.f32.mrf.mxu1  ;;  %v2447_v55 = vpack.c.bf16 %v2425_v56, %v2425_v56 }
 0xd59   :  { %v2436_v13 = vmul.f32 0.25, %v2323_v27  ;;  %v2458_v20 = vunpack.c.l.b16 %v2443_v18 }
 0xd5a   :  { %v2566_v14 = vunpack.c.l.b16 %v2447_v55 }
 0xd5b   :  { %v2440_v52 = vpack.c.bf16 %v2436_v13, %v2436_v13 }
 0xd5d   :  { %v2454_v43 = vunpack.c.l.b16 %v2440_v52 }
 0xd5e   :  { %v2375_v3 = vpop.f32.mrf.mxu2 }
 0xd5f   :  { %v2455_v17 = vpack.c.b16 %v2454_v43, %v2453_v45  ;;  %v2444_v60 = vpack.c.bf16 %v2375_v3, %v2375_v3  ;;  %v2427_v19 = vpop.f32.mrf.mxu3 }
 0xd60   :  { %v2448_v48 = vpack.c.bf16 %v2427_v19, %v2427_v19 }
 0xd61   :  { %v2459_v62 = vunpack.c.l.b16 %v2444_v60  ;;  %2615 = vrot.lane.b32.xlu0 %v2455_v17, %s4554_s30 }
 0xd62   :  { %v2567_v5 = vunpack.c.l.b16 %v2448_v48 }
 0xd63   :  { %v2460_v47 = vpack.c.b16 %v2459_v62, %v2458_v20 }
 0xd64   :  { %v5604_v32 = vpack.c.b16 %v2567_v5, %v2566_v14 }
 0xd65   :  { %2617 = vrot.lane.b32.xlu2 %v2460_v47, %s4554_s30  ;;  %v2465_v21 = vsel %vm1148_vm12, %v2460_v47, 0 }
 0xd66   :  { %2474 = vmatpush.bf16.xpose.msra.mxu0 %v2465_v21 }
 0xd6d   :  { %2763 = vrot.lane.b32.xlu2 %v2460_v47, %s6025_s26  ;;  %4032 = vmatmul.msk.bf16.vlgmr.msra.gmra.mxu0 %vm1148_vm12, %v2455_v17 }
 0xd6e   :  { %2580 = vmatpush.bf16.msrb.mxu0 %v5604_v32 }
 0xdb6   :  { %v2326_v36 = vpop.f32.mrf.mxu1 }
 0xdb7   :  { %v2437_v37 = vmul.f32 0.25, %v2326_v36 }
 0xdb9   :  { %v2441_v59 = vpack.c.bf16 %v2437_v37, %v2437_v37 }
 0xdbb   :  { %v2483_v41 = vunpack.c.l.b16 %v2441_v59 }
 0xdbc   :  { %v2378_v39 = vpop.f32.mrf.mxu2 }
 0xdbd   :  { %v2430_v0 = vpop.f32.mrf.mxu3  ;;  %v2445_v54 = vpack.c.bf16 %v2378_v39, %v2378_v39 }
 0xdbe   :  { %v2328_v38 = vpop.f32.mrf.mxu1  ;;  %v2449_v61 = vpack.c.bf16 %v2430_v0, %v2430_v0 }
 0xdbf   :  { %v2438_v10 = vmul.f32 0.25, %v2328_v38  ;;  %v2618_v49 = vpop.permute.xlu2 %2617  ;;  %v2488_v15 = vunpack.c.l.b16 %v2445_v54 }
 0xdc0   :  { %v2623_v25 = vsel %vm1148_vm12, %v2618_v49, 0  ;;  %v2594_v46 = vunpack.c.l.b16 %v2449_v61 }
 0xdc1   :  { %v2442_v23 = vpack.c.bf16 %v2438_v10, %v2438_v10  ;;  %2632 = vmatpush.bf16.xpose.msra.mxu2 %v2623_v25 }
 0xdc3   :  { %v2484_v29 = vunpack.c.l.b16 %v2442_v23 }
 0xdc4   :  { %v2380_v22 = vpop.f32.mrf.mxu2 }
 0xdc5   :  { %v2485_v2 = vpack.c.b16 %v2484_v29, %v2483_v41  ;;  %v2446_v24 = vpack.c.bf16 %v2380_v22, %v2380_v22  ;;  %v2432_v16 = vpop.f32.mrf.mxu3 }
 0xdc6   :  { %v2450_v53 = vpack.c.bf16 %v2432_v16, %v2432_v16 }
 0xdc7   :  { %v2489_v7 = vunpack.c.l.b16 %v2446_v24  ;;  %v2764_v40 = vpop.permute.xlu2 %2763  ;;  %2639 = vrot.lane.b32.xlu0 %v2485_v2, %s4554_s30 }
 0xdc8   :  { %v2595_v57 = vunpack.c.l.b16 %v2450_v53  ;;  %v2769_v51 = vsel %vm1148_vm12, %v2764_v40, 0 }
 0xdc9   :  { %v2490_v35 = vpack.c.b16 %v2489_v7, %v2488_v15  ;;  %2778 = vmatpush.bf16.xpose.msrb.mxu2 %v2769_v51 }
 0xdca   :  { %v5614_v1 = vpack.c.b16 %v2595_v57, %v2594_v46 }
 0xdcb   :  { %2787 = vrot.lane.b32.xlu2 %v2490_v35, %s6025_s26  ;;  %2641 = vrot.lane.b32.xlu1 %v2490_v35, %s4554_s30  ;;  %v2495_v6 = vsel %vm1148_vm12, %v2490_v35, 0 }
 0xdcc   :  { %2504 = vmatpush.bf16.xpose.msrb.mxu1 %v2495_v6 }
 0xdcf   :  { %2909 = vrot.lane.b32.xlu0 %v2460_v47, %s6026_s28 }
 0xdd3   :  { %2907 = vrot.lane.b32.xlu2 %v2455_v17, %s6026_s28  ;;  %2761 = vrot.lane.b32.xlu1 %v2455_v17, %s6025_s26  ;;  %v2616_v30 = vpop.permute.xlu0 %2615 }
 0xdd4   :  { %2608 = vmatpush.bf16.msra.mxu1 %v5614_v1  ;;  %4036 = vmatmul.msk.bf16.vlgmr.msra.gmra.mxu2 %vm1148_vm12, %v2616_v30 }
 0xdd5   :  { %4033 = vmatmul.msk.bf16.vlgmr.msrb.gmra.mxu1 %vm1148_vm12, %v2485_v2 }
 0xdd7   :  { %2933 = vrot.lane.b32.xlu0 %v2490_v35, %s6026_s28 }
 0xddb   :  { %2785 = vrot.lane.b32.xlu1 %v2485_v2, %s6025_s26 }
 0xde3   :  { %2931 = vrot.lane.b32.xlu1 %v2485_v2, %s6026_s28 }
 0xdea   :  { %v2476_v31 = vpop.f32.mrf.mxu0 }
 0xdeb   :  { %v2511_v63 = vsel %vm1148_vm12, %v2476_v31, -inf }
 0xdf2   :  { %v2478_v11 = vpop.f32.mrf.mxu0 }
 0xdf3   :  { %v2514_v26 = vsel %vm1148_vm12, %v2478_v11, -inf }
 0xdfc   :  { %2512 = vmax.xlane.f32.xlu2 %v2511_v63 }
 0xe01   :  { %2515 = vmax.xlane.f32.xlu0 %v2514_v26 }
 0xe15   :  { %2716 = vrot.lane.b32.xlu0 %v5604_v32, %s4554_s30 }
 0xe25   :  { %v2788_v42 = vpop.permute.xlu2 %2787 }
 0xe26   :  { %v2793_v44 = vsel %vm1148_vm12, %v2788_v42, 0 }
 0xe2d   :  { %v2908_v45 = vpop.permute.xlu2 %2907 }
 0xe39   :  { %v2640_v4 = vpop.permute.xlu0 %2639 }
 0xe3d   :  { %v2642_v28 = vpop.permute.xlu1 %2641 }
 0xe3e   :  { %v2647_v33 = vsel %vm1148_vm12, %v2642_v28, 0 }
 0xe3f   :  { %2656 = vmatpush.bf16.xpose.msra.mxu3 %v2647_v33 }
 0xe41   :  { %v2910_v56 = vpop.permute.xlu0 %2909 }
 0xe42   :  { %v2915_v27 = vsel %vm1148_vm12, %v2910_v56, 0 }
 0xe43   :  { %2924 = vmatpush.bf16.xpose.msra.mxu2 %v2915_v27 }
 0xe45   :  { %v2762_v8 = vpop.permute.xlu1 %2761 }
 0xe46   :  { %4037 = vmatmul.msk.bf16.vlgmr.msra.gmra.mxu3 %vm1148_vm12, %v2640_v4  ;;  %4040 = vmatmul.msk.bf16.vlgmr.msrb.gmra.mxu2 %vm1148_vm12, %v2762_v8 }
 0xe47   :  { %2802 = vmatpush.bf16.xpose.msrb.mxu3 %v2793_v44 }
 0xe49   :  { %v2934_v13 = vpop.permute.xlu0 %2933 }
 0xe4a   :  { %v2939_v52 = vsel %vm1148_vm12, %v2934_v13, 0 }
 0xe4d   :  { %v2786_v18 = vpop.permute.xlu1 %2785 }
 0xe4f   :  { %2948 = vmatpush.bf16.xpose.msra.mxu3 %v2939_v52 }
 0xe52   :  { %v2506_v61 = vpop.f32.mrf.mxu1 }
 0xe53   :  { %v2517_v24 = vsel %vm1148_vm12, %v2506_v61, -inf }
 0xe55   :  { %v2932_v55 = vpop.permute.xlu1 %2931 }
 0xe56   :  { %4041 = vmatmul.msk.bf16.vlgmr.msrb.gmra.mxu3 %vm1148_vm12, %v2786_v18  ;;  %4044 = vmatmul.msk.bf16.vlgmr.msra.gmra.mxu2 %vm1148_vm12, %v2908_v45 }
 0xe57   :  { %v2634_v43 = vpop.f32.mrf.mxu2 }
 0xe58   :  { %v2663_v3 = vsel %vm1148_vm12, %v2634_v43, -inf }
 0xe59   :  { %2664 = vmax.xlane.f32.xlu0 %v2663_v3 }
 0xe5a   :  { %v2508_v56 = vpop.f32.mrf.mxu1 }
 0xe5b   :  { %v2520_v27 = vsel %vm1148_vm12, %v2508_v56, -inf }
 0xe5f   :  { %v2636_v21 = vpop.f32.mrf.mxu2 }
 0xe60   :  { %v2666_v37 = vsel %vm1148_vm12, %v2636_v21, -inf }
 0xe66   :  { %4045 = vmatmul.msk.bf16.vlgmr.msra.gmra.mxu3 %vm1148_vm12, %v2932_v55 }
 0xe6f   :  { %v2513_v17 = vpop.xlane.xlu2 %2512 }
 0xe70   :  { %v2523_v60 = vsub.f32 %v2476_v31, %v2513_v17 }
 0xe72   :  { %v2527_v19 = vmul.f32 1.442695, %v2523_v60 }
 0xe74   :  { %4427 = vpow2.f32 %v2527_v19  ;;  %v2516_v48 = vpop.xlane.xlu0 %2515 }
 0xe75   :  { %v2524_v20 = vsub.f32 %v2478_v11, %v2516_v48 }
 0xe77   :  { %v2529_v62 = vmul.f32 1.442695, %v2524_v20 }
 0xe79   :  { %4429 = vpow2.f32 %v2529_v62 }
 0xe7a   :  { %v4428_v5 = vpop.eup %4427 }
 0xe7b   :  { %v2535_v14 = vsel %vm1148_vm12, %v4428_v5, 0.0 }
 0xe7c   :  { %2536 = vadd.xlane.f32.xlu1 %v2535_v14 }
 0xe7f   :  { %v4430_v47 = vpop.eup %4429 }
 0xe80   :  { %v2538_v36 = vsel %vm1148_vm12, %v4430_v47, 0.0 }
 0xe81   :  { %2539 = vadd.xlane.f32.xlu2 %v2538_v36 }
 0xe84   :  { %2667 = vmax.xlane.f32.xlu1 %v2666_v37 }
 0xe87   :  { %v2717_v39 = vpop.permute.xlu0 %2716 }
 0xe88   :  { %2729 = vmatpush.bf16.msra.mxu0 %v2717_v39 }
 0xec9   :  { %v2780_v0 = vpop.f32.mrf.mxu2  ;;  %v5655_v2 = vpop.f32.mrf.mxu3 }
 0xeca   :  { %v2809_v38 = vsel %vm1148_vm12, %v2780_v0, -inf  ;;  %v2669_v36 = vsel %vm1148_vm12, %v5655_v2, -inf }
 0xecb   :  { %2810 = vmax.xlane.f32.xlu1 %v2809_v38 }
 0xecc   :  { %v2665_v59 = vpop.xlane.xlu0 %2664 }
 0xecd   :  { %v2675_v10 = vsub.f32 %v2634_v43, %v2665_v59 }
 0xecf   :  { %v2679_v49 = vmul.f32 1.442695, %v2675_v10 }
 0xed1   :  { %4431 = vpow2.f32 %v2679_v49  ;;  %v2782_v25 = vpop.f32.mrf.mxu2  ;;  %v2660_v15 = vpop.f32.mrf.mxu3 }
 0xed2   :  { %v2812_v23 = vsel %vm1148_vm12, %v2782_v25, -inf  ;;  %v2672_v7 = vsel %vm1148_vm12, %v2660_v15, -inf }
 0xed3   :  { %2813 = vmax.xlane.f32.xlu2 %v2812_v23 }
 0xed7   :  { %v5647_v41 = vpop.eup %4431 }
 0xed8   :  { %v2687_v54 = vsel %vm1148_vm12, %v5647_v41, 0.0 }
 0xed9   :  { %v5651_v29 = vpop.f32.mrf.mxu2  ;;  %2688 = vadd.xlane.f32.xlu1 %v2687_v54  ;;  %v5666_v45 = vpop.f32.mrf.mxu3 }
 0xeda   :  { %v2955_v22 = vsel %vm1148_vm12, %v5651_v29, -inf }
 0xedb   :  { %2956 = vmax.xlane.f32.xlu2 %v2955_v22 }
 0xee1   :  { %v5658_v16 = vpop.f32.mrf.mxu2  ;;  %2518 = vmax.xlane.f32.xlu1 %v2517_v24  ;;  %v2806_v19 = vpop.f32.mrf.mxu3 }
 0xee2   :  { %v2958_v53 = vsel %vm1148_vm12, %v5658_v16, -inf  ;;  %v2818_v20 = vsel %vm1148_vm12, %v2806_v19, -inf }
 0xee3   :  { %2959 = vmax.xlane.f32.xlu0 %v2958_v53 }
 0xeeb   :  { %2673 = vmax.xlane.f32.xlu0 %v2672_v7 }
 0xeef   :  { %v2537_v40 = vpop.xlane.xlu1 %2536 }
 0xef0   :  { %4433 = vrcp.f32 %v2537_v40 }
 0xef4   :  { %v2540_v57 = vpop.xlane.xlu2 %2539 }
 0xef5   :  { %4435 = vrcp.f32 %v2540_v57 }
 0xef6   :  { %v4434_v51 = vpop.eup %4433 }
 0xef7   :  { %v2668_v46 = vpop.xlane.xlu1 %2667  ;;  %v2551_v35 = vmul.f32 %v4434_v51, %v4428_v5 }
 0xef8   :  { %v2676_v6 = vsub.f32 %v2636_v21, %v2668_v46 }
 0xef9   :  { %v2555_v63 = vpack.c.bf16 %v2551_v35, %v2551_v35 }
 0xefa   :  { %v2681_v30 = vmul.f32 1.442695, %v2676_v6  ;;  %v5695_v6 = vpop.f32.mrf.mxu3 }
 0xefb   :  { %v4436_v31 = vpop.eup %4435  ;;  %v2561_v4 = vunpack.c.l.b16 %v2555_v63  ;;  %v2815_v63 = vsel %vm1148_vm12, %v5666_v45, -inf }
 0xefc   :  { %v2552_v11 = vmul.f32 %v4436_v31, %v4430_v47  ;;  %4437 = vpow2.f32 %v2681_v30 }
 0xefe   :  { %v2556_v26 = vpack.c.bf16 %v2552_v11, %v2552_v11 }
 0xf00   :  { %v2562_v42 = vunpack.c.l.b16 %v2556_v26  ;;  %v2961_v26 = vsel %vm1148_vm12, %v5695_v6, -inf }
 0xf02   :  { %v4438_v28 = vpop.eup %4437  ;;  %v2563_v33 = vpack.c.b16 %v2562_v42, %v2561_v4 }
 0xf03   :  { %v2690_v44 = vsel %vm1148_vm12, %v4438_v28, 0.0 }
 0xf04   :  { %2691 = vadd.xlane.f32.xlu2 %v2690_v44  ;;  %4034 = vmatmul.msk.bf16.vlgmr.msrb.gmra.mxu0 %vm1148_vm12, %v2563_v33 }
 0xf0c   :  { %2521 = vmax.xlane.f32.xlu2 %v2520_v27 }
 0xf3e   :  { %v2811_v8 = vpop.xlane.xlu1 %2810 }
 0xf3f   :  { %v2821_v13 = vsub.f32 %v2780_v0, %v2811_v8 }
 0xf41   :  { %v2825_v52 = vmul.f32 1.442695, %v2821_v13 }
 0xf43   :  { %4439 = vpow2.f32 %v2825_v52 }
 0xf46   :  { %v2814_v18 = vpop.xlane.xlu2 %2813 }
 0xf47   :  { %v2822_v43 = vsub.f32 %v2782_v25, %v2814_v18 }
 0xf49   :  { %v5668_v3 = vpop.eup %4439  ;;  %v2827_v55 = vmul.f32 1.442695, %v2822_v43 }
 0xf4a   :  { %v2833_v17 = vsel %vm1148_vm12, %v5668_v3, 0.0 }
 0xf4b   :  { %4441 = vpow2.f32 %v2827_v55  ;;  %2834 = vadd.xlane.f32.xlu1 %v2833_v17 }
 0xf4c   :  { %v2689_v60 = vpop.xlane.xlu1 %2688 }
 0xf4e   :  { %v5691_v25 = vpop.xlane.xlu2 %2956 }
 0xf51   :  { %v5672_v48 = vpop.eup %4441 }
 0xf52   :  { %v2836_v62 = vsel %vm1148_vm12, %v5672_v48, 0.0 }
 0xf53   :  { %2819 = vmax.xlane.f32.xlu1 %v2818_v20  ;;  %2837 = vadd.xlane.f32.xlu2 %v2836_v62 }
 0xf54   :  { %v2519_v5 = vpop.xlane.xlu1 %2518 }
 0xf55   :  { %v2525_v14 = vsub.f32 %v2506_v61, %v2519_v5 }
 0xf56   :  { %v5677_v47 = vpop.xlane.xlu0 %2959 }
 0xf57   :  { %v2531_v21 = vmul.f32 1.442695, %v2525_v14 }
 0xf59   :  { %4443 = vpow2.f32 %v2531_v21 }
 0xf5b   :  { %2670 = vmax.xlane.f32.xlu2 %v2669_v36 }
 0xf5e   :  { %v2674_v37 = vpop.xlane.xlu0 %2673 }
 0xf5f   :  { %v5681_v39 = vpop.eup %4443  ;;  %v2678_v0 = vsub.f32 %v2660_v15, %v2674_v37 }
 0xf60   :  { %v2541_v59 = vsel %vm1148_vm12, %v5681_v39, 0.0 }
 0xf61   :  { %v2685_v38 = vmul.f32 1.442695, %v2678_v0 }
 0xf63   :  { %4445 = vpow2.f32 %v2685_v38  ;;  %2542 = vadd.xlane.f32.xlu2 %v2541_v59 }
 0xf64   :  { %4447 = vrcp.f32 %v2689_v60 }
 0xf69   :  { %v5685_v10 = vpop.eup %4445 }
 0xf6a   :  { %v2696_v49 = vsel %vm1148_vm12, %v5685_v10, 0.0  ;;  %v4448_v54 = vpop.eup %4447 }
 0xf6b   :  { %2697 = vadd.xlane.f32.xlu2 %v2696_v49  ;;  %v2703_v22 = vmul.f32 %v4448_v54, %v5647_v41  ;;  %v2952_v41 = vpop.f32.mrf.mxu3 }
 0xf6c   :  { %2862 = vrot.lane.b32.xlu1 %v5604_v32, %s6025_s26  ;;  %v2964_v11 = vsel %vm1148_vm12, %v2952_v41, -inf }
 0xf6d   :  { %v2707_v24 = vpack.c.bf16 %v2703_v22, %v2703_v22 }
 0xf6f   :  { %v2713_v51 = vunpack.c.l.b16 %v2707_v24 }
 0xf77   :  { %v2692_v23 = vpop.xlane.xlu2 %2691 }
 0xf78   :  { %4449 = vrcp.f32 %v2692_v23 }
 0xf7e   :  { %v4450_v61 = vpop.eup %4449 }
 0xf7f   :  { %v2704_v53 = vmul.f32 %v4450_v61, %v4438_v28  ;;  %v2522_v15 = vpop.xlane.xlu2 %2521 }
 0xf80   :  { %v2526_v7 = vsub.f32 %v2508_v56, %v2522_v15 }
 0xf81   :  { %v2708_v40 = vpack.c.bf16 %v2704_v53, %v2704_v53  ;;  %v5721_v54 = vpop.f32.mrf.mxu0 }
 0xf82   :  { %v2533_v57 = vmul.f32 1.442695, %v2526_v7 }
 0xf83   :  { %v2714_v46 = vunpack.c.l.b16 %v2708_v40 }
 0xf84   :  { %4451 = vpow2.f32 %v2533_v57 }
 0xf85   :  { %v2715_v35 = vpack.c.b16 %v2714_v46, %v2713_v51 }
 0xf87   :  { %4038 = vmatmul.msk.bf16.vlgmr.msra.gmra.mxu0 %vm1148_vm12, %v2715_v35  ;;  %v2968_v35 = vsub.f32 %v5658_v16, %v5677_v47 }
 0xf8a   :  { %v4452_v30 = vpop.eup %4451 }
 0xf8b   :  { %v2544_v31 = vsel %vm1148_vm12, %v4452_v30, 0.0 }
 0xf8c   :  { %2545 = vadd.xlane.f32.xlu0 %v2544_v31 }
 0xf94   :  { %2816 = vmax.xlane.f32.xlu0 %v2815_v63  ;;  %v2973_v63 = vmul.f32 1.442695, %v2968_v35 }
 0xf96   :  { %2965 = vmax.xlane.f32.xlu1 %v2964_v11 }
 0xf9c   :  { %2962 = vmax.xlane.f32.xlu0 %v2961_v26 }
 0xfb0   :  { %2741 = vrot.lane.b32.xlu0 %v5614_v1, %s4554_s30  ;;  %s6027_s30 = smov 16  }
 0xfbe   :  { %v2835_v4 = vpop.xlane.xlu1 %2834 }
 0xfc6   :  { %v2820_v42 = vpop.xlane.xlu1 %2819  ;;  %v2838_v28 = vpop.xlane.xlu2 %2837 }
 0xfc7   :  { %v2824_v33 = vsub.f32 %v2806_v19, %v2820_v42  ;;  %4453 = vrcp.f32 %v2838_v28 }
 0xfc8   :  { %4455 = vrcp.f32 %v2835_v4 }
 0xfc9   :  { %v2831_v44 = vmul.f32 1.442695, %v2824_v33 }
 0xfcb   :  { %4457 = vpow2.f32 %v2831_v44 }
 0xfcd   :  { %v4454_v8 = vpop.eup %4453 }
 0xfce   :  { %v2671_v56 = vpop.xlane.xlu2 %2670  ;;  %v4456_v52 = vpop.eup %4455  ;;  %v2850_v18 = vmul.f32 %v4454_v8, %v5672_v48 }
 0xfcf   :  { %v2677_v27 = vsub.f32 %v5655_v2, %v2671_v56  ;;  %v2849_v55 = vmul.f32 %v4456_v52, %v5668_v3 }
 0xfd0   :  { %v2854_v17 = vpack.c.bf16 %v2850_v18, %v2850_v18 }
 0xfd1   :  { %v2683_v13 = vmul.f32 1.442695, %v2677_v27  ;;  %v5707_v43 = vpop.eup %4457  ;;  %v2853_v20 = vpack.c.bf16 %v2849_v55, %v2849_v55 }
 0xfd2   :  { %v2842_v19 = vsel %vm1148_vm12, %v5707_v43, 0.0  ;;  %v2860_v62 = vunpack.c.l.b16 %v2854_v17 }
 0xfd3   :  { %4459 = vpow2.f32 %v2683_v13  ;;  %v2859_v5 = vunpack.c.l.b16 %v2853_v20 }
 0xfd5   :  { %v2861_v48 = vpack.c.b16 %v2860_v62, %v2859_v5 }
 0xfd6   :  { %v2543_v3 = vpop.xlane.xlu2 %2542 }
 0xfd7   :  { %4461 = vrcp.f32 %v2543_v3 }
 0xfd9   :  { %v5710_v60 = vpop.eup %4459 }
 0xfda   :  { %2843 = vadd.xlane.f32.xlu0 %v2842_v19  ;;  %v2693_v2 = vsel %vm1148_vm12, %v5710_v60, 0.0 }
 0xfdb   :  { %2694 = vadd.xlane.f32.xlu1 %v2693_v2 }
 0xfdd   :  { %v4462_v36 = vpop.eup %4461 }
 0xfde   :  { %v2863_v14 = vpop.permute.xlu1 %2862  ;;  %v2553_v37 = vmul.f32 %v4462_v36, %v5681_v39  ;;  %v2698_v56 = vpop.xlane.xlu2 %2697 }
 0xfdf   :  { %2875 = vmatpush.bf16.msrb.mxu0 %v2863_v14 }
 0xfe0   :  { %v2557_v38 = vpack.c.bf16 %v2553_v37, %v2553_v37 }
 0xfe2   :  { %4042 = vmatmul.msk.bf16.vlgmr.msrb.gmra.mxu0 %vm1148_vm12, %v2861_v48  ;;  %v2589_v15 = vunpack.c.l.b16 %v2557_v38 }
 0xff4   :  { %3008 = vrot.lane.b32.xlu1 %v5604_v32, %s6026_s28  ;;  %v2967_v32 = vsub.f32 %v5651_v29, %v5691_v25  ;;  %v5729_v25 = vpop.f32.mrf.mxu0 }
 0xff6   :  { %v2971_v57 = vmul.f32 1.442695, %v2967_v32 }
 0xfff   :  { %v2546_v21 = vpop.xlane.xlu0 %2545 }
0x1000   :  { %4463 = vrcp.f32 %v2546_v21 }
0x1004   :  { %v2731_v26 = vpop.f32.mrf.mxu0 }
0x1006   :  { %v4464_v0 = vpop.eup %4463 }
0x1007   :  { %v2554_v59 = vmul.f32 %v4464_v0, %v4452_v30  ;;  %v2817_v49 = vpop.xlane.xlu0 %2816 }
0x1008   :  { %v2823_v23 = vsub.f32 %v5666_v45, %v2817_v49 }
0x1009   :  { %v2558_v22 = vpack.c.bf16 %v2554_v59, %v2554_v59  ;;  %v2966_v61 = vpop.xlane.xlu1 %2965 }
0x100a   :  { %v2829_v24 = vmul.f32 1.442695, %v2823_v23  ;;  %v2970_v53 = vsub.f32 %v2952_v41, %v2966_v61 }
0x100b   :  { %v2590_v7 = vunpack.c.l.b16 %v2558_v22 }
0x100c   :  { %4465 = vpow2.f32 %v2829_v24  ;;  %v2977_v40 = vmul.f32 1.442695, %v2970_v53  ;;  %v2733_v33 = vpop.f32.mrf.mxu0 }
0x100d   :  { %v2591_v39 = vpack.c.b16 %v2590_v7, %v2589_v15  ;;  %v4281_v44 = vpack.i.bf16 %v2733_v33, %v2731_v26 }
0x100e   :  { %4467 = vpow2.f32 %v2977_v40 }
0x100f   :  { %v2963_v51 = vpop.xlane.xlu0 %2962  ;;  %4035 = vmatmul.msk.bf16.vlgmr.msra.gmra.mxu1 %vm1148_vm12, %v2591_v39  ;;  %4469 = vpow2.f32 %v2971_v57 }
0x1010   :  { %v2969_v45 = vsub.f32 %v5695_v6, %v2963_v51 }
0x1012   :  { %v4466_v46 = vpop.eup %4465  ;;  %v2975_v29 = vmul.f32 1.442695, %v2969_v45 }
0x1013   :  { %v2839_v30 = vsel %vm1148_vm12, %v4466_v46, 0.0 }
0x1014   :  { %v5732_v31 = vpop.eup %4467  ;;  %4471 = vpow2.f32 %v2975_v29  ;;  %2840 = vadd.xlane.f32.xlu2 %v2839_v30 }
0x1015   :  { %v2988_v41 = vsel %vm1148_vm12, %v5732_v31, 0.0  ;;  %v4470_v6 = vpop.eup %4469  ;;  %4473 = vpow2.f32 %v2973_v63 }
0x1016   :  { %2989 = vadd.xlane.f32.xlu0 %v2988_v41  ;;  %v2979_v16 = vsel %vm1148_vm12, %v4470_v6, 0.0  ;;  %4475 = vrcp.f32 %v2698_v56  ;;  %v4221_v56 = vld [vmem:[%s5979_s8 + $0x28] sm:$0xff] }
0x101a   :  { %v5736_v11 = vpop.eup %4471 }
0x101b   :  { %v2985_v47 = vsel %vm1148_vm12, %v5736_v11, 0.0  ;;  %v4474_v4 = vpop.eup %4473 }
0x101c   :  { %2980 = vadd.xlane.f32.xlu2 %v2979_v16  ;;  %v2982_v28 = vsel %vm1148_vm12, %v4474_v4, 0.0  ;;  %v4476_v8 = vpop.eup %4475 }
0x101d   :  { %v2706_v13 = vmul.f32 %v4476_v8, %v5685_v10 }
0x101e   :  { %2986 = vadd.xlane.f32.xlu1 %v2985_v47 }
0x101f   :  { %v2710_v18 = vpack.c.bf16 %v2706_v13, %v2706_v13 }
0x1021   :  { %v2739_v19 = vunpack.c.l.b16 %v2710_v18 }
0x1022   :  { %v2742_v42 = vpop.permute.xlu0 %2741 }
0x1023   :  { %2754 = vmatpush.bf16.msrb.mxu1 %v2742_v42 }
0x1024   :  { %2983 = vadd.xlane.f32.xlu2 %v2982_v28 }
0x102a   :  { %4282 = vrot.lane.b32.xlu0 %v4281_v44, %s6027_s30 }
0x103c   :  { %2887 = vrot.lane.b32.xlu2 %v5614_v1, %s6025_s26 }
0x1044   :  { %3033 = vrot.lane.b32.xlu2 %v5614_v1, %s6026_s28  ;;  %s3754_s28 = sshll.u32 %s5993_s22, 4  ;;  %s3755_s28 = int_to_ptr.hbm [resolvable:$true] %s3754_s28 }
0x104d   :  { %v2844_v3 = vpop.xlane.xlu0 %2843 }
0x104e   :  { %v2695_v27 = vpop.xlane.xlu1 %2694 }
0x104f   :  { %4477 = vrcp.f32 %v2695_v27 }
0x1055   :  { %v4478_v52 = vpop.eup %4477 }
0x1056   :  { %v2705_v55 = vmul.f32 %v4478_v52, %v5710_v60 }
0x1058   :  { %v2709_v17 = vpack.c.bf16 %v2705_v55, %v2705_v55 }
0x105a   :  { %v2738_v20 = vunpack.c.l.b16 %v2709_v17 }
0x105c   :  { %v2740_v2 = vpack.c.b16 %v2739_v19, %v2738_v20 }
0x105e   :  { %4039 = vmatmul.msk.bf16.vlgmr.msrb.gmra.mxu1 %vm1148_vm12, %v2740_v2  ;;  %v4220_v2 = vld [vmem:[%s5979_s8 + $0x20] sm:$0xff] }
0x105f   :  { %v2877_v62 = vpop.f32.mrf.mxu0 }
0x1066   :  { %v3009_v5 = vpop.permute.xlu1 %3008 }
0x1067   :  { %v2879_v1 = vpop.f32.mrf.mxu0  ;;  %3021 = vmatpush.bf16.msra.mxu0 %v3009_v5 }
0x1068   :  { %v4286_v14 = vpack.i.bf16 %v2879_v1, %v2877_v62 }
0x106a   :  { %4287 = vrot.lane.b32.xlu2 %v4286_v14, %s6028_s24 }
0x1087   :  { %v2841_v48 = vpop.xlane.xlu2 %2840 }
0x1088   :  { %4479 = vrcp.f32 %v2841_v48 }
0x1089   :  { %4481 = vrcp.f32 %v2844_v3  ;;  %v2990_v22 = vpop.xlane.xlu0 %2989 }
0x108e   :  { %v4480_v21 = vpop.eup %4479 }
0x108f   :  { %v2981_v10 = vpop.xlane.xlu2 %2980  ;;  %v4482_v60 = vpop.eup %4481  ;;  %v2851_v36 = vmul.f32 %v4480_v21, %v4466_v46 }
0x1090   :  { %4483 = vrcp.f32 %v2981_v10  ;;  %v2852_v37 = vmul.f32 %v4482_v60, %v5707_v43 }
0x1091   :  { %v2855_v59 = vpack.c.bf16 %v2851_v36, %v2851_v36  ;;  %v2987_v49 = vpop.xlane.xlu1 %2986 }
0x1092   :  { %v2856_v23 = vpack.c.bf16 %v2852_v37, %v2852_v37 }
0x1093   :  { %v2884_v32 = vunpack.c.l.b16 %v2855_v59 }
0x1094   :  { %v2885_v53 = vunpack.c.l.b16 %v2856_v23 }
0x1096   :  { %v4484_v38 = vpop.eup %4483  ;;  %v2886_v39 = vpack.c.b16 %v2885_v53, %v2884_v32 }
0x1097   :  { %v2984_v0 = vpop.xlane.xlu2 %2983  ;;  %v2995_v61 = vmul.f32 %v4484_v38, %v4470_v6 }
0x1098   :  { %4485 = vrcp.f32 %v2984_v0 }
0x1099   :  { %4487 = vrcp.f32 %v2987_v49  ;;  %v2999_v15 = vpack.c.bf16 %v2995_v61, %v2995_v61 }
0x109a   :  { %4489 = vrcp.f32 %v2990_v22 }
0x109b   :  { %v3005_v51 = vunpack.c.l.b16 %v2999_v15 }
0x109c   :  { %v4283_v5 = vpop.permute.xlu0 %4282 }
0x109d   :  { %v4285_v1 = vunpack.i.h.bf16 %v4283_v5  ;;  %v4284_v14 = vunpack.i.l.bf16 %v4283_v5 }
0x109e   :  { %v4486_v24 = vpop.eup %4485 }
0x109f   :  { %v2996_v7 = vmul.f32 %v4486_v24, %v4474_v4  ;;  %v2888_v40 = vpop.permute.xlu2 %2887  ;;  %v4488_v43 = vpop.eup %4487  ;;  %v3102_v21 = vsel %vm1148_vm12, %v5729_v25, %v4285_v1  ;;  %v3101_v60 = vsel %vm1148_vm12, %v5721_v54, %v4284_v14 }
0x10a0   :  { %2900 = vmatpush.bf16.msra.mxu1 %v2888_v40  ;;  %v4490_v46 = vpop.eup %4489  ;;  %v2997_v35 = vmul.f32 %v4488_v43, %v5736_v11  ;;  %v2610_v4 = vpop.f32.mrf.mxu1  ;;  %v4223_v11 = vld [vmem:[%s5979_s8 + $0x38] sm:$0xff] }
0x10a1   :  { %v3000_v57 = vpack.c.bf16 %v2996_v7, %v2996_v7  ;;  %v2998_v30 = vmul.f32 %v4490_v46, %v5732_v31  ;;  %3163 = vmatpush.bf16.msrb.mxu2 %v4223_v11  ;;  %v4222_v31 = vld [vmem:[%s5979_s8 + $0x30] sm:$0xff] }
0x10a2   :  { %v3001_v63 = vpack.c.bf16 %v2997_v35, %v2997_v35  ;;  %v4320_v35 = vld [vmem:[%s5980_s9 + $0x1] ss:$0 sm:$0xff] }
0x10a3   :  { %v3006_v45 = vunpack.c.l.b16 %v3000_v57  ;;  %4043 = vmatmul.msk.bf16.vlgmr.msra.gmra.mxu1 %vm1148_vm12, %v2886_v39  ;;  %v3002_v6 = vpack.c.bf16 %v2998_v30, %v2998_v30 }
0x10a4   :  { %v3030_v26 = vunpack.c.l.b16 %v3001_v63 }
0x10a5   :  { %v3007_v29 = vpack.c.b16 %v3006_v45, %v3005_v51  ;;  %v3031_v16 = vunpack.c.l.b16 %v3002_v6  ;;  %3164 = vmatpush.bf16.msrb.mxu2 %v4222_v31 }
0x10a7   :  { %4046 = vmatmul.msk.bf16.vlgmr.msra.gmra.mxu0 %vm1148_vm12, %v3007_v29  ;;  %v3034_v41 = vpop.permute.xlu2 %3033  ;;  %v3032_v47 = vpack.c.b16 %v3031_v16, %v3030_v26 }
0x10a8   :  { %3046 = vmatpush.bf16.msrb.mxu1 %v3034_v41  ;;  %v2612_v42 = vpop.f32.mrf.mxu1 }
0x10a9   :  { %3165 = vmatpush.bf16.msrb.mxu2 %v4221_v56 }
0x10ad   :  { %3166 = vmatpush.bf16.msrb.mxu2 %v4220_v2 }
0x10b3   :  { %4047 = vmatmul.msk.bf16.vlgmr.msrb.gmra.mxu1 %vm1148_vm12, %v3032_v47 }
0x10c4   :  { %v4288_v62 = vpop.permute.xlu2 %4287 }
0x10c5   :  { %v4290_v48 = vunpack.i.h.bf16 %v4288_v62  ;;  %v4289_v3 = vunpack.i.l.bf16 %v4288_v62 }
0x10c7   :  { %v3106_v0 = vsel %vm146_vm0, %v3102_v21, %v4290_v48  ;;  %v3105_v38 = vsel %vm146_vm0, %v3101_v60, %v4289_v3 }
0x10db   :  { %v2756_v28 = vpop.f32.mrf.mxu1 }
0x10e3   :  { %v2758_v33 = vpop.f32.mrf.mxu1 }
0x10e4   :  { %v4296_v17 = vpack.i.bf16 %v2758_v33, %v2756_v28 }
0x1120   :  { %v2902_v44 = vpop.f32.mrf.mxu1 }
0x1124   :  { %v3023_v27 = vpop.f32.mrf.mxu0 }
0x1128   :  { %v2904_v8 = vpop.f32.mrf.mxu1 }
0x1129   :  { %v4301_v13 = vpack.i.bf16 %v2904_v8, %v2902_v44 }
0x112b   :  { %4302 = vrot.lane.b32.xlu1 %v4301_v13, %s6028_s24  ;;  %s4560_s24 = smov [#allocation3]  }
0x112c   :  { %v3025_v52 = vpop.f32.mrf.mxu0  ;;  %s3752_s6 = sshll.u32 %s4560_s24, 4  ;;  %s3753_s6 = int_to_ptr.vmem [resolvable:$true] %s3752_s6 }
0x112d   :  { %v4291_v18 = vpack.i.bf16 %v3025_v52, %v3023_v27 }
0x112f   :  { %4292 = vrot.lane.b32.xlu2 %v4291_v18, %s6029_s4 }
0x1130   :  { %v3048_v55 = vpop.f32.mrf.mxu1 }
0x1137   :  { %4297 = vrot.lane.b32.xlu2 %v4296_v17, %s6027_s30 }
0x1138   :  { %v3050_v19 = vpop.f32.mrf.mxu1 }
0x1139   :  { %v4306_v20 = vpack.i.bf16 %v3050_v19, %v3048_v55 }
0x113b   :  { %4307 = vrot.lane.b32.xlu0 %v4306_v20, %s6029_s4 }
0x1189   :  { %v4293_v10 = vpop.permute.xlu2 %4292 }
0x118a   :  { %v4295_v36 = vunpack.i.h.bf16 %v4293_v10  ;;  %v4294_v37 = vunpack.i.l.bf16 %v4293_v10 }
0x118c   :  { %v3109_v59 = vsel %vm1797_vm13, %v3105_v38, %v4294_v37  ;;  %v3110_v49 = vsel %vm1797_vm13, %v3106_v0, %v4295_v36  ;;  %v4227_v36 = vld [vmem:[%s5983_s12 + $0x38] sm:$0xff]  ;;  %v4226_v37 = vld [vmem:[%s5983_s12 + $0x30] sm:$0xff] }
0x118d   :  { %v3113_v23 = vpack.c.bf16 %v3110_v49, %v3109_v59  ;;  %3338 = vmatpush.bf16.msrb.mxu3 %v4227_v36 }
0x118f   :  { %4073 = vmatmul.msk.bf16.vlgmr.msrb.gmra.mxu2 %vm265_vm5, %v3113_v23  ;;  %v4225_v23 = vld [vmem:[%s5983_s12 + $0x28] sm:$0xff] }
0x1191   :  { %v4298_v22 = vpop.permute.xlu2 %4297  ;;  %3339 = vmatpush.bf16.msrb.mxu3 %v4226_v37 }
0x1192   :  { %v4300_v32 = vunpack.i.h.bf16 %v4298_v22  ;;  %v4299_v25 = vunpack.i.l.bf16 %v4298_v22 }
0x1194   :  { %v3104_v15 = vsel %vm1148_vm12, %v2612_v42, %v4300_v32  ;;  %v3103_v7 = vsel %vm1148_vm12, %v2610_v4, %v4299_v25  ;;  %v4224_v32 = vld [vmem:[%s5983_s12 + $0x20] sm:$0xff] }
0x1195   :  { %3340 = vmatpush.bf16.msrb.mxu3 %v4225_v23 }
0x1199   :  { %3341 = vmatpush.bf16.msrb.mxu3 %v4224_v32 }
0x119d   :  { %v4303_v61 = vpop.permute.xlu1 %4302 }
0x119e   :  { %v4305_v24 = vunpack.i.h.bf16 %v4303_v61  ;;  %v4304_v53 = vunpack.i.l.bf16 %v4303_v61 }
0x11a0   :  { %v3107_v57 = vsel %vm146_vm0, %v3103_v7, %v4304_v53  ;;  %v3108_v43 = vsel %vm146_vm0, %v3104_v15, %v4305_v24 }
0x11ad   :  { %v4308_v54 = vpop.permute.xlu0 %4307 }
0x11ae   :  { %v4310_v40 = vunpack.i.h.bf16 %v4308_v54  ;;  %v4309_v39 = vunpack.i.l.bf16 %v4308_v54 }
0x11b0   :  { %v3111_v51 = vsel %vm1797_vm13, %v3107_v57, %v4309_v39  ;;  %v3112_v45 = vsel %vm1797_vm13, %v3108_v43, %v4310_v40  ;;  %v4321_v43 = vld [vmem:[%s5981_s10 + $0x1] ss:$0 sm:$0xff] }
0x11b1   :  { %v3114_v46 = vpack.c.bf16 %v3112_v45, %v3111_v51 }
0x11b3   :  { %4074 = vmatmul.msk.bf16.gmra.mxu2 %vm265_vm5, %v3114_v46 }
0x1212   :  { %v3168_v29 = vpop.f32.mrf.mxu2 }
0x1213   :  { %v3169_v30 = vadd.f32 %v4320_v35, %v3168_v29 }
0x1215   :  { %v3178_v41 = vadd.f32 %v3169_v30, %v5500_v9 }
0x1217   :  { %v3186_v63 = vsel %vm265_vm5, %v3178_v41, 0.0 }
0x1218   :  { %3187 = vadd.xlane.f32.xlu2 %v3186_v63 }
0x121a   :  { %v3170_v6 = vpop.f32.mrf.mxu2 }
0x121b   :  { %v3171_v26 = vadd.f32 %v4320_v35, %v3170_v6 }
0x121d   :  { %v3179_v16 = vadd.f32 %v3171_v26, %v5505_v58 }
0x121f   :  { %v3189_v47 = vsel %vm265_vm5, %v3179_v16, 0.0 }
0x1220   :  { %3190 = vadd.xlane.f32.xlu0 %v3189_v47 }
0x1236   :  { %v3173_v4 = vpop.f32.mrf.mxu2 }
0x1237   :  { %v3174_v42 = vadd.f32 %v4320_v35, %v3173_v4 }
0x1239   :  { %v3180_v28 = vadd.f32 %v3174_v42, %v5510_v50 }
0x123b   :  { %v3192_v33 = vsel %vm265_vm5, %v3180_v28, 0.0 }
0x123c   :  { %3193 = vadd.xlane.f32.xlu1 %v3192_v33 }
0x123e   :  { %v3175_v11 = vpop.f32.mrf.mxu2 }
0x123f   :  { %v3176_v31 = vadd.f32 %v4320_v35, %v3175_v11  ;;  %v4322_v35 = vld [vmem:[%s5982_s11 + $0x1] ss:$0 sm:$0xff] }
0x1241   :  { %v3181_v9 = vadd.f32 %v3176_v31, %v5515_v12 }
0x1243   :  { %v3195_v44 = vsel %vm265_vm5, %v3181_v9, 0.0 }
0x1244   :  { %3196 = vadd.xlane.f32.xlu2 %v3195_v44 }
0x128b   :  { %v3188_v56 = vpop.xlane.xlu2 %3187 }
0x128c   :  { %v3198_v58 = vmul.f32 %v3188_v56, %v5139_v34 }
0x128e   :  { %v3202_v27 = vsub.f32 %v3178_v41, %v3198_v58 }
0x1290   :  { %v3206_v8 = vmul.f32 %v3202_v27, %v3202_v27 }
0x1292   :  { %v3210_v13 = vsel %vm265_vm5, %v3206_v8, 0.0 }
0x1293   :  { %v3191_v52 = vpop.xlane.xlu0 %3190  ;;  %3211 = vadd.xlane.f32.xlu0 %v3210_v13 }
0x1294   :  { %v3199_v50 = vmul.f32 %v3191_v52, %v5139_v34 }
0x1296   :  { %v3203_v18 = vsub.f32 %v3179_v16, %v3199_v50 }
0x1298   :  { %v3207_v55 = vmul.f32 %v3203_v18, %v3203_v18 }
0x129a   :  { %v3213_v17 = vsel %vm265_vm5, %v3207_v55, 0.0 }
0x129b   :  { %3214 = vadd.xlane.f32.xlu2 %v3213_v17 }
0x12af   :  { %v3194_v12 = vpop.xlane.xlu1 %3193 }
0x12b0   :  { %v3200_v19 = vmul.f32 %v3194_v12, %v5139_v34 }
0x12b2   :  { %v5805_v20 = vsub.f32 %v3180_v28, %v3200_v19 }
0x12b4   :  { %v3208_v2 = vmul.f32 %v5805_v20, %v5805_v20 }
0x12b6   :  { %v3216_v62 = vsel %vm265_vm5, %v3208_v2, 0.0 }
0x12b7   :  { %3217 = vadd.xlane.f32.xlu0 %v3216_v62  ;;  %v3197_v5 = vpop.xlane.xlu2 %3196 }
0x12b8   :  { %v3201_v1 = vmul.f32 %v3197_v5, %v5139_v34 }
0x12ba   :  { %v5811_v14 = vsub.f32 %v3181_v9, %v3201_v1 }
0x12bc   :  { %v3209_v48 = vmul.f32 %v5811_v14, %v5811_v14 }
0x12be   :  { %v3219_v3 = vsel %vm265_vm5, %v3209_v48, 0.0 }
0x12bf   :  { %3220 = vadd.xlane.f32.xlu2 %v3219_v3  ;;  %v4233_v3 = vld [vmem:[%s5985_s14 + $0x68] sm:$0xff] }
0x1306   :  { %v3212_v10 = vpop.xlane.xlu0 %3211 }
0x1307   :  { %v3222_v21 = vmul.f32 %v3212_v10, %v5139_v34  ;;  %v4232_v10 = vld [vmem:[%s5985_s14 + $0x60] sm:$0xff] }
0x1309   :  { %v3226_v60 = vadd.f32 1e-05, %v3222_v21  ;;  %v4323_v21 = vld [vmem:[%s5984_s13 + $0x1] ss:$0 sm:$0xff] }
0x130b   :  { %4491 = vrsqrt.f32 %v3226_v60  ;;  %vm3236_vm12 = vweird.f32 %v3226_v60 }
0x130e   :  { %v3215_v0 = vpop.xlane.xlu2 %3214 }
0x130f   :  { %v3223_v38 = vmul.f32 %v3215_v0, %v5139_v34  ;;  %v4230_v0 = vld [vmem:[%s5985_s14 + $0x50] sm:$0xff] }
0x1311   :  { %v4492_v59 = vpop.eup %4491  ;;  %v3227_v49 = vadd.f32 1e-05, %v3223_v38 }
0x1312   :  { %v3231_v22 = vmul.f32 %v4492_v59, %v3226_v60  ;;  %vm3237_vm0 = vweird.f32 %v4492_v59  ;;  %v4231_v60 = vld [vmem:[%s5985_s14 + $0x58] sm:$0xff] }
0x1313   :  { %4493 = vrsqrt.f32 %v3227_v49  ;;  %vm3238_vm13 = vmor %vm3236_vm12, %vm3237_vm0  ;;  %vm3246_vm15 = vweird.f32 %v3227_v49 }
0x1314   :  { %v3232_v61 = vmul.f32 %v4492_v59, %v3231_v22 }
0x1316   :  { %v3233_v25 = vmul.f32 0.5, %v3232_v61 }
0x1318   :  { %v3234_v24 = vsub.f32 1.5, %v3233_v25  ;;  %v4228_v25 = vld [vmem:[%s5985_s14 + $0x40] sm:$0xff] }
0x1319   :  { %v4494_v53 = vpop.eup %4493 }
0x131a   :  { %v3235_v54 = vmul.f32 %v4492_v59, %v3234_v24  ;;  %v3241_v15 = vmul.f32 %v4494_v53, %v3227_v49  ;;  %vm3247_vm14 = vweird.f32 %v4494_v53  ;;  %v4229_v49 = vld [vmem:[%s5985_s14 + $0x48] sm:$0xff] }
0x131b   :  { %vm3248_vm1 = vmor %vm3246_vm15, %vm3247_vm14 }
0x131c   :  { %v3242_v7 = vmul.f32 %v4494_v53, %v3241_v15  ;;  %v3239_v40 = vsel %vm3238_vm13, %v4492_v59, %v3235_v54 }
0x131d   :  { %v3270_v51 = vmul.f32 %v3239_v40, %v3202_v27 }
0x131e   :  { %v3243_v39 = vmul.f32 0.5, %v3242_v7 }
0x131f   :  { %v3277_v29 = vmul.f32 %v4321_v43, %v3270_v51 }
0x1320   :  { %v3244_v57 = vsub.f32 1.5, %v3243_v39 }
0x1321   :  { %v5836_v63 = vadd.f32 %v4322_v35, %v3277_v29 }
0x1322   :  { %v3245_v45 = vmul.f32 %v4494_v53, %v3244_v57 }
0x1324   :  { %v3249_v46 = vsel %vm3248_vm1, %v4494_v53, %v3245_v45 }
0x1325   :  { %v3271_v30 = vmul.f32 %v3249_v46, %v3203_v18 }
0x1327   :  { %v3278_v41 = vmul.f32 %v4321_v43, %v3271_v30 }
0x1329   :  { %v5838_v6 = vadd.f32 %v4322_v35, %v3278_v41 }
0x132a   :  { %v3218_v26 = vpop.xlane.xlu0 %3217 }
0x132b   :  { %v3288_v16 = vpack.c.bf16 %v5838_v6, %v5836_v63  ;;  %v3224_v47 = vmul.f32 %v3218_v26, %v5139_v34 }
0x132d   :  { %v3228_v4 = vadd.f32 1e-05, %v3224_v47  ;;  %4102 = vmatmul.msk.bf16.vlgmr.msrb.gmra.mxu3 %vm265_vm5, %v3288_v16 }
0x132f   :  { %4495 = vrsqrt.f32 %v3228_v4  ;;  %vm3256_vm3 = vweird.f32 %v3228_v4 }
0x1332   :  { %v3221_v42 = vpop.xlane.xlu2 %3220 }
0x1333   :  { %v3225_v28 = vmul.f32 %v3221_v42, %v5139_v34 }
0x1335   :  { %v4496_v33 = vpop.eup %4495  ;;  %v3229_v11 = vadd.f32 1e-05, %v3225_v28 }
0x1336   :  { %v3251_v31 = vmul.f32 %v4496_v33, %v3228_v4  ;;  %vm3257_vm2 = vweird.f32 %v4496_v33 }
0x1337   :  { %4497 = vrsqrt.f32 %v3229_v11  ;;  %vm3258_vm4 = vmor %vm3256_vm3, %vm3257_vm2  ;;  %vm3266_vm7 = vweird.f32 %v3229_v11 }
0x1338   :  { %v3252_v9 = vmul.f32 %v4496_v33, %v3251_v31 }
0x133a   :  { %v3253_v44 = vmul.f32 0.5, %v3252_v9 }
0x133c   :  { %v3254_v56 = vsub.f32 1.5, %v3253_v44 }
0x133d   :  { %v4498_v58 = vpop.eup %4497 }
0x133e   :  { %v3255_v27 = vmul.f32 %v4496_v33, %v3254_v56  ;;  %v3261_v8 = vmul.f32 %v4498_v58, %v3229_v11  ;;  %vm3267_vm6 = vweird.f32 %v4498_v58 }
0x133f   :  { %vm3268_vm8 = vmor %vm3266_vm7, %vm3267_vm6  ;;  %vm3700_vm6 = vcmask 1041409  }
0x1340   :  { %v3262_v13 = vmul.f32 %v4498_v58, %v3261_v8  ;;  %v3259_v52 = vsel %vm3258_vm4, %v4496_v33, %v3255_v27 }
0x1341   :  { %v3272_v55 = vmul.f32 %v3259_v52, %v5805_v20  ;;  %v4235_v20 = vld [vmem:[%s5985_s14 + $0x78] sm:$0xff] }
0x1342   :  { %v3263_v50 = vmul.f32 0.5, %v3262_v13  ;;  %3461 = vmatpush.bf16.msrb.mxu0 %v4235_v20 }
0x1343   :  { %v3279_v2 = vmul.f32 %v4321_v43, %v3272_v55 }
0x1344   :  { %v3264_v18 = vsub.f32 1.5, %v3263_v50 }
0x1345   :  { %v5847_v5 = vadd.f32 %v4322_v35, %v3279_v2 }
0x1346   :  { %v3265_v17 = vmul.f32 %v4498_v58, %v3264_v18 }
0x1348   :  { %v3269_v12 = vsel %vm3268_vm8, %v4498_v58, %v3265_v17 }
0x1349   :  { %v3273_v19 = vmul.f32 %v3269_v12, %v5811_v14  ;;  %v4234_v14 = vld [vmem:[%s5985_s14 + $0x70] sm:$0xff] }
0x134a   :  { %3462 = vmatpush.bf16.msrb.mxu0 %v4234_v14 }
0x134b   :  { %v3280_v62 = vmul.f32 %v4321_v43, %v3273_v19  ;;  %v4324_v19 = vld [vmem:[%s5986_s15 + $0x1] ss:$0 sm:$0xff] }
0x134d   :  { %v5849_v1 = vadd.f32 %v4322_v35, %v3280_v62 }
0x134e   :  { %3463 = vmatpush.bf16.msrb.mxu0 %v4233_v3 }
0x134f   :  { %v3289_v48 = vpack.c.bf16 %v5849_v1, %v5847_v5 }
0x1351   :  { %4103 = vmatmul.msk.bf16.gmra.mxu3 %vm265_vm5, %v3289_v48 }
0x1352   :  { %3464 = vmatpush.bf16.msrb.mxu0 %v4232_v10 }
0x1356   :  { %3465 = vmatpush.bf16.msrb.mxu0 %v4231_v60 }
0x135a   :  { %3466 = vmatpush.bf16.msrb.mxu0 %v4230_v0 }
0x135e   :  { %3467 = vmatpush.bf16.msrb.mxu0 %v4229_v49 }
0x1362   :  { %3468 = vmatpush.bf16.msrb.mxu0 %v4228_v25 }
0x13b0   :  { %v3343_v36 = vpop.f32.mrf.mxu3 }
0x13b1   :  { %v3344_v37 = vadd.f32 %v4323_v21, %v3343_v36 }
0x13b3   :  { %v3357_v38 = vmul.f32 0.044715, %v3344_v37  ;;  %v3353_v51 = vmul.f32 0.5, %v3344_v37 }
0x13b5   :  { %v3361_v59 = vmul.f32 %v3357_v38, %v3344_v37 }
0x13b7   :  { %v3365_v23 = vmul.f32 %v3361_v59, %v3344_v37 }
0x13b8   :  { %v3345_v22 = vpop.f32.mrf.mxu3 }
0x13b9   :  { %v3369_v61 = vadd.f32 %v3365_v23, %v3344_v37  ;;  %v3346_v32 = vadd.f32 %v4323_v21, %v3345_v22 }
0x13bb   :  { %v3358_v24 = vmul.f32 0.044715, %v3346_v32  ;;  %v3373_v53 = vmul.f32 0.7978846, %v3369_v61  ;;  %v3354_v45 = vmul.f32 0.5, %v3346_v32 }
0x13bd   :  { %v3362_v54 = vmul.f32 %v3358_v24, %v3346_v32  ;;  %4499 = vtanh.f32 %v3373_v53 }
0x13bf   :  { %v3366_v15 = vmul.f32 %v3362_v54, %v3346_v32 }
0x13c1   :  { %v3370_v7 = vadd.f32 %v3366_v15, %v3346_v32 }
0x13c3   :  { %v3374_v40 = vmul.f32 0.7978846, %v3370_v7  ;;  %v4500_v39 = vpop.eup %4499 }
0x13c4   :  { %v3381_v57 = vadd.f32 1.0, %v4500_v39 }
0x13c5   :  { %4501 = vtanh.f32 %v3374_v40 }
0x13c6   :  { %v3385_v35 = vmul.f32 %v3381_v57, %v3353_v51 }
0x13cb   :  { %v4502_v43 = vpop.eup %4501 }
0x13cc   :  { %v3382_v46 = vadd.f32 1.0, %v4502_v43 }
0x13ce   :  { %v3386_v29 = vmul.f32 %v3382_v46, %v3354_v45 }
0x13d0   :  { %v3389_v30 = vpack.c.bf16 %v3386_v29, %v3385_v35 }
0x13d2   :  { %3469 = vmatmul.bf16.vlgmr.msrb.gmra.mxu0 %v3389_v30 }
0x13d4   :  { %v3348_v41 = vpop.f32.mrf.mxu3 }
0x13d5   :  { %v3349_v26 = vadd.f32 %v4323_v21, %v3348_v41 }
0x13d7   :  { %v3359_v16 = vmul.f32 0.044715, %v3349_v26  ;;  %v3355_v52 = vmul.f32 0.5, %v3349_v26 }
0x13d9   :  { %v3363_v47 = vmul.f32 %v3359_v16, %v3349_v26 }
0x13db   :  { %v3367_v4 = vmul.f32 %v3363_v47, %v3349_v26 }
0x13dc   :  { %v3350_v42 = vpop.f32.mrf.mxu3 }
0x13dd   :  { %v3351_v28 = vadd.f32 %v4323_v21, %v3350_v42  ;;  %v3371_v33 = vadd.f32 %v3367_v4, %v3349_v26 }
0x13df   :  { %v3360_v11 = vmul.f32 0.044715, %v3351_v28  ;;  %v3375_v9 = vmul.f32 0.7978846, %v3371_v33  ;;  %v3356_v50 = vmul.f32 0.5, %v3351_v28 }
0x13e1   :  { %v3364_v31 = vmul.f32 %v3360_v11, %v3351_v28  ;;  %4503 = vtanh.f32 %v3375_v9 }
0x13e3   :  { %v3368_v44 = vmul.f32 %v3364_v31, %v3351_v28 }
0x13e5   :  { %v3372_v56 = vadd.f32 %v3368_v44, %v3351_v28  ;;  %v4325_v44 = vld [vmem:[%s5987_s16] ss:$0 sm:$0xff] }
0x13e7   :  { %v3376_v58 = vmul.f32 0.7978846, %v3372_v56  ;;  %v4504_v27 = vpop.eup %4503 }
0x13e8   :  { %v3383_v8 = vadd.f32 1.0, %v4504_v27 }
0x13e9   :  { %4505 = vtanh.f32 %v3376_v58 }
0x13ea   :  { %v3387_v55 = vmul.f32 %v3383_v8, %v3355_v52  ;;  %v4326_v8 = vld [vmem:[%s5988_s17] ss:$0 sm:$0xff] }
0x13ef   :  { %v4506_v13 = vpop.eup %4505 }
0x13f0   :  { %v3384_v18 = vadd.f32 1.0, %v4506_v13 }
0x13f2   :  { %v3388_v17 = vmul.f32 %v3384_v18, %v3356_v50  ;;  %v4327_v50 = vld [vmem:[%s5989_s18] ss:$0 sm:$0xff] }
0x13f4   :  { %v3390_v12 = vpack.c.bf16 %v3388_v17, %v3387_v55 }
0x13f6   :  { %3474 = vmatmul.bf16.gmra.mxu0 %v3390_v12 }
0x144f   :  { %v3470_v2 = vpop.f32.mrf.mxu0 }
0x1450   :  { %v3471_v62 = vadd.f32 %v4324_v19, %v3470_v2 }
0x1452   :  { %v3480_v48 = vadd.f32 %v3471_v62, %v5836_v63 }
0x1454   :  { %v3486_v20 = vsel %vm265_vm5, %v3480_v48, 0.0 }
0x1455   :  { %3487 = vadd.xlane.f32.xlu0 %v3486_v20 }
0x1457   :  { %v3472_v14 = vpop.f32.mrf.mxu0 }
0x1458   :  { %v3473_v3 = vadd.f32 %v4324_v19, %v3472_v14 }
0x145a   :  { %v3481_v10 = vadd.f32 %v3473_v3, %v5838_v6 }
0x145c   :  { %v3489_v21 = vsel %vm265_vm5, %v3481_v10, 0.0 }
0x145d   :  { %3490 = vadd.xlane.f32.xlu1 %v3489_v21 }
0x1473   :  { %v3475_v60 = vpop.f32.mrf.mxu0 }
0x1474   :  { %v3476_v36 = vadd.f32 %v4324_v19, %v3475_v60 }
0x1476   :  { %v3482_v37 = vadd.f32 %v3476_v36, %v5847_v5 }
0x1478   :  { %v3492_v0 = vsel %vm265_vm5, %v3482_v37, 0.0 }
0x1479   :  { %3493 = vadd.xlane.f32.xlu2 %v3492_v0 }
0x147b   :  { %v3477_v38 = vpop.f32.mrf.mxu0 }
0x147c   :  { %v3478_v59 = vadd.f32 %v4324_v19, %v3477_v38 }
0x147e   :  { %v3483_v63 = vadd.f32 %v3478_v59, %v5849_v1 }
0x1480   :  { %v3495_v49 = vsel %vm265_vm5, %v3483_v63, 0.0 }
0x1481   :  { %3496 = vadd.xlane.f32.xlu0 %v3495_v49 }
0x14c8   :  { %v3488_v23 = vpop.xlane.xlu0 %3487 }
0x14c9   :  { %v3498_v6 = vmul.f32 %v3488_v23, %v5139_v34 }
0x14cb   :  { %v3502_v22 = vsub.f32 %v3480_v48, %v3498_v6 }
0x14cd   :  { %v3506_v61 = vmul.f32 %v3502_v22, %v3502_v22 }
0x14cf   :  { %v3510_v32 = vsel %vm265_vm5, %v3506_v61, 0.0 }
0x14d0   :  { %v3491_v25 = vpop.xlane.xlu1 %3490  ;;  %3511 = vadd.xlane.f32.xlu1 %v3510_v32 }
0x14d1   :  { %v3499_v5 = vmul.f32 %v3491_v25, %v5139_v34 }
0x14d3   :  { %v3503_v24 = vsub.f32 %v3481_v10, %v3499_v5 }
0x14d5   :  { %v3507_v53 = vmul.f32 %v3503_v24, %v3503_v24 }
0x14d7   :  { %v3513_v54 = vsel %vm265_vm5, %v3507_v53, 0.0 }
0x14d8   :  { %3514 = vadd.xlane.f32.xlu2 %v3513_v54 }
0x14ec   :  { %v3494_v1 = vpop.xlane.xlu2 %3493 }
0x14ed   :  { %v3500_v15 = vmul.f32 %v3494_v1, %v5139_v34 }
0x14ef   :  { %v5897_v7 = vsub.f32 %v3482_v37, %v3500_v15 }
0x14f1   :  { %v3508_v40 = vmul.f32 %v5897_v7, %v5897_v7 }
0x14f3   :  { %v3516_v39 = vsel %vm265_vm5, %v3508_v40, 0.0 }
0x14f4   :  { %v3497_v57 = vpop.xlane.xlu0 %3496  ;;  %3517 = vadd.xlane.f32.xlu0 %v3516_v39 }
0x14f5   :  { %v3501_v43 = vmul.f32 %v3497_v57, %v5139_v34 }
0x14f7   :  { %v5903_v51 = vsub.f32 %v3483_v63, %v3501_v43 }
0x14f9   :  { %v3509_v45 = vmul.f32 %v5903_v51, %v5903_v51 }
0x14fb   :  { %v3519_v46 = vsel %vm265_vm5, %v3509_v45, 0.0 }
0x14fc   :  { %3520 = vadd.xlane.f32.xlu1 %v3519_v46 }
0x1543   :  { %v3512_v35 = vpop.xlane.xlu1 %3511 }
0x1544   :  { %v3522_v29 = vmul.f32 %v3512_v35, %v5139_v34  ;;  %v3609_v35 = vstv %s5990_s19 }
0x1546   :  { %v3526_v30 = vadd.f32 1e-05, %v3522_v29 }
0x1548   :  { %4507 = vrsqrt.f32 %v3526_v30  ;;  %vm3536_vm10 = vweird.f32 %v3526_v30 }
0x154b   :  { %v3515_v41 = vpop.xlane.xlu2 %3514 }
0x154c   :  { %v3523_v26 = vmul.f32 %v3515_v41, %v5139_v34 }
0x154e   :  { %v4508_v16 = vpop.eup %4507  ;;  %v3527_v47 = vadd.f32 1e-05, %v3523_v26 }
0x154f   :  { %v3531_v4 = vmul.f32 %v4508_v16, %v3526_v30  ;;  %vm3537_vm9 = vweird.f32 %v4508_v16 }
0x1550   :  { %4509 = vrsqrt.f32 %v3527_v47  ;;  %vm3538_vm11 = vmor %vm3536_vm10, %vm3537_vm9  ;;  %vm3546_vm12 = vweird.f32 %v3527_v47 }
0x1551   :  { %v3532_v42 = vmul.f32 %v4508_v16, %v3531_v4 }
0x1553   :  { %v3533_v28 = vmul.f32 0.5, %v3532_v42 }
0x1555   :  { %v3534_v33 = vsub.f32 1.5, %v3533_v28 }
0x1556   :  { %v4510_v11 = vpop.eup %4509 }
0x1557   :  { %v3535_v31 = vmul.f32 %v4508_v16, %v3534_v33  ;;  %v3541_v9 = vmul.f32 %v4510_v11, %v3527_v47  ;;  %vm3547_vm0 = vweird.f32 %v4510_v11 }
0x1558   :  { %vm3548_vm13 = vmor %vm3546_vm12, %vm3547_vm0 }
0x1559   :  { %v3539_v56 = vsel %vm3538_vm11, %v4508_v16, %v3535_v31  ;;  %v3542_v58 = vmul.f32 %v4510_v11, %v3541_v9 }
0x155a   :  { %v3570_v27 = vmul.f32 %v3539_v56, %v3502_v22 }
0x155b   :  { %v3543_v13 = vmul.f32 0.5, %v3542_v58 }
0x155c   :  { %v3577_v52 = vmul.f32 %v4325_v44, %v3570_v27 }
0x155d   :  { %v3544_v18 = vsub.f32 1.5, %v3543_v13 }
0x155e   :  { %v5919_v55 = vadd.f32 %v4326_v8, %v3577_v52 }
0x155f   :  { %v3545_v17 = vmul.f32 %v4510_v11, %v3544_v18 }
0x1560   :  { %v3592_v12 = vmul.f32 %v4327_v50, %v5919_v55 }
0x1561   :  { %v3549_v19 = vsel %vm3548_vm13, %v4510_v11, %v3545_v17 }
0x1562   :  { %v3596_v2 = vsel %vm265_vm5, %v3592_v12, 0.0  ;;  %v3571_v62 = vmul.f32 %v3549_v19, %v3503_v24 }
0x1563   :  { %3597 = vadd.xlane.f32.xlu2 %v3596_v2 }
0x1564   :  { %v3578_v48 = vmul.f32 %v4325_v44, %v3571_v62 }
0x1566   :  { %v5923_v20 = vadd.f32 %v4326_v8, %v3578_v48 }
0x1567   :  { %v3518_v14 = vpop.xlane.xlu0 %3517 }
0x1568   :  { %v3524_v3 = vmul.f32 %v3518_v14, %v5139_v34  ;;  %v3593_v10 = vmul.f32 %v4327_v50, %v5923_v20 }
0x156a   :  { %v3528_v21 = vadd.f32 1e-05, %v3524_v3  ;;  %v3599_v60 = vsel %vm265_vm5, %v3593_v10, 0.0 }
0x156b   :  { %3600 = vadd.xlane.f32.xlu0 %v3599_v60 }
0x156c   :  { %4511 = vrsqrt.f32 %v3528_v21  ;;  %vm3556_vm15 = vweird.f32 %v3528_v21 }
0x156f   :  { %v3521_v36 = vpop.xlane.xlu1 %3520 }
0x1570   :  { %v3525_v37 = vmul.f32 %v3521_v36, %v5139_v34 }
0x1572   :  { %v4512_v0 = vpop.eup %4511  ;;  %v3529_v38 = vadd.f32 1e-05, %v3525_v37 }
0x1573   :  { %v3551_v59 = vmul.f32 %v4512_v0, %v3528_v21  ;;  %vm3557_vm14 = vweird.f32 %v4512_v0 }
0x1574   :  { %4513 = vrsqrt.f32 %v3529_v38  ;;  %vm3558_vm1 = vmor %vm3556_vm15, %vm3557_vm14  ;;  %vm3566_vm3 = vweird.f32 %v3529_v38 }
0x1575   :  { %v3552_v63 = vmul.f32 %v4512_v0, %v3551_v59 }
0x1577   :  { %v3553_v49 = vmul.f32 0.5, %v3552_v63 }
0x1579   :  { %v3554_v23 = vsub.f32 1.5, %v3553_v49 }
0x157a   :  { %v4514_v6 = vpop.eup %4513 }
0x157b   :  { %v3555_v22 = vmul.f32 %v4512_v0, %v3554_v23  ;;  %v3561_v61 = vmul.f32 %v4514_v6, %v3529_v38  ;;  %vm3567_vm2 = vweird.f32 %v4514_v6 }
0x157c   :  { %vm3568_vm4 = vmor %vm3566_vm3, %vm3567_vm2 }
0x157d   :  { %v3559_v32 = vsel %vm3558_vm1, %v4512_v0, %v3555_v22  ;;  %v3562_v25 = vmul.f32 %v4514_v6, %v3561_v61 }
0x157e   :  { %v3572_v5 = vmul.f32 %v3559_v32, %v5897_v7 }
0x157f   :  { %v3563_v24 = vmul.f32 0.5, %v3562_v25 }
0x1580   :  { %v3579_v53 = vmul.f32 %v4325_v44, %v3572_v5 }
0x1581   :  { %v3564_v34 = vsub.f32 1.5, %v3563_v24 }
0x1582   :  { %v5930_v54 = vadd.f32 %v4326_v8, %v3579_v53 }
0x1583   :  { %v3565_v1 = vmul.f32 %v4514_v6, %v3564_v34 }
0x1584   :  { %v3594_v15 = vmul.f32 %v4327_v50, %v5930_v54 }
0x1585   :  { %v3569_v40 = vsel %vm3568_vm4, %v4514_v6, %v3565_v1 }
0x1586   :  { %v3602_v39 = vsel %vm265_vm5, %v3594_v15, 0.0  ;;  %v3573_v57 = vmul.f32 %v3569_v40, %v5903_v51  ;;  %v4239_v40 = vld [vmem:[%s5991_s20 + $0x18] sm:$0xff] }
0x1587   :  { %3603 = vadd.xlane.f32.xlu1 %v3602_v39  ;;  %3734 = vmatpush.bf16.msra.mxu1 %v4239_v40 }
0x1588   :  { %v3580_v43 = vmul.f32 %v4325_v44, %v3573_v57 }
0x158a   :  { %v5935_v45 = vadd.f32 %v4326_v8, %v3580_v43 }
0x158c   :  { %v3595_v7 = vmul.f32 %v4327_v50, %v5935_v45 }
0x158e   :  { %v3605_v46 = vsel %vm265_vm5, %v3595_v7, 0.0  ;;  %v4237_v7 = vld [vmem:[%s5991_s20 + $0x8] sm:$0xff] }
0x158f   :  { %3606 = vadd.xlane.f32.xlu2 %v3605_v46 }
0x15d6   :  { %v3598_v29 = vpop.xlane.xlu2 %3597 }
0x15d7   :  { %v3610_v41 = vadd.f32 %v3609_v35, %v3598_v29 }
0x15de   :  { %v3601_v30 = vpop.xlane.xlu0 %3600 }
0x15df   :  { %v3611_v26 = vadd.f32 %v3609_v35, %v3601_v30 }
0x15e1   :  { %v3614_v16 = vmax.f32 %v3610_v41, %v3611_v26 }
0x15e3   :  { %v3615_v47 = vrot.slane %v3614_v16, 4 }
0x15e5   :  { %v3616_v51 = vmax.f32 %v3614_v16, %v3615_v47 }
0x15e7   :  { %v3617_v4 = vrot.slane %v3616_v51, 2 }
0x15e9   :  { %v3618_v42 = vmax.f32 %v3616_v51, %v3617_v4 }
0x15eb   :  { %v3619_v28 = vrot.slane %v3618_v42, 1 }
0x15ed   :  { %v3620_v33 = vmax.f32 %v3618_v42, %v3619_v28 }
0x15ef   :  { %v3628_v11 = vsub.f32 %v3610_v41, %v3620_v33  ;;  %v3629_v31 = vsub.f32 %v3611_v26, %v3620_v33 }
0x15f1   :  { %v3632_v9 = vmul.f32 1.442695, %v3628_v11  ;;  %v3634_v44 = vmul.f32 1.442695, %v3629_v31 }
0x15f3   :  { %4515 = vpow2.f32 %v3632_v9 }
0x15f4   :  { %4517 = vpow2.f32 %v3634_v44 }
0x15f9   :  { %v4516_v56 = vpop.eup %4515 }
0x15fa   :  { %v4518_v58 = vpop.eup %4517  ;;  %v3604_v13 = vpop.xlane.xlu1 %3603 }
0x15fb   :  { %v3640_v27 = vadd.f32 %v4518_v58, %v4516_v56  ;;  %v3612_v18 = vadd.f32 %v3609_v35, %v3604_v13 }
0x15fd   :  { %v3641_v8 = vrot.slane %v3640_v27, 4 }
0x15ff   :  { %v3642_v52 = vadd.f32 %v3641_v8, %v3640_v27 }
0x1601   :  { %v3643_v12 = vrot.slane %v3642_v52, 2 }
0x1602   :  { %v3607_v50 = vpop.xlane.xlu2 %3606 }
0x1603   :  { %v3613_v17 = vadd.f32 %v3609_v35, %v3607_v50  ;;  %v3644_v62 = vadd.f32 %v3643_v12, %v3642_v52  ;;  %v4236_v35 = vld [vmem:[%s5991_s20] sm:$0xff] }
0x1605   :  { %v3621_v19 = vmax.f32 %v3612_v18, %v3613_v17  ;;  %v3645_v3 = vrot.slane %v3644_v62, 1 }
0x1607   :  { %v3622_v2 = vrot.slane %v3621_v19, 4  ;;  %v3646_v60 = vadd.f32 %v3645_v3, %v3644_v62 }
0x1609   :  { %v3623_v48 = vmax.f32 %v3621_v19, %v3622_v2  ;;  %4519 = vrcp.f32 %v3646_v60 }
0x160b   :  { %v3624_v14 = vrot.slane %v3623_v48, 2 }
0x160d   :  { %v3625_v10 = vmax.f32 %v3623_v48, %v3624_v14 }
0x160f   :  { %v3626_v21 = vrot.slane %v3625_v10, 1  ;;  %v4520_v63 = vpop.eup %4519 }
0x1610   :  { %v3656_v6 = vmul.f32 %v4520_v63, %v4516_v56  ;;  %v3657_v22 = vmul.f32 %v4520_v63, %v4518_v58 }
0x1611   :  { %v3627_v36 = vmax.f32 %v3625_v10, %v3626_v21 }
0x1612   :  { %v3660_v25 = vmul.f32 %v3656_v6, %v5919_v55  ;;  %v3661_v5 = vmul.f32 %v3657_v22, %v5923_v20  ;;  %v4238_v55 = vld [vmem:[%s5991_s20 + $0x10] sm:$0xff] }
0x1613   :  { %v3630_v37 = vsub.f32 %v3612_v18, %v3627_v36  ;;  %v3631_v0 = vsub.f32 %v3613_v17, %v3627_v36  ;;  %3735 = vmatpush.bf16.msra.mxu1 %v4238_v55  ;;  %v4328_v18 = vld [vmem:[%s5992_s21] ss:$0 sm:$0xff] }
0x1614   :  { %v3664_v34 = vsel %vm265_vm5, %v3660_v25, 0.0  ;;  %v3665_v1 = vsel %vm265_vm5, %v3661_v5, 0.0 }
0x1615   :  { %v3636_v38 = vmul.f32 1.442695, %v3630_v37  ;;  %v3638_v59 = vmul.f32 1.442695, %v3631_v0  ;;  %v3666_v39 = vadd.f32 %v3665_v1, %v3664_v34 }
0x1617   :  { %4521 = vpow2.f32 %v3636_v38  ;;  %v3667_v20 = vrot.slane %v3666_v39, 4  ;;  %3736 = vmatpush.bf16.msra.mxu1 %v4237_v7 }
0x1618   :  { %4523 = vpow2.f32 %v3638_v59 }
0x1619   :  { %v3668_v46 = vadd.f32 %v3667_v20, %v3666_v39 }
0x161b   :  { %v3669_v26 = vrot.slane %v3668_v46, 2  ;;  %3737 = vmatpush.bf16.msra.mxu1 %v4236_v35 }
0x161d   :  { %v4522_v49 = vpop.eup %4521  ;;  %v3670_v42 = vadd.f32 %v3669_v26, %v3668_v46 }
0x161e   :  { %v4524_v23 = vpop.eup %4523 }
0x161f   :  { %v3647_v61 = vadd.f32 %v4524_v23, %v4522_v49  ;;  %v3671_v11 = vrot.slane %v3670_v42, 1 }
0x1621   :  { %v3648_v32 = vrot.slane %v3647_v61, 4  ;;  %v3672_v44 = vadd.f32 %v3671_v11, %v3670_v42 }
0x1623   :  { %v3649_v24 = vadd.f32 %v3648_v32, %v3647_v61  ;;  %v3682_v27 = vpack.c.bf16 %v3672_v44, %v3672_v44 }
0x1625   :  { %v3650_v53 = vrot.slane %v3649_v24, 2 }
0x1627   :  { %v3651_v15 = vadd.f32 %v3650_v53, %v3649_v24 }
0x1629   :  { %v3652_v57 = vrot.slane %v3651_v15, 1 }
0x162b   :  { %v3653_v43 = vadd.f32 %v3652_v57, %v3651_v15 }
0x162d   :  { %4525 = vrcp.f32 %v3653_v43 }
0x1633   :  { %v4526_v29 = vpop.eup %4525 }
0x1634   :  { %v3658_v30 = vmul.f32 %v4526_v29, %v4522_v49  ;;  %v3659_v41 = vmul.f32 %v4526_v29, %v4524_v23 }
0x1636   :  { %v3662_v16 = vmul.f32 %v3658_v30, %v5930_v54  ;;  %v3663_v47 = vmul.f32 %v3659_v41, %v5935_v45  ;;  %v3698_v54 = vunpack.c.l.b16 %v3682_v27 }
0x1638   :  { %v3673_v51 = vsel %vm265_vm5, %v3662_v16, 0.0  ;;  %v3674_v4 = vsel %vm265_vm5, %v3663_v47, 0.0 }
0x1639   :  { %v3675_v28 = vadd.f32 %v3674_v4, %v3673_v51 }
0x163b   :  { %v3676_v33 = vrot.slane %v3675_v28, 4 }
0x163d   :  { %v3677_v31 = vadd.f32 %v3676_v33, %v3675_v28 }
0x163f   :  { %v3678_v9 = vrot.slane %v3677_v31, 2 }
0x1641   :  { %v3679_v56 = vadd.f32 %v3678_v9, %v3677_v31 }
0x1643   :  { %v3680_v58 = vrot.slane %v3679_v56, 1 }
0x1645   :  { %v3681_v8 = vadd.f32 %v3680_v58, %v3679_v56 }
0x1647   :  { %v3683_v13 = vpack.c.bf16 %v3681_v8, %v3681_v8 }
0x1649   :  { %v3699_v52 = vunpack.c.l.b16 %v3683_v13 }
0x164b   :  { %v3701_v45 = vsel %vm3700_vm6, %v3699_v52, %v3698_v54 }
0x164c   :  { %v3702_v50 = vpack.c.b16 %v3701_v45, %v3701_v45 }
0x164e   :  { %4169 = vmatmul.msk.bf16.vlgmr.msra.gmra.mxu1 %vm265_vm5, %v3702_v50 }
0x16cb   :  { %v3739_v17 = vpop.f32.mrf.mxu1 }
0x16cc   :  { %v3740_v12 = vadd.f32 %v4328_v18, %v3739_v17 }
0x16ce   :  { %v3744_v19 = vrot.slane %v3740_v12, 1  ;;  %3746 = vst [vmem:[#allocation3] sm:$0x1] %v3740_v12 }
0x16d0   :  { %3747 = vst [vmem:[#allocation3 + $0x1] sm:$0x1] %v3744_v19 }
0x16d1   :  { %3760 = dma.vmem_to_hbm [thread:$0]  %s3753_s6, 32, %s3755_s28, [#allocation4], %s6027_s30, %s6027_s30, %s4561_s25  }
0x16d3   :  { %v3741_v2 = vpop.f32.mrf.mxu1 }
0x16d4   :  { %4551 = dma.done.wait [#allocation4], 32  }
0x16d5   :  { %4552 = vsyncadd [#allocation4], 4294967264 }
0x16d6   :  { %3765 = vsyncpa [#allocation4], 1 }

</bundles_post_ra>
